<compile_context>
chip_gen: v6e
topology: v6e:2x2x1
jax: 0.10.0
libtpu: 0.0.40
codegen_flags: <defaults>
</compile_context>

<pallas_src>
import collections
import functools

import jax
import jax.numpy as jnp
from jax import lax
from jax.experimental import pallas as pl
from jax.experimental.pallas import tpu as pltpu

BN_EPS = 1e-5
LANES = 128   # TPU lane width; channel dim padded to this


def _round_up(x, m):
    return (x + m - 1) // m * m


# --------------------------------------------------------------------------
# Generation-aware tile / VMEM configuration.
# --------------------------------------------------------------------------
_GenCfg = collections.namedtuple("_GenCfg", "tile_m tile_k ew_tile vmem_cap")


@functools.lru_cache(maxsize=1)
def _gen_config():
    try:
        kind = jax.devices()[0].device_kind.lower()
    except Exception:  # pragma: no cover - defensive (e.g. AOT on CPU)
        kind = ""
    if "v7" in kind:
        # v7x: 64 MiB VMEM per core -> smaller tiles, tighter scoped limit.
        return _GenCfg(tile_m=256, tile_k=512, ew_tile=512, vmem_cap=40 << 20)
    # v5e / v6e: 128 MiB VMEM -> larger tiles, fewer grid steps.
    return _GenCfg(tile_m=512, tile_k=512, ew_tile=1024, vmem_cap=96 << 20)


# --------------------------------------------------------------------------
# Kernel 1: tap-folded conv-as-matmul, K-tiled, with fused per-channel batch
# statistics emitted at the last K step.
#   lhs block (tM, tK) bf16 x rhs block (tK, Npad) bf16 -> f32 accumulator,
#   final (tM, Npad) f32 tile plus per-tile channel sum / sum-of-squares.
# --------------------------------------------------------------------------
def _matmul_stats_kernel(lhs_ref, rhs_ref, out_ref, sum_ref, sq_ref, acc_ref):
    @pl.when(pl.program_id(1) == 0)
    def _init():
        acc_ref[...] = jnp.zeros_like(acc_ref)

    acc_ref[...] += jnp.dot(lhs_ref[...], rhs_ref[...],
                            preferred_element_type=jnp.float32)

    @pl.when(pl.program_id(1) == pl.num_programs(1) - 1)
    def _finalize():
        acc = acc_ref[...]
        out_ref[...] = acc
        npad = acc.shape[1]
        s = jnp.sum(acc, axis=0, keepdims=True)            # (1, Npad)
        q = jnp.sum(acc * acc, axis=0, keepdims=True)      # (1, Npad)
        # Replicate value/8 over an 8-row slab so the store is (8,128)-aligned
        # and lane-dense; the wrapper sums every row (exact: /8 then *8).
        sum_ref[...] = jnp.broadcast_to(s * 0.125, (8, npad))
        sq_ref[...] = jnp.broadcast_to(q * 0.125, (8, npad))


def conv_matmul_stats(lhs_bf16, rhs_bf16):
    """(M, K) bf16 @ (K, Npad) bf16 -> (M, Npad) f32, plus channel sum/sum-sq."""
    m, k = lhs_bf16.shape
    npad = rhs_bf16.shape[1]
    cfg = _gen_config()

    tm = min(cfg.tile_m, _round_up(m, 16))
    tk = min(cfg.tile_k, _round_up(k, LANES))
    mp, kp = _round_up(m, tm), _round_up(k, tk)
    mtiles, ktiles = mp // tm, kp // tk

    lhs_p = (lhs_bf16 if (mp == m and kp == k)
             else jnp.pad(lhs_bf16, ((0, mp - m), (0, kp - k))))
    rhs_p = rhs_bf16 if kp == k else jnp.pad(rhs_bf16, ((0, kp - k), (0, 0)))

    # Scheduler hint + per-call scoped VMEM budget (double-buffered blocks).
    flops = 2 * mp * kp * npad
    bytes_acc = (lhs_p.size * 2 + rhs_p.size * 2 + mp * npad * 4
                 + 2 * mtiles * 8 * npad * 4)
    vmem_need = (2 * (tm * tk * 2 + tk * npad * 2 + tm * npad * 4
                      + 2 * 8 * npad * 4) + tm * npad * 4)
    vmem_limit = int(min(cfg.vmem_cap, max(32 << 20, 2 * vmem_need)))

    out, sums, sqs = pl.pallas_call(
        _matmul_stats_kernel,
        out_shape=(jax.ShapeDtypeStruct((mp, npad), jnp.float32),
                   jax.ShapeDtypeStruct((mtiles * 8, npad), jnp.float32),
                   jax.ShapeDtypeStruct((mtiles * 8, npad), jnp.float32)),
        grid_spec=pltpu.PrefetchScalarGridSpec(
            num_scalar_prefetch=0,
            grid=(mtiles, ktiles),
            in_specs=[pl.BlockSpec((tm, tk), lambda i, kk: (i, kk)),
                      pl.BlockSpec((tk, npad), lambda i, kk: (kk, 0))],
            out_specs=[pl.BlockSpec((tm, npad), lambda i, kk: (i, 0)),
                       pl.BlockSpec((8, npad), lambda i, kk: (i, 0)),
                       pl.BlockSpec((8, npad), lambda i, kk: (i, 0))],
            scratch_shapes=[pltpu.VMEM((tm, npad), jnp.float32)]),
        compiler_params=pltpu.CompilerParams(
            dimension_semantics=("parallel", "arbitrary"),
            vmem_limit_bytes=vmem_limit),
        cost_estimate=pl.CostEstimate(flops=flops, transcendentals=0,
                                      bytes_accessed=bytes_acc),
    )(lhs_p, rhs_p)
    # Zero-padded rows/columns contribute exactly 0 to both sums.
    out = out if mp == m else out[:m]
    return out, jnp.sum(sums, axis=0), jnp.sum(sqs, axis=0)


# --------------------------------------------------------------------------
# Kernels 2/3: fused per-channel affine (folded BatchNorm) elementwise passes,
# lane-dense and M-tiled. bn_relu emits bf16 (it feeds conv2's patches).
# --------------------------------------------------------------------------
def _bn_relu_kernel(x_ref, s_ref, b_ref, o_ref):
    o_ref[...] = jnp.maximum(x_ref[...] * s_ref[...] + b_ref[...],
                             0.0).astype(o_ref.dtype)


def _bn_add_relu_kernel(a_ref, sa_ref, ba_ref, c_ref, sc_ref, bc_ref, o_ref):
    a = a_ref[...].astype(jnp.float32)
    c = c_ref[...].astype(jnp.float32)
    o_ref[...] = jnp.maximum(
        a * sa_ref[...] + ba_ref[...] + c * sc_ref[...] + bc_ref[...], 0.0)


def _ew_grid(m):
    cfg = _gen_config()
    tm = min(cfg.ew_tile, _round_up(m, 16))
    mp = _round_up(m, tm)
    return tm, mp, mp // tm


def bn_relu(x, scale, bias):
    """relu(x*scale + bias) per channel, emitted as bf16 (conv2 operand)."""
    m, npad = x.shape
    tm, mp, mtiles = _ew_grid(m)
    xp = x if mp == m else jnp.pad(x, ((0, mp - m), (0, 0)))
    mat = pl.BlockSpec((tm, npad), lambda i: (i, 0))
    vec = pl.BlockSpec((1, npad), lambda i: (0, 0))
    cfg = _gen_config()
    out = pl.pallas_call(
        _bn_relu_kernel,
        out_shape=jax.ShapeDtypeStruct((mp, npad), jnp.bfloat16),
        grid_spec=pltpu.PrefetchScalarGridSpec(
            num_scalar_prefetch=0, grid=(mtiles,),
            in_specs=[mat, vec, vec], out_specs=mat),
        compiler_params=pltpu.CompilerParams(
            dimension_semantics=("parallel",),
            vmem_limit_bytes=int(min(cfg.vmem_cap, 64 << 20))),
    )(xp, scale, bias)
    return out if mp == m else out[:m]


def bn_add_relu(a, sa, ba, c, sc, bc):
    m, npad = a.shape
    tm, mp, mtiles = _ew_grid(m)
    ap = a if mp == m else jnp.pad(a, ((0, mp - m), (0, 0)))
    cp = c if mp == m else jnp.pad(c, ((0, mp - m), (0, 0)))
    mat_a = pl.BlockSpec((tm, npad), lambda i: (i, 0))
    mat_c = pl.BlockSpec((tm, npad), lambda i: (i, 0))
    vec = pl.BlockSpec((1, npad), lambda i: (0, 0))
    cfg = _gen_config()
    out = pl.pallas_call(
        _bn_add_relu_kernel,
        out_shape=jax.ShapeDtypeStruct((mp, npad), jnp.float32),
        grid_spec=pltpu.PrefetchScalarGridSpec(
            num_scalar_prefetch=0, grid=(mtiles,),
            in_specs=[mat_a, vec, vec, mat_c, vec, vec],
            out_specs=pl.BlockSpec((tm, npad), lambda i: (i, 0))),
        compiler_params=pltpu.CompilerParams(
            dimension_semantics=("parallel",),
            vmem_limit_bytes=int(min(cfg.vmem_cap, 64 << 20))),
    )(ap, sa, ba, cp, sc, bc)
    return out if mp == m else out[:m]


# --------------------------------------------------------------------------
# Wrapper-side glue: im2col patch extraction (handles stride directly), weight
# / BN-parameter padding, and folding batch statistics into scale/bias.
# --------------------------------------------------------------------------
def _extract_patches(x, ksize, stride, pad):
    """im2col: (N,D,H,W,C) -> (N*Do*Ho*Wo, ksize^3*C); taps ordered (kd,kh,kw,c)
    to match w.reshape(ksize^3*C, Cout). Input dtype preserved (bf16 here)."""
    n, d, h, w, c = x.shape
    do = (d + 2 * pad - ksize) // stride + 1
    ho = (h + 2 * pad - ksize) // stride + 1
    wo = (w + 2 * pad - ksize) // stride + 1
    xp = jnp.pad(x, ((0, 0), (pad, pad), (pad, pad), (pad, pad), (0, 0)))
    slabs = []
    for kd in range(ksize):
        for kh in range(ksize):
            for kw in range(ksize):
                slabs.append(lax.slice(
                    xp,
                    (0, kd, kh, kw, 0),
                    (n,
                     kd + (do - 1) * stride + 1,
                     kh + (ho - 1) * stride + 1,
                     kw + (wo - 1) * stride + 1,
                     c),
                    (1, stride, stride, stride, 1)))
    patches = jnp.concatenate(slabs, axis=-1)          # (N, Do, Ho, Wo, k^3*C)
    return patches.reshape(n * do * ho * wo, ksize ** 3 * c), (do, ho, wo)
# TODO(synk): build the patches inside the conv kernel from halo'd VMEM tiles
# (in-kernel im2col) to avoid the wrapper-side 27x patch materialization; this
# also enables fusing the bn1-affine+ReLU into conv2's operand load.


def _pad_weight(w2d, npad):
    w = w2d if w2d.shape[1] == npad else jnp.pad(
        w2d, ((0, 0), (0, npad - w2d.shape[1])))
    return w.astype(jnp.bfloat16)


def _pad_vec(v, npad):
    v = v.astype(jnp.float32)
    return v if v.shape[0] == npad else jnp.pad(v, (0, npad - v.shape[0]))


def _bn_fold(ch_sum, ch_sq, count, gamma, beta):
    mean = ch_sum / count
    var = jnp.maximum(ch_sq / count - mean * mean, 0.0)   # biased, as PyTorch
    # TODO(synk): shifted / compensated second-moment accumulation for very
    # large M (E[x^2]-E[x]^2 is cancellation-prone when |mean| >> std).
    scale = gamma * lax.rsqrt(var + BN_EPS)
    bias = beta - mean * scale
    return scale.reshape(1, -1), bias.reshape(1, -1)


# --------------------------------------------------------------------------
# Full ResidualBlock forward.
# --------------------------------------------------------------------------
def residual_block_forward(x_ncdhw, params, stride=1):
    x = jnp.transpose(x_ncdhw, (0, 2, 3, 4, 1)).astype(jnp.float32)   # NDHWC
    n, d, h, w, cin = x.shape
    cout = params["w1"].shape[-1]
    npad = _round_up(cout, LANES)
    has_proj = (stride != 1) or (cin != cout)

    # conv1 (stride folded into the strided patch extraction), bf16 operands.
    x_bf = x.astype(jnp.bfloat16)
    p1, (do, ho, wo) = _extract_patches(x_bf, 3, stride, 1)
    m = n * do * ho * wo

    w1 = _pad_weight(params["w1"].reshape(27 * cin, cout), npad)
    if has_proj:
        # Fold the 1x1x1 projection shortcut into conv1's matmul as extra
        # output columns, nonzero only at the center-tap (kd=kh=kw=1) rows:
        # that tap of p1 is exactly the stride-sampled x the shortcut needs.
        ws2d = _pad_weight(params["ws"].reshape(cin, cout), npad)
        ws_full = jnp.zeros((27 * cin, npad), jnp.bfloat16)
        ws_full = ws_full.at[13 * cin:14 * cin, :].set(ws2d)
        rhs1 = jnp.concatenate([w1, ws_full], axis=1)      # (27*cin, 2*npad)
    else:
        rhs1 = w1

    y1_full, sum1_full, sq1_full = conv_matmul_stats(p1, rhs1)
    if has_proj:
        y1, ysc = y1_full[:, :npad], y1_full[:, npad:]
        sum1, sq1 = sum1_full[:npad], sq1_full[:npad]
        sum_s, sq_s = sum1_full[npad:], sq1_full[npad:]
    else:
        y1, sum1, sq1 = y1_full, sum1_full, sq1_full

    g1, b1 = _pad_vec(params["g1"], npad), _pad_vec(params["b1"], npad)
    s1, o1 = _bn_fold(sum1, sq1, m, g1, b1)
    a1 = bn_relu(y1, s1, o1)                               # bf16 (m, npad)

    # conv2 (stride 1) on relu(bn1(y1)) + fused batch stats.
    a1_vol = a1.reshape(n, do, ho, wo, npad)
    if cout != npad:
        a1_vol = a1_vol[..., :cout]
    p2, _ = _extract_patches(a1_vol, 3, 1, 1)
    w2 = _pad_weight(params["w2"].reshape(27 * cout, cout), npad)
    y2, sum2, sq2 = conv_matmul_stats(p2, w2)
    g2, b2 = _pad_vec(params["g2"], npad), _pad_vec(params["b2"], npad)
    s2, o2 = _bn_fold(sum2, sq2, m, g2, b2)

    # shortcut BN fold (projection) or identity pass-through.
    if has_proj:
        gs, bs = _pad_vec(params["gs"], npad), _pad_vec(params["bs"], npad)
        ss, os_ = _bn_fold(sum_s, sq_s, m, gs, bs)
    else:
        xs = x.reshape(m, cin)
        ysc = xs if cin == npad else jnp.pad(xs, ((0, 0), (0, npad - cin)))
        ss = jnp.ones((1, npad), jnp.float32)
        os_ = jnp.zeros((1, npad), jnp.float32)

    # relu(bn2(conv2) + bn_s(shortcut)) fused in one lane-dense pass.
    out = bn_add_relu(y2, s2, o2, ysc, ss, os_)
    if cout != npad:
        out = out[:, :cout]
    out = out.reshape(n, do, ho, wo, cout)
    return jnp.transpose(out, (0, 4, 1, 2, 3))             # back to NCDHW
    # TODO(synk): BatchNorm running_mean/running_var momentum updates are a
    # training-time side effect that does not influence the forward output;
    # they are not reproduced here.


# --------------------------------------------------------------------------
# Pure-JAX reference (lax.conv) mirroring the bf16-operand / f32-accumulate
# matmul policy, used as the correctness check.
# --------------------------------------------------------------------------
def reference_forward(x_ncdhw, params, stride=1):
    x = jnp.transpose(x_ncdhw, (0, 2, 3, 4, 1)).astype(jnp.float32)
    dn = ("NDHWC", "DHWIO", "NDHWC")

    def bn(y, g, b):
        mu = jnp.mean(y, axis=(0, 1, 2, 3))
        va = jnp.var(y, axis=(0, 1, 2, 3))
        return (y - mu) * lax.rsqrt(va + BN_EPS) * g + b

    def conv(inp, wgt, s, pad):
        return lax.conv_general_dilated(
            inp.astype(jnp.bfloat16), wgt.astype(jnp.bfloat16),
            (s, s, s), [(pad, pad)] * 3, dimension_numbers=dn,
            preferred_element_type=jnp.float32)

    y = conv(x, params["w1"], stride, 1)
    y = jax.nn.relu(bn(y, params["g1"], params["b1"]))
    y = conv(y, params["w2"], 1, 1)
    y = bn(y, params["g2"], params["b2"])
    cin, cout = x.shape[-1], params["w1"].shape[-1]
    if stride != 1 or cin != cout:
        sc = conv(x, params["ws"], stride, 0)
        sc = bn(sc, params["gs"], params["bs"])
    else:
        sc = x
    return jnp.transpose(jax.nn.relu(y + sc), (0, 4, 1, 2, 3))


def init_params(key, cin, cout):
    ks = jax.random.split(key, 9)
    return {
        "w1": 0.1 * jax.random.normal(ks[0], (3, 3, 3, cin, cout), jnp.float32),
        "g1": 1.0 + 0.05 * jax.random.normal(ks[1], (cout,), jnp.float32),
        "b1": 0.05 * jax.random.normal(ks[2], (cout,), jnp.float32),
        "w2": 0.1 * jax.random.normal(ks[3], (3, 3, 3, cout, cout), jnp.float32),
        "g2": 1.0 + 0.05 * jax.random.normal(ks[4], (cout,), jnp.float32),
        "b2": 0.05 * jax.random.normal(ks[5], (cout,), jnp.float32),
        "ws": 0.1 * jax.random.normal(ks[6], (1, 1, 1, cin, cout), jnp.float32),
        "gs": 1.0 + 0.05 * jax.random.normal(ks[7], (cout,), jnp.float32),
        "bs": 0.05 * jax.random.normal(ks[8], (cout,), jnp.float32),
    }


if __name__ == "__main__":
    key = jax.random.PRNGKey(0)
    configs = [
        # (N, Cin, Cout, D, H, W, stride)
        (2, 4, 8, 8, 8, 8, 1),   # channel expansion -> projection shortcut
        (2, 8, 8, 8, 8, 8, 2),   # strided block (projection shortcut)
        (2, 8, 8, 8, 8, 8, 1),   # identity shortcut
    ]
    for n, cin, cout, d, h, w, stride in configs:
        key, kx, kp = jax.random.split(key, 3)
        x = jax.random.normal(kx, (n, cin, d, h, w), jnp.float32)   # NCDHW
        params = init_params(kp, cin, cout)

        fwd = jax.jit(functools.partial(residual_block_forward, stride=stride))
        out = jax.block_until_ready(fwd(x, params))
        ref = jax.block_until_ready(reference_forward(x, params, stride=stride))

        assert out.shape == ref.shape
        max_err = float(jnp.max(jnp.abs(out - ref)))
        assert bool(jnp.allclose(out, ref, atol=1e-2, rtol=1e-2)), (
            f"Pallas result mismatch (stride={stride}, cin={cin}, cout={cout}): "
            f"max|diff|={max_err}")
    print("KERNEL_OK")
</pallas_src>

<mosaic_0001>
module attributes {stable_mosaic.version = 11 : i64} {
  func.func @_matmul_stats_kernel(%arg0: i32, %arg1: i32, %arg2: memref<512x128xbf16, #tpu.memory_space<vmem>>, %arg3: memref<128x256xbf16, #tpu.memory_space<vmem>>, %arg4: memref<512x256xf32, #tpu.memory_space<vmem>>, %arg5: memref<8x256xf32, #tpu.memory_space<vmem>>, %arg6: memref<8x256xf32, #tpu.memory_space<vmem>>, %arg7: memref<512x256xf32, #tpu.memory_space<vmem>>) attributes {dimension_semantics = [#tpu.dimension_semantics<parallel>, #tpu.dimension_semantics<arbitrary>], iteration_bounds = array<i64: 2, 1>, scalar_prefetch = 0 : i64, scratch_operands = 1 : i64, tpu.core_type = #tpu.core_type<tc>, window_params = [{transform_indices = @transform_0, window_bounds = array<i64: 512, 128>}, {transform_indices = @transform_1, window_bounds = array<i64: 128, 256>}, {transform_indices = @transform_2, window_bounds = array<i64: 512, 256>}, {transform_indices = @transform_3, window_bounds = array<i64: 8, 256>}, {transform_indices = @transform_4, window_bounds = array<i64: 8, 256>}]} {
    %c0_i32 = arith.constant 0 : i32
    %0 = arith.cmpi eq, %arg1, %c0_i32 : i32
    %1 = arith.extui %0 : i1 to i32
    %c0_i32_0 = arith.constant 0 : i32
    %2 = arith.cmpi ne, %1, %c0_i32_0 : i32
    scf.if %2 {
      %cst_10 = arith.constant 0.000000e+00 : f32
      %12 = vector.broadcast %cst_10 : f32 to vector<512x256xf32>
      %c0_11 = arith.constant 0 : index
      %c0_12 = arith.constant 0 : index
      %13 = vector.load %arg7[%c0_11, %c0_12] : memref<512x256xf32, #tpu.memory_space<vmem>>, vector<512x256xf32>
      tpu.vector_store %arg7[%c0_11, %c0_12], %12 {strides = array<i32>} : memref<512x256xf32, #tpu.memory_space<vmem>>, vector<512x256xf32>,
    } else {
    }
    %c0 = arith.constant 0 : index
    %c0_1 = arith.constant 0 : index
    %3 = vector.load %arg7[%c0, %c0_1] : memref<512x256xf32, #tpu.memory_space<vmem>>, vector<512x256xf32>
    %c0_2 = arith.constant 0 : index
    %c0_3 = arith.constant 0 : index
    %4 = vector.load %arg2[%c0_2, %c0_3] : memref<512x128xbf16, #tpu.memory_space<vmem>>, vector<512x128xbf16>
    %c0_4 = arith.constant 0 : index
    %c0_5 = arith.constant 0 : index
    %5 = vector.load %arg3[%c0_4, %c0_5] : memref<128x256xbf16, #tpu.memory_space<vmem>>, vector<128x256xbf16>
    %cst = arith.constant dense<0.000000e+00> : vector<512x256xf32>
    %6 = tpu.matmul %4, %5, %cst {dimension_numbers = #tpu.dot_dimension_numbers<[1], [0], [0], [1], [0, 0, 1, 1], [], []>} : vector<512x128xbf16>, vector<128x256xbf16>, vector<512x256xf32> -> vector<512x256xf32>
    %7 = arith.addf %3, %6 : vector<512x256xf32>
    %c0_6 = arith.constant 0 : index
    %c0_7 = arith.constant 0 : index
    %8 = vector.load %arg7[%c0_6, %c0_7] : memref<512x256xf32, #tpu.memory_space<vmem>>, vector<512x256xf32>
    tpu.vector_store %arg7[%c0_6, %c0_7], %7 {strides = array<i32>} : memref<512x256xf32, #tpu.memory_space<vmem>>, vector<512x256xf32>,
    %c0_i32_8 = arith.constant 0 : i32
    %9 = arith.cmpi eq, %arg1, %c0_i32_8 : i32
    %10 = arith.extui %9 : i1 to i32
    %c0_i32_9 = arith.constant 0 : i32
    %11 = arith.cmpi ne, %10, %c0_i32_9 : i32
    scf.if %11 {
      %c0_10 = arith.constant 0 : index
      %c0_11 = arith.constant 0 : index
      %12 = vector.load %arg7[%c0_10, %c0_11] : memref<512x256xf32, #tpu.memory_space<vmem>>, vector<512x256xf32>
      %c0_12 = arith.constant 0 : index
      %c0_13 = arith.constant 0 : index
      %13 = vector.load %arg4[%c0_12, %c0_13] : memref<512x256xf32, #tpu.memory_space<vmem>>, vector<512x256xf32>
      tpu.vector_store %arg4[%c0_12, %c0_13], %12 {strides = array<i32>} : memref<512x256xf32, #tpu.memory_space<vmem>>, vector<512x256xf32>,
      %cst_14 = arith.constant dense<0.000000e+00> : vector<256xf32>
      %14 = vector.multi_reduction <add>, %12, %cst_14 [0] : vector<512x256xf32> to vector<256xf32>
      %15 = vector.shape_cast %14 : vector<256xf32> to vector<1x256xf32>
      %16 = arith.mulf %12, %12 : vector<512x256xf32>
      %cst_15 = arith.constant dense<0.000000e+00> : vector<256xf32>
      %17 = vector.multi_reduction <add>, %16, %cst_15 [0] : vector<512x256xf32> to vector<256xf32>
      %18 = vector.shape_cast %17 : vector<256xf32> to vector<1x256xf32>
      %cst_16 = arith.constant 1.250000e-01 : f32
      %19 = vector.broadcast %cst_16 : f32 to vector<1x256xf32>
      %20 = arith.mulf %15, %19 : vector<1x256xf32>
      %21 = vector.shape_cast %20 : vector<1x256xf32> to vector<1x256xf32>
      %22 = vector.broadcast %21 : vector<1x256xf32> to vector<8x256xf32>
      %c0_17 = arith.constant 0 : index
      %c0_18 = arith.constant 0 : index
      %23 = vector.load %arg5[%c0_17, %c0_18] : memref<8x256xf32, #tpu.memory_space<vmem>>, vector<8x256xf32>
      tpu.vector_store %arg5[%c0_17, %c0_18], %22 {strides = array<i32>} : memref<8x256xf32, #tpu.memory_space<vmem>>, vector<8x256xf32>,
      %cst_19 = arith.constant 1.250000e-01 : f32
      %24 = vector.broadcast %cst_19 : f32 to vector<1x256xf32>
      %25 = arith.mulf %18, %24 : vector<1x256xf32>
      %26 = vector.shape_cast %25 : vector<1x256xf32> to vector<1x256xf32>
      %27 = vector.broadcast %26 : vector<1x256xf32> to vector<8x256xf32>
      %c0_20 = arith.constant 0 : index
      %c0_21 = arith.constant 0 : index
      %28 = vector.load %arg6[%c0_20, %c0_21] : memref<8x256xf32, #tpu.memory_space<vmem>>, vector<8x256xf32>
      tpu.vector_store %arg6[%c0_20, %c0_21], %27 {strides = array<i32>} : memref<8x256xf32, #tpu.memory_space<vmem>>, vector<8x256xf32>,
    } else {
    }
    return
  }
  func.func @transform_0(%arg0: i32, %arg1: i32) -> (i32, i32) {
    %c0_i32 = arith.constant 0 : i32
    return %arg0, %arg1 : i32, i32
  }
  func.func @transform_1(%arg0: i32, %arg1: i32) -> (i32, i32) {
    %c0_i32 = arith.constant 0 : i32
    %c0_i32_0 = arith.constant 0 : i32
    return %arg1, %c0_i32 : i32, i32
  }
  func.func @transform_2(%arg0: i32, %arg1: i32) -> (i32, i32) {
    %c0_i32 = arith.constant 0 : i32
    %c0_i32_0 = arith.constant 0 : i32
    return %arg0, %c0_i32 : i32, i32
  }
  func.func @transform_3(%arg0: i32, %arg1: i32) -> (i32, i32) {
    %c0_i32 = arith.constant 0 : i32
    %c0_i32_0 = arith.constant 0 : i32
    return %arg0, %c0_i32 : i32, i32
  }
  func.func @transform_4(%arg0: i32, %arg1: i32) -> (i32, i32) {
    %c0_i32 = arith.constant 0 : i32
    %c0_i32_0 = arith.constant 0 : i32
    return %arg0, %c0_i32 : i32, i32
  }
}

module attributes {stable_mosaic.version = 11 : i64} {
  func.func @_bn_relu_kernel(%arg0: i32, %arg1: memref<1024x128xf32, #tpu.memory_space<vmem>>, %arg2: memref<1x128xf32, #tpu.memory_space<vmem>>, %arg3: memref<1x128xf32, #tpu.memory_space<vmem>>, %arg4: memref<1024x128xbf16, #tpu.memory_space<vmem>>) attributes {dimension_semantics = [#tpu.dimension_semantics<parallel>], iteration_bounds = array<i64: 1>, scalar_prefetch = 0 : i64, scratch_operands = 0 : i64, tpu.core_type = #tpu.core_type<tc>, window_params = [{transform_indices = @transform_0, window_bounds = array<i64: 1024, 128>}, {pipeline_mode = #tpu.pipeline_mode<synchronous>, transform_indices = @transform_1, window_bounds = array<i64: 1, 128>}, {pipeline_mode = #tpu.pipeline_mode<synchronous>, transform_indices = @transform_2, window_bounds = array<i64: 1, 128>}, {transform_indices = @transform_3, window_bounds = array<i64: 1024, 128>}]} {
    %c0 = arith.constant 0 : index
    %c0_0 = arith.constant 0 : index
    %0 = vector.load %arg1[%c0, %c0_0] : memref<1024x128xf32, #tpu.memory_space<vmem>>, vector<1024x128xf32>
    %c0_1 = arith.constant 0 : index
    %c0_2 = arith.constant 0 : index
    %1 = vector.load %arg2[%c0_1, %c0_2] : memref<1x128xf32, #tpu.memory_space<vmem>>, vector<1x128xf32>
    %2 = vector.broadcast %1 : vector<1x128xf32> to vector<1024x128xf32>
    %3 = arith.mulf %0, %2 : vector<1024x128xf32>
    %c0_3 = arith.constant 0 : index
    %c0_4 = arith.constant 0 : index
    %4 = vector.load %arg3[%c0_3, %c0_4] : memref<1x128xf32, #tpu.memory_space<vmem>>, vector<1x128xf32>
    %5 = vector.broadcast %4 : vector<1x128xf32> to vector<1024x128xf32>
    %6 = arith.addf %3, %5 : vector<1024x128xf32>
    %cst = arith.constant 0.000000e+00 : f32
    %7 = vector.broadcast %cst : f32 to vector<1024x128xf32>
    %8 = arith.maximumf %6, %7 : vector<1024x128xf32>
    %9 = arith.truncf %8 : vector<1024x128xf32> to vector<1024x128xbf16>
    %c0_5 = arith.constant 0 : index
    %c0_6 = arith.constant 0 : index
    %10 = vector.load %arg4[%c0_5, %c0_6] : memref<1024x128xbf16, #tpu.memory_space<vmem>>, vector<1024x128xbf16>
    tpu.vector_store %arg4[%c0_5, %c0_6], %9 {strides = array<i32>} : memref<1024x128xbf16, #tpu.memory_space<vmem>>, vector<1024x128xbf16>,
    return
  }
  func.func @transform_0(%arg0: i32) -> (i32, i32) {
    %c0_i32 = arith.constant 0 : i32
    %c0_i32_0 = arith.constant 0 : i32
    return %arg0, %c0_i32 : i32, i32
  }
  func.func @transform_1(%arg0: i32) -> (i32, i32) {
    %c0_i32 = arith.constant 0 : i32
    %c0_i32_0 = arith.constant 0 : i32
    %c0_i32_1 = arith.constant 0 : i32
    return %c0_i32, %c0_i32_0 : i32, i32
  }
  func.func @transform_2(%arg0: i32) -> (i32, i32) {
    %c0_i32 = arith.constant 0 : i32
    %c0_i32_0 = arith.constant 0 : i32
    %c0_i32_1 = arith.constant 0 : i32
    return %c0_i32, %c0_i32_0 : i32, i32
  }
  func.func @transform_3(%arg0: i32) -> (i32, i32) {
    %c0_i32 = arith.constant 0 : i32
    %c0_i32_0 = arith.constant 0 : i32
    return %arg0, %c0_i32 : i32, i32
  }
}

module attributes {stable_mosaic.version = 11 : i64} {
  func.func @_matmul_stats_kernel(%arg0: i32, %arg1: i32, %arg2: memref<512x256xbf16, #tpu.memory_space<vmem>>, %arg3: memref<256x128xbf16, #tpu.memory_space<vmem>>, %arg4: memref<512x128xf32, #tpu.memory_space<vmem>>, %arg5: memref<8x128xf32, #tpu.memory_space<vmem>>, %arg6: memref<8x128xf32, #tpu.memory_space<vmem>>, %arg7: memref<512x128xf32, #tpu.memory_space<vmem>>) attributes {dimension_semantics = [#tpu.dimension_semantics<parallel>, #tpu.dimension_semantics<arbitrary>], iteration_bounds = array<i64: 2, 1>, scalar_prefetch = 0 : i64, scratch_operands = 1 : i64, tpu.core_type = #tpu.core_type<tc>, window_params = [{transform_indices = @transform_0, window_bounds = array<i64: 512, 256>}, {transform_indices = @transform_1, window_bounds = array<i64: 256, 128>}, {transform_indices = @transform_2, window_bounds = array<i64: 512, 128>}, {transform_indices = @transform_3, window_bounds = array<i64: 8, 128>}, {transform_indices = @transform_4, window_bounds = array<i64: 8, 128>}]} {
    %c0_i32 = arith.constant 0 : i32
    %0 = arith.cmpi eq, %arg1, %c0_i32 : i32
    %1 = arith.extui %0 : i1 to i32
    %c0_i32_0 = arith.constant 0 : i32
    %2 = arith.cmpi ne, %1, %c0_i32_0 : i32
    scf.if %2 {
      %cst_10 = arith.constant 0.000000e+00 : f32
      %12 = vector.broadcast %cst_10 : f32 to vector<512x128xf32>
      %c0_11 = arith.constant 0 : index
      %c0_12 = arith.constant 0 : index
      %13 = vector.load %arg7[%c0_11, %c0_12] : memref<512x128xf32, #tpu.memory_space<vmem>>, vector<512x128xf32>
      tpu.vector_store %arg7[%c0_11, %c0_12], %12 {strides = array<i32>} : memref<512x128xf32, #tpu.memory_space<vmem>>, vector<512x128xf32>,
    } else {
    }
    %c0 = arith.constant 0 : index
    %c0_1 = arith.constant 0 : index
    %3 = vector.load %arg7[%c0, %c0_1] : memref<512x128xf32, #tpu.memory_space<vmem>>, vector<512x128xf32>
    %c0_2 = arith.constant 0 : index
    %c0_3 = arith.constant 0 : index
    %4 = vector.load %arg2[%c0_2, %c0_3] : memref<512x256xbf16, #tpu.memory_space<vmem>>, vector<512x256xbf16>
    %c0_4 = arith.constant 0 : index
    %c0_5 = arith.constant 0 : index
    %5 = vector.load %arg3[%c0_4, %c0_5] : memref<256x128xbf16, #tpu.memory_space<vmem>>, vector<256x128xbf16>
    %cst = arith.constant dense<0.000000e+00> : vector<512x128xf32>
    %6 = tpu.matmul %4, %5, %cst {dimension_numbers = #tpu.dot_dimension_numbers<[1], [0], [0], [1], [0, 0, 1, 1], [], []>} : vector<512x256xbf16>, vector<256x128xbf16>, vector<512x128xf32> -> vector<512x128xf32>
    %7 = arith.addf %3, %6 : vector<512x128xf32>
    %c0_6 = arith.constant 0 : index
    %c0_7 = arith.constant 0 : index
    %8 = vector.load %arg7[%c0_6, %c0_7] : memref<512x128xf32, #tpu.memory_space<vmem>>, vector<512x128xf32>
    tpu.vector_store %arg7[%c0_6, %c0_7], %7 {strides = array<i32>} : memref<512x128xf32, #tpu.memory_space<vmem>>, vector<512x128xf32>,
    %c0_i32_8 = arith.constant 0 : i32
    %9 = arith.cmpi eq, %arg1, %c0_i32_8 : i32
    %10 = arith.extui %9 : i1 to i32
    %c0_i32_9 = arith.constant 0 : i32
    %11 = arith.cmpi ne, %10, %c0_i32_9 : i32
    scf.if %11 {
      %c0_10 = arith.constant 0 : index
      %c0_11 = arith.constant 0 : index
      %12 = vector.load %arg7[%c0_10, %c0_11] : memref<512x128xf32, #tpu.memory_space<vmem>>, vector<512x128xf32>
      %c0_12 = arith.constant 0 : index
      %c0_13 = arith.constant 0 : index
      %13 = vector.load %arg4[%c0_12, %c0_13] : memref<512x128xf32, #tpu.memory_space<vmem>>, vector<512x128xf32>
      tpu.vector_store %arg4[%c0_12, %c0_13], %12 {strides = array<i32>} : memref<512x128xf32, #tpu.memory_space<vmem>>, vector<512x128xf32>,
      %cst_14 = arith.constant dense<0.000000e+00> : vector<128xf32>
      %14 = vector.multi_reduction <add>, %12, %cst_14 [0] : vector<512x128xf32> to vector<128xf32>
      %15 = vector.shape_cast %14 : vector<128xf32> to vector<1x128xf32>
      %16 = arith.mulf %12, %12 : vector<512x128xf32>
      %cst_15 = arith.constant dense<0.000000e+00> : vector<128xf32>
      %17 = vector.multi_reduction <add>, %16, %cst_15 [0] : vector<512x128xf32> to vector<128xf32>
      %18 = vector.shape_cast %17 : vector<128xf32> to vector<1x128xf32>
      %cst_16 = arith.constant 1.250000e-01 : f32
      %19 = vector.broadcast %cst_16 : f32 to vector<1x128xf32>
      %20 = arith.mulf %15, %19 : vector<1x128xf32>
      %21 = vector.shape_cast %20 : vector<1x128xf32> to vector<1x128xf32>
      %22 = vector.broadcast %21 : vector<1x128xf32> to vector<8x128xf32>
      %c0_17 = arith.constant 0 : index
      %c0_18 = arith.constant 0 : index
      %23 = vector.load %arg5[%c0_17, %c0_18] : memref<8x128xf32, #tpu.memory_space<vmem>>, vector<8x128xf32>
      tpu.vector_store %arg5[%c0_17, %c0_18], %22 {strides = array<i32>} : memref<8x128xf32, #tpu.memory_space<vmem>>, vector<8x128xf32>,
      %cst_19 = arith.constant 1.250000e-01 : f32
      %24 = vector.broadcast %cst_19 : f32 to vector<1x128xf32>
      %25 = arith.mulf %18, %24 : vector<1x128xf32>
      %26 = vector.shape_cast %25 : vector<1x128xf32> to vector<1x128xf32>
      %27 = vector.broadcast %26 : vector<1x128xf32> to vector<8x128xf32>
      %c0_20 = arith.constant 0 : index
      %c0_21 = arith.constant 0 : index
      %28 = vector.load %arg6[%c0_20, %c0_21] : memref<8x128xf32, #tpu.memory_space<vmem>>, vector<8x128xf32>
      tpu.vector_store %arg6[%c0_20, %c0_21], %27 {strides = array<i32>} : memref<8x128xf32, #tpu.memory_space<vmem>>, vector<8x128xf32>,
    } else {
    }
    return
  }
  func.func @transform_0(%arg0: i32, %arg1: i32) -> (i32, i32) {
    %c0_i32 = arith.constant 0 : i32
    return %arg0, %arg1 : i32, i32
  }
  func.func @transform_1(%arg0: i32, %arg1: i32) -> (i32, i32) {
    %c0_i32 = arith.constant 0 : i32
    %c0_i32_0 = arith.constant 0 : i32
    return %arg1, %c0_i32 : i32, i32
  }
  func.func @transform_2(%arg0: i32, %arg1: i32) -> (i32, i32) {
    %c0_i32 = arith.constant 0 : i32
    %c0_i32_0 = arith.constant 0 : i32
    return %arg0, %c0_i32 : i32, i32
  }
  func.func @transform_3(%arg0: i32, %arg1: i32) -> (i32, i32) {
    %c0_i32 = arith.constant 0 : i32
    %c0_i32_0 = arith.constant 0 : i32
    return %arg0, %c0_i32 : i32, i32
  }
  func.func @transform_4(%arg0: i32, %arg1: i32) -> (i32, i32) {
    %c0_i32 = arith.constant 0 : i32
    %c0_i32_0 = arith.constant 0 : i32
    return %arg0, %c0_i32 : i32, i32
  }
}

module attributes {stable_mosaic.version = 11 : i64} {
  func.func @_bn_add_relu_kernel(%arg0: i32, %arg1: memref<1024x128xf32, #tpu.memory_space<vmem>>, %arg2: memref<1x128xf32, #tpu.memory_space<vmem>>, %arg3: memref<1x128xf32, #tpu.memory_space<vmem>>, %arg4: memref<1024x128xf32, #tpu.memory_space<vmem>>, %arg5: memref<1x128xf32, #tpu.memory_space<vmem>>, %arg6: memref<1x128xf32, #tpu.memory_space<vmem>>, %arg7: memref<1024x128xf32, #tpu.memory_space<vmem>>) attributes {dimension_semantics = [#tpu.dimension_semantics<parallel>], iteration_bounds = array<i64: 1>, scalar_prefetch = 0 : i64, scratch_operands = 0 : i64, tpu.core_type = #tpu.core_type<tc>, window_params = [{transform_indices = @transform_0, window_bounds = array<i64: 1024, 128>}, {pipeline_mode = #tpu.pipeline_mode<synchronous>, transform_indices = @transform_1, window_bounds = array<i64: 1, 128>}, {pipeline_mode = #tpu.pipeline_mode<synchronous>, transform_indices = @transform_2, window_bounds = array<i64: 1, 128>}, {transform_indices = @transform_3, window_bounds = array<i64: 1024, 128>}, {pipeline_mode = #tpu.pipeline_mode<synchronous>, transform_indices = @transform_4, window_bounds = array<i64: 1, 128>}, {pipeline_mode = #tpu.pipeline_mode<synchronous>, transform_indices = @transform_5, window_bounds = array<i64: 1, 128>}, {transform_indices = @transform_6, window_bounds = array<i64: 1024, 128>}]} {
    %c0 = arith.constant 0 : index
    %c0_0 = arith.constant 0 : index
    %0 = vector.load %arg1[%c0, %c0_0] : memref<1024x128xf32, #tpu.memory_space<vmem>>, vector<1024x128xf32>
    %c0_1 = arith.constant 0 : index
    %c0_2 = arith.constant 0 : index
    %1 = vector.load %arg4[%c0_1, %c0_2] : memref<1024x128xf32, #tpu.memory_space<vmem>>, vector<1024x128xf32>
    %c0_3 = arith.constant 0 : index
    %c0_4 = arith.constant 0 : index
    %2 = vector.load %arg2[%c0_3, %c0_4] : memref<1x128xf32, #tpu.memory_space<vmem>>, vector<1x128xf32>
    %3 = vector.broadcast %2 : vector<1x128xf32> to vector<1024x128xf32>
    %4 = arith.mulf %0, %3 : vector<1024x128xf32>
    %c0_5 = arith.constant 0 : index
    %c0_6 = arith.constant 0 : index
    %5 = vector.load %arg3[%c0_5, %c0_6] : memref<1x128xf32, #tpu.memory_space<vmem>>, vector<1x128xf32>
    %6 = vector.broadcast %5 : vector<1x128xf32> to vector<1024x128xf32>
    %7 = arith.addf %4, %6 : vector<1024x128xf32>
    %c0_7 = arith.constant 0 : index
    %c0_8 = arith.constant 0 : index
    %8 = vector.load %arg5[%c0_7, %c0_8] : memref<1x128xf32, #tpu.memory_space<vmem>>, vector<1x128xf32>
    %9 = vector.broadcast %8 : vector<1x128xf32> to vector<1024x128xf32>
    %10 = arith.mulf %1, %9 : vector<1024x128xf32>
    %11 = arith.addf %7, %10 : vector<1024x128xf32>
    %c0_9 = arith.constant 0 : index
    %c0_10 = arith.constant 0 : index
    %12 = vector.load %arg6[%c0_9, %c0_10] : memref<1x128xf32, #tpu.memory_space<vmem>>, vector<1x128xf32>
    %13 = vector.broadcast %12 : vector<1x128xf32> to vector<1024x128xf32>
    %14 = arith.addf %11, %13 : vector<1024x128xf32>
    %cst = arith.constant 0.000000e+00 : f32
    %15 = vector.broadcast %cst : f32 to vector<1024x128xf32>
    %16 = arith.maximumf %14, %15 : vector<1024x128xf32>
    %c0_11 = arith.constant 0 : index
    %c0_12 = arith.constant 0 : index
    %17 = vector.load %arg7[%c0_11, %c0_12] : memref<1024x128xf32, #tpu.memory_space<vmem>>, vector<1024x128xf32>
    tpu.vector_store %arg7[%c0_11, %c0_12], %16 {strides = array<i32>} : memref<1024x128xf32, #tpu.memory_space<vmem>>, vector<1024x128xf32>,
    return
  }
  func.func @transform_0(%arg0: i32) -> (i32, i32) {
    %c0_i32 = arith.constant 0 : i32
    %c0_i32_0 = arith.constant 0 : i32
    return %arg0, %c0_i32 : i32, i32
  }
  func.func @transform_1(%arg0: i32) -> (i32, i32) {
    %c0_i32 = arith.constant 0 : i32
    %c0_i32_0 = arith.constant 0 : i32
    %c0_i32_1 = arith.constant 0 : i32
    return %c0_i32, %c0_i32_0 : i32, i32
  }
  func.func @transform_2(%arg0: i32) -> (i32, i32) {
    %c0_i32 = arith.constant 0 : i32
    %c0_i32_0 = arith.constant 0 : i32
    %c0_i32_1 = arith.constant 0 : i32
    return %c0_i32, %c0_i32_0 : i32, i32
  }
  func.func @transform_3(%arg0: i32) -> (i32, i32) {
    %c0_i32 = arith.constant 0 : i32
    %c0_i32_0 = arith.constant 0 : i32
    return %arg0, %c0_i32 : i32, i32
  }
  func.func @transform_4(%arg0: i32) -> (i32, i32) {
    %c0_i32 = arith.constant 0 : i32
    %c0_i32_0 = arith.constant 0 : i32
    %c0_i32_1 = arith.constant 0 : i32
    return %c0_i32, %c0_i32_0 : i32, i32
  }
  func.func @transform_5(%arg0: i32) -> (i32, i32) {
    %c0_i32 = arith.constant 0 : i32
    %c0_i32_0 = arith.constant 0 : i32
    %c0_i32_1 = arith.constant 0 : i32
    return %c0_i32, %c0_i32_0 : i32, i32
  }
  func.func @transform_6(%arg0: i32) -> (i32, i32) {
    %c0_i32 = arith.constant 0 : i32
    %c0_i32_0 = arith.constant 0 : i32
    return %arg0, %c0_i32 : i32, i32
  }
}

</mosaic_0001>

<bundles_post_ra>
// kernel: residual_block_forward.5
= control target key start
LH: loop header
LB: loop body
LE: loop exit
PB: predicated region body
PF: predicated region fallthrough
CT: control target
= control target key end

     0   :  { %s2699_s0 = inlined_call_operand.vmem [shape: f32[1024,128], index: 0, kind: input, shape index: {}]   ;;  %s2700_s1 = inlined_call_operand.vmem [shape: f32[1,128], index: 1, kind: input, shape index: {}]   ;;  %s2701_s2 = inlined_call_operand.vmem [shape: f32[1,128], index: 2, kind: input, shape index: {}]   ;;  %s2702_s3 = inlined_call_operand.vmem [shape: bf16[1024,128], index: 3, kind: output, shape index: {}]  }
   0x1   :  { %v14_v0 = vld [vmem:[%s2699_s0] sm:$0xff]  ;;  %v15_v1 = vld [vmem:[%s2699_s0 + $0x8] sm:$0xff]  ;;  %v16_v6 = vld [vmem:[%s2699_s0 + $0x10] sm:$0xff] }
   0x2   :  { %v1856_v2 = vld [vmem:[%s2700_s1] ss:$0 sm:$0xff]  ;;  %v17_v7 = vld [vmem:[%s2699_s0 + $0x18] sm:$0xff]  ;;  %v19_v11 = vld [vmem:[%s2699_s0 + $0x28] sm:$0xff] }
   0x3   :  { %v149_v3 = vmul.f32 %v1856_v2, %v14_v0  ;;  %v150_v4 = vmul.f32 %v1856_v2, %v15_v1  ;;  %v1863_v5 = vld [vmem:[%s2701_s2] ss:$0 sm:$0xff]  ;;  %v151_v8 = vmul.f32 %v1856_v2, %v16_v6  ;;  %v152_v9 = vmul.f32 %v1856_v2, %v17_v7  ;;  %v20_v12 = vld [vmem:[%s2699_s0 + $0x30] sm:$0xff]  ;;  %v21_v17 = vld [vmem:[%s2699_s0 + $0x38] sm:$0xff] }
   0x4   :  { %v18_v10 = vld [vmem:[%s2699_s0 + $0x20] sm:$0xff]  ;;  %v154_v16 = vmul.f32 %v1856_v2, %v19_v11  ;;  %v155_v20 = vmul.f32 %v1856_v2, %v20_v12  ;;  %v156_v21 = vmul.f32 %v1856_v2, %v21_v17  ;;  %v23_v27 = vld [vmem:[%s2699_s0 + $0x48] sm:$0xff]  ;;  %v24_v32 = vld [vmem:[%s2699_s0 + $0x50] sm:$0xff] }
   0x5   :  { %v284_v13 = vadd.f32 %v1863_v5, %v149_v3  ;;  %v285_v14 = vadd.f32 %v1863_v5, %v150_v4  ;;  %v153_v15 = vmul.f32 %v1856_v2, %v18_v10  ;;  %v286_v18 = vadd.f32 %v1863_v5, %v151_v8  ;;  %v22_v22 = vld [vmem:[%s2699_s0 + $0x40] sm:$0xff]  ;;  %v25_v33 = vld [vmem:[%s2699_s0 + $0x58] sm:$0xff]  ;;  %v27_v39 = vld [vmem:[%s2699_s0 + $0x68] sm:$0xff] }
   0x6   :  { %v287_v19 = vadd.f32 %v1863_v5, %v152_v9  ;;  %v289_v26 = vadd.f32 %v1863_v5, %v154_v16  ;;  %v290_v30 = vadd.f32 %v1863_v5, %v155_v20  ;;  %v291_v31 = vadd.f32 %v1863_v5, %v156_v21  ;;  %v26_v38 = vld [vmem:[%s2699_s0 + $0x60] sm:$0xff]  ;;  %v28_v44 = vld [vmem:[%s2699_s0 + $0x70] sm:$0xff]  ;;  %v29_v49 = vld [vmem:[%s2699_s0 + $0x78] sm:$0xff] }
   0x7   :  { %v412_v23 = vmax.f32 %v284_v13, 0.0  ;;  %v413_v24 = vmax.f32 %v285_v14, 0.0  ;;  %v288_v25 = vadd.f32 %v1863_v5, %v153_v15  ;;  %v414_v28 = vmax.f32 %v286_v18, 0.0  ;;  %v30_v54 = vld [vmem:[%s2699_s0 + $0x80] sm:$0xff]  ;;  %v31_v63 = vld [vmem:[%s2699_s0 + $0x88] sm:$0xff]  ;;  %v32_v6 = vld [vmem:[%s2699_s0 + $0x90] sm:$0xff] }
   0x8   :  { %v415_v29 = vmax.f32 %v287_v19, 0.0  ;;  %v417_v36 = vmax.f32 %v289_v26, 0.0  ;;  %v157_v37 = vmul.f32 %v1856_v2, %v22_v22  ;;  %v418_v41 = vmax.f32 %v290_v30, 0.0  ;;  %v33_v7 = vld [vmem:[%s2699_s0 + $0x98] sm:$0xff]  ;;  %v34_v12 = vld [vmem:[%s2699_s0 + $0xa0] sm:$0xff]  ;;  %v35_v13 = vld [vmem:[%s2699_s0 + $0xa8] sm:$0xff] }
   0x9   :  { %v1445_v34 = vpack.c.bf16 %v413_v24, %v412_v23  ;;  %v416_v35 = vmax.f32 %v288_v25, 0.0  ;;  %v419_v42 = vmax.f32 %v291_v31, 0.0  ;;  %v158_v43 = vmul.f32 %v1856_v2, %v23_v27  ;;  %v36_v18 = vld [vmem:[%s2699_s0 + $0xb0] sm:$0xff]  ;;  %v37_v23 = vld [vmem:[%s2699_s0 + $0xb8] sm:$0xff] }
   0xa   :  { %v1450_v40 = vpack.c.bf16 %v415_v29, %v414_v28  ;;  %v292_v46 = vadd.f32 %v1863_v5, %v157_v37  ;;  %v159_v47 = vmul.f32 %v1856_v2, %v24_v32  ;;  %v160_v48 = vmul.f32 %v1856_v2, %v25_v33  ;;  %v38_v28 = vld [vmem:[%s2699_s0 + $0xc0] sm:$0xff]  ;;  %v39_v37 = vld [vmem:[%s2699_s0 + $0xc8] sm:$0xff] }
   0xb   :  { %1446 = vst [vmem:[%s2702_s3] sm:$0xff] %v1445_v34   ;;  %v1455_v45 = vpack.c.bf16 %v417_v36, %v416_v35  ;;  %v1460_v50 = vpack.c.bf16 %v419_v42, %v418_v41  ;;  %v293_v51 = vadd.f32 %v1863_v5, %v158_v43  ;;  %v161_v52 = vmul.f32 %v1856_v2, %v26_v38  ;;  %v40_v42 = vld [vmem:[%s2699_s0 + $0xd0] sm:$0xff]  ;;  %v41_v43 = vld [vmem:[%s2699_s0 + $0xd8] sm:$0xff] }
   0xc   :  { %1762 = vst [vmem:[%s2702_s3 + $0x8] sm:$0xff] %v1450_v40   ;;  %v162_v53 = vmul.f32 %v1856_v2, %v27_v39  ;;  %v420_v55 = vmax.f32 %v292_v46, 0.0  ;;  %v294_v56 = vadd.f32 %v1863_v5, %v159_v47  ;;  %v295_v57 = vadd.f32 %v1863_v5, %v160_v48  ;;  %v42_v48 = vld [vmem:[%s2699_s0 + $0xe0] sm:$0xff] }
   0xd   :  { %1763 = vst [vmem:[%s2702_s3 + $0x10] sm:$0xff] %v1455_v45   ;;  %v163_v58 = vmul.f32 %v1856_v2, %v28_v44  ;;  %1764 = vst [vmem:[%s2702_s3 + $0x18] sm:$0xff] %v1460_v50   ;;  %v421_v59 = vmax.f32 %v293_v51, 0.0  ;;  %v296_v60 = vadd.f32 %v1863_v5, %v161_v52  ;;  %v164_v62 = vmul.f32 %v1856_v2, %v29_v49  ;;  %v43_v49 = vld [vmem:[%s2699_s0 + $0xe8] sm:$0xff] }
   0xe   :  { %v297_v61 = vadd.f32 %v1863_v5, %v162_v53  ;;  %v422_v0 = vmax.f32 %v294_v56, 0.0  ;;  %v423_v1 = vmax.f32 %v295_v57, 0.0  ;;  %v165_v4 = vmul.f32 %v1856_v2, %v30_v54  ;;  %v44_v54 = vld [vmem:[%s2699_s0 + $0xf0] sm:$0xff] }
   0xf   :  { %v298_v3 = vadd.f32 %v1863_v5, %v163_v58  ;;  %v1465_v8 = vpack.c.bf16 %v421_v59, %v420_v55  ;;  %v424_v9 = vmax.f32 %v296_v60, 0.0  ;;  %v299_v11 = vadd.f32 %v1863_v5, %v164_v62  ;;  %v45_v59 = vld [vmem:[%s2699_s0 + $0xf8] sm:$0xff] }
  0x10   :  { %v425_v10 = vmax.f32 %v297_v61, 0.0  ;;  %v1470_v14 = vpack.c.bf16 %v423_v1, %v422_v0  ;;  %v166_v16 = vmul.f32 %v1856_v2, %v31_v63  ;;  %v300_v17 = vadd.f32 %v1863_v5, %v165_v4  ;;  %v46_v0 = vld [vmem:[%s2699_s0 + $0x100] sm:$0xff] }
  0x11   :  { %v426_v15 = vmax.f32 %v298_v3, 0.0  ;;  %1765 = vst [vmem:[%s2702_s3 + $0x20] sm:$0xff] %v1465_v8   ;;  %v427_v20 = vmax.f32 %v299_v11, 0.0  ;;  %v167_v21 = vmul.f32 %v1856_v2, %v32_v6  ;;  %v168_v22 = vmul.f32 %v1856_v2, %v33_v7  ;;  %v47_v11 = vld [vmem:[%s2699_s0 + $0x108] sm:$0xff] }
  0x12   :  { %v1475_v19 = vpack.c.bf16 %v425_v10, %v424_v9  ;;  %1766 = vst [vmem:[%s2702_s3 + $0x28] sm:$0xff] %v1470_v14   ;;  %v301_v24 = vadd.f32 %v1863_v5, %v166_v16  ;;  %v428_v25 = vmax.f32 %v300_v17, 0.0  ;;  %v169_v26 = vmul.f32 %v1856_v2, %v34_v12  ;;  %v48_v16 = vld [vmem:[%s2699_s0 + $0x110] sm:$0xff]  ;;  %v49_v17 = vld [vmem:[%s2699_s0 + $0x118] sm:$0xff] }
  0x13   :  { %v170_v27 = vmul.f32 %v1856_v2, %v35_v13  ;;  %v1480_v29 = vpack.c.bf16 %v427_v20, %v426_v15  ;;  %v302_v30 = vadd.f32 %v1863_v5, %v167_v21  ;;  %v303_v31 = vadd.f32 %v1863_v5, %v168_v22  ;;  %v50_v22 = vld [vmem:[%s2699_s0 + $0x120] sm:$0xff] }
  0x14   :  { %1767 = vst [vmem:[%s2702_s3 + $0x30] sm:$0xff] %v1475_v19   ;;  %v171_v32 = vmul.f32 %v1856_v2, %v36_v18  ;;  %v429_v33 = vmax.f32 %v301_v24, 0.0  ;;  %v304_v34 = vadd.f32 %v1863_v5, %v169_v26  ;;  %v172_v36 = vmul.f32 %v1856_v2, %v37_v23  ;;  %v51_v23 = vld [vmem:[%s2699_s0 + $0x128] sm:$0xff] }
  0x15   :  { %v305_v35 = vadd.f32 %v1863_v5, %v170_v27  ;;  %1768 = vst [vmem:[%s2702_s3 + $0x38] sm:$0xff] %v1480_v29   ;;  %v430_v38 = vmax.f32 %v302_v30, 0.0  ;;  %v431_v39 = vmax.f32 %v303_v31, 0.0  ;;  %v173_v41 = vmul.f32 %v1856_v2, %v38_v28  ;;  %v52_v28 = vld [vmem:[%s2699_s0 + $0x130] sm:$0xff] }
  0x16   :  { %v306_v40 = vadd.f32 %v1863_v5, %v171_v32  ;;  %v1485_v44 = vpack.c.bf16 %v429_v33, %v428_v25  ;;  %v432_v45 = vmax.f32 %v304_v34, 0.0  ;;  %v307_v47 = vadd.f32 %v1863_v5, %v172_v36  ;;  %v53_v33 = vld [vmem:[%s2699_s0 + $0x138] sm:$0xff] }
  0x17   :  { %v433_v46 = vmax.f32 %v305_v35, 0.0  ;;  %v1490_v50 = vpack.c.bf16 %v431_v39, %v430_v38  ;;  %v174_v52 = vmul.f32 %v1856_v2, %v39_v37  ;;  %v308_v53 = vadd.f32 %v1863_v5, %v173_v41  ;;  %v54_v38 = vld [vmem:[%s2699_s0 + $0x140] sm:$0xff] }
  0x18   :  { %v434_v51 = vmax.f32 %v306_v40, 0.0  ;;  %1769 = vst [vmem:[%s2702_s3 + $0x40] sm:$0xff] %v1485_v44   ;;  %v435_v56 = vmax.f32 %v307_v47, 0.0  ;;  %v175_v57 = vmul.f32 %v1856_v2, %v40_v42  ;;  %v176_v58 = vmul.f32 %v1856_v2, %v41_v43  ;;  %v55_v47 = vld [vmem:[%s2699_s0 + $0x148] sm:$0xff] }
  0x19   :  { %v1495_v55 = vpack.c.bf16 %v433_v46, %v432_v45  ;;  %1770 = vst [vmem:[%s2702_s3 + $0x48] sm:$0xff] %v1490_v50   ;;  %v309_v60 = vadd.f32 %v1863_v5, %v174_v52  ;;  %v436_v61 = vmax.f32 %v308_v53, 0.0  ;;  %v177_v62 = vmul.f32 %v1856_v2, %v42_v48  ;;  %v56_v52 = vld [vmem:[%s2699_s0 + $0x150] sm:$0xff]  ;;  %v57_v53 = vld [vmem:[%s2699_s0 + $0x158] sm:$0xff] }
  0x1a   :  { %v178_v63 = vmul.f32 %v1856_v2, %v43_v49  ;;  %v1500_v1 = vpack.c.bf16 %v435_v56, %v434_v51  ;;  %v310_v3 = vadd.f32 %v1863_v5, %v175_v57  ;;  %v311_v4 = vadd.f32 %v1863_v5, %v176_v58  ;;  %v58_v58 = vld [vmem:[%s2699_s0 + $0x160] sm:$0xff] }
  0x1b   :  { %1771 = vst [vmem:[%s2702_s3 + $0x50] sm:$0xff] %v1495_v55   ;;  %v179_v6 = vmul.f32 %v1856_v2, %v44_v54  ;;  %v437_v7 = vmax.f32 %v309_v60, 0.0  ;;  %v312_v8 = vadd.f32 %v1863_v5, %v177_v62  ;;  %v180_v10 = vmul.f32 %v1856_v2, %v45_v59  ;;  %v59_v59 = vld [vmem:[%s2699_s0 + $0x168] sm:$0xff] }
  0x1c   :  { %v313_v9 = vadd.f32 %v1863_v5, %v178_v63  ;;  %1772 = vst [vmem:[%s2702_s3 + $0x58] sm:$0xff] %v1500_v1   ;;  %v438_v12 = vmax.f32 %v310_v3, 0.0  ;;  %v439_v13 = vmax.f32 %v311_v4, 0.0  ;;  %v181_v15 = vmul.f32 %v1856_v2, %v46_v0  ;;  %v60_v0 = vld [vmem:[%s2699_s0 + $0x170] sm:$0xff] }
  0x1d   :  { %v314_v14 = vadd.f32 %v1863_v5, %v179_v6  ;;  %v1505_v18 = vpack.c.bf16 %v437_v7, %v436_v61  ;;  %v440_v19 = vmax.f32 %v312_v8, 0.0  ;;  %v315_v21 = vadd.f32 %v1863_v5, %v180_v10  ;;  %v61_v7 = vld [vmem:[%s2699_s0 + $0x178] sm:$0xff] }
  0x1e   :  { %v441_v20 = vmax.f32 %v313_v9, 0.0  ;;  %v1510_v24 = vpack.c.bf16 %v439_v13, %v438_v12  ;;  %v182_v26 = vmul.f32 %v1856_v2, %v47_v11  ;;  %v316_v27 = vadd.f32 %v1863_v5, %v181_v15  ;;  %v62_v12 = vld [vmem:[%s2699_s0 + $0x180] sm:$0xff] }
  0x1f   :  { %v442_v25 = vmax.f32 %v314_v14, 0.0  ;;  %1773 = vst [vmem:[%s2702_s3 + $0x60] sm:$0xff] %v1505_v18   ;;  %v443_v30 = vmax.f32 %v315_v21, 0.0  ;;  %v183_v31 = vmul.f32 %v1856_v2, %v48_v16  ;;  %v184_v32 = vmul.f32 %v1856_v2, %v49_v17  ;;  %v63_v21 = vld [vmem:[%s2699_s0 + $0x188] sm:$0xff] }
  0x20   :  { %v1515_v29 = vpack.c.bf16 %v441_v20, %v440_v19  ;;  %1774 = vst [vmem:[%s2702_s3 + $0x68] sm:$0xff] %v1510_v24   ;;  %v317_v34 = vadd.f32 %v1863_v5, %v182_v26  ;;  %v444_v35 = vmax.f32 %v316_v27, 0.0  ;;  %v185_v36 = vmul.f32 %v1856_v2, %v50_v22  ;;  %v64_v26 = vld [vmem:[%s2699_s0 + $0x190] sm:$0xff]  ;;  %v65_v27 = vld [vmem:[%s2699_s0 + $0x198] sm:$0xff] }
  0x21   :  { %v186_v37 = vmul.f32 %v1856_v2, %v51_v23  ;;  %v1520_v39 = vpack.c.bf16 %v443_v30, %v442_v25  ;;  %v318_v40 = vadd.f32 %v1863_v5, %v183_v31  ;;  %v319_v41 = vadd.f32 %v1863_v5, %v184_v32  ;;  %v66_v32 = vld [vmem:[%s2699_s0 + $0x1a0] sm:$0xff] }
  0x22   :  { %1775 = vst [vmem:[%s2702_s3 + $0x70] sm:$0xff] %v1515_v29   ;;  %v187_v42 = vmul.f32 %v1856_v2, %v52_v28  ;;  %v445_v43 = vmax.f32 %v317_v34, 0.0  ;;  %v320_v44 = vadd.f32 %v1863_v5, %v185_v36  ;;  %v188_v46 = vmul.f32 %v1856_v2, %v53_v33  ;;  %v67_v33 = vld [vmem:[%s2699_s0 + $0x1a8] sm:$0xff] }
  0x23   :  { %v321_v45 = vadd.f32 %v1863_v5, %v186_v37  ;;  %1776 = vst [vmem:[%s2702_s3 + $0x78] sm:$0xff] %v1520_v39   ;;  %v446_v48 = vmax.f32 %v318_v40, 0.0  ;;  %v447_v49 = vmax.f32 %v319_v41, 0.0  ;;  %v189_v51 = vmul.f32 %v1856_v2, %v54_v38  ;;  %v68_v38 = vld [vmem:[%s2699_s0 + $0x1b0] sm:$0xff] }
  0x24   :  { %v322_v50 = vadd.f32 %v1863_v5, %v187_v42  ;;  %v1525_v54 = vpack.c.bf16 %v445_v43, %v444_v35  ;;  %v448_v55 = vmax.f32 %v320_v44, 0.0  ;;  %v323_v57 = vadd.f32 %v1863_v5, %v188_v46  ;;  %v69_v43 = vld [vmem:[%s2699_s0 + $0x1b8] sm:$0xff] }
  0x25   :  { %v449_v56 = vmax.f32 %v321_v45, 0.0  ;;  %v1530_v60 = vpack.c.bf16 %v447_v49, %v446_v48  ;;  %v190_v62 = vmul.f32 %v1856_v2, %v55_v47  ;;  %v324_v63 = vadd.f32 %v1863_v5, %v189_v51  ;;  %v70_v48 = vld [vmem:[%s2699_s0 + $0x1c0] sm:$0xff] }
  0x26   :  { %v450_v61 = vmax.f32 %v322_v50, 0.0  ;;  %1777 = vst [vmem:[%s2702_s3 + $0x80] sm:$0xff] %v1525_v54   ;;  %v451_v3 = vmax.f32 %v323_v57, 0.0  ;;  %v191_v4 = vmul.f32 %v1856_v2, %v56_v52  ;;  %v192_v6 = vmul.f32 %v1856_v2, %v57_v53  ;;  %v71_v57 = vld [vmem:[%s2699_s0 + $0x1c8] sm:$0xff] }
  0x27   :  { %v1535_v1 = vpack.c.bf16 %v449_v56, %v448_v55  ;;  %1778 = vst [vmem:[%s2702_s3 + $0x88] sm:$0xff] %v1530_v60   ;;  %v325_v8 = vadd.f32 %v1863_v5, %v190_v62  ;;  %v452_v9 = vmax.f32 %v324_v63, 0.0  ;;  %v193_v10 = vmul.f32 %v1856_v2, %v58_v58  ;;  %v72_v62 = vld [vmem:[%s2699_s0 + $0x1d0] sm:$0xff]  ;;  %v73_v63 = vld [vmem:[%s2699_s0 + $0x1d8] sm:$0xff] }
  0x28   :  { %v194_v11 = vmul.f32 %v1856_v2, %v59_v59  ;;  %v1540_v13 = vpack.c.bf16 %v451_v3, %v450_v61  ;;  %v326_v14 = vadd.f32 %v1863_v5, %v191_v4  ;;  %v327_v15 = vadd.f32 %v1863_v5, %v192_v6  ;;  %v74_v6 = vld [vmem:[%s2699_s0 + $0x1e0] sm:$0xff] }
  0x29   :  { %1779 = vst [vmem:[%s2702_s3 + $0x90] sm:$0xff] %v1535_v1   ;;  %v195_v16 = vmul.f32 %v1856_v2, %v60_v0  ;;  %v453_v17 = vmax.f32 %v325_v8, 0.0  ;;  %v328_v18 = vadd.f32 %v1863_v5, %v193_v10  ;;  %v196_v20 = vmul.f32 %v1856_v2, %v61_v7  ;;  %v75_v7 = vld [vmem:[%s2699_s0 + $0x1e8] sm:$0xff] }
  0x2a   :  { %v329_v19 = vadd.f32 %v1863_v5, %v194_v11  ;;  %1780 = vst [vmem:[%s2702_s3 + $0x98] sm:$0xff] %v1540_v13   ;;  %v454_v22 = vmax.f32 %v326_v14, 0.0  ;;  %v455_v23 = vmax.f32 %v327_v15, 0.0  ;;  %v197_v25 = vmul.f32 %v1856_v2, %v62_v12  ;;  %v76_v12 = vld [vmem:[%s2699_s0 + $0x1f0] sm:$0xff] }
  0x2b   :  { %v330_v24 = vadd.f32 %v1863_v5, %v195_v16  ;;  %v1545_v28 = vpack.c.bf16 %v453_v17, %v452_v9  ;;  %v456_v29 = vmax.f32 %v328_v18, 0.0  ;;  %v331_v31 = vadd.f32 %v1863_v5, %v196_v20  ;;  %v77_v17 = vld [vmem:[%s2699_s0 + $0x1f8] sm:$0xff] }
  0x2c   :  { %v457_v30 = vmax.f32 %v329_v19, 0.0  ;;  %v1550_v34 = vpack.c.bf16 %v455_v23, %v454_v22  ;;  %v198_v36 = vmul.f32 %v1856_v2, %v63_v21  ;;  %v332_v37 = vadd.f32 %v1863_v5, %v197_v25  ;;  %v78_v22 = vld [vmem:[%s2699_s0 + $0x200] sm:$0xff] }
  0x2d   :  { %v458_v35 = vmax.f32 %v330_v24, 0.0  ;;  %1781 = vst [vmem:[%s2702_s3 + $0xa0] sm:$0xff] %v1545_v28   ;;  %v459_v40 = vmax.f32 %v331_v31, 0.0  ;;  %v199_v41 = vmul.f32 %v1856_v2, %v64_v26  ;;  %v200_v42 = vmul.f32 %v1856_v2, %v65_v27  ;;  %v79_v31 = vld [vmem:[%s2699_s0 + $0x208] sm:$0xff] }
  0x2e   :  { %v1555_v39 = vpack.c.bf16 %v457_v30, %v456_v29  ;;  %1782 = vst [vmem:[%s2702_s3 + $0xa8] sm:$0xff] %v1550_v34   ;;  %v333_v44 = vadd.f32 %v1863_v5, %v198_v36  ;;  %v460_v45 = vmax.f32 %v332_v37, 0.0  ;;  %v201_v46 = vmul.f32 %v1856_v2, %v66_v32  ;;  %v80_v36 = vld [vmem:[%s2699_s0 + $0x210] sm:$0xff]  ;;  %v81_v37 = vld [vmem:[%s2699_s0 + $0x218] sm:$0xff] }
  0x2f   :  { %v202_v47 = vmul.f32 %v1856_v2, %v67_v33  ;;  %v1560_v49 = vpack.c.bf16 %v459_v40, %v458_v35  ;;  %v334_v50 = vadd.f32 %v1863_v5, %v199_v41  ;;  %v335_v51 = vadd.f32 %v1863_v5, %v200_v42  ;;  %v82_v42 = vld [vmem:[%s2699_s0 + $0x220] sm:$0xff] }
  0x30   :  { %1783 = vst [vmem:[%s2702_s3 + $0xb0] sm:$0xff] %v1555_v39   ;;  %v203_v52 = vmul.f32 %v1856_v2, %v68_v38  ;;  %v461_v53 = vmax.f32 %v333_v44, 0.0  ;;  %v336_v54 = vadd.f32 %v1863_v5, %v201_v46  ;;  %v204_v56 = vmul.f32 %v1856_v2, %v69_v43  ;;  %v83_v43 = vld [vmem:[%s2699_s0 + $0x228] sm:$0xff] }
  0x31   :  { %v337_v55 = vadd.f32 %v1863_v5, %v202_v47  ;;  %1784 = vst [vmem:[%s2702_s3 + $0xb8] sm:$0xff] %v1560_v49   ;;  %v462_v58 = vmax.f32 %v334_v50, 0.0  ;;  %v463_v59 = vmax.f32 %v335_v51, 0.0  ;;  %v205_v61 = vmul.f32 %v1856_v2, %v70_v48  ;;  %v84_v48 = vld [vmem:[%s2699_s0 + $0x230] sm:$0xff] }
  0x32   :  { %v338_v60 = vadd.f32 %v1863_v5, %v203_v52  ;;  %v1565_v0 = vpack.c.bf16 %v461_v53, %v460_v45  ;;  %v464_v1 = vmax.f32 %v336_v54, 0.0  ;;  %v339_v4 = vadd.f32 %v1863_v5, %v204_v56  ;;  %v85_v53 = vld [vmem:[%s2699_s0 + $0x238] sm:$0xff] }
  0x33   :  { %v465_v3 = vmax.f32 %v337_v55, 0.0  ;;  %v1570_v8 = vpack.c.bf16 %v463_v59, %v462_v58  ;;  %v206_v10 = vmul.f32 %v1856_v2, %v71_v57  ;;  %v340_v11 = vadd.f32 %v1863_v5, %v205_v61  ;;  %v86_v58 = vld [vmem:[%s2699_s0 + $0x240] sm:$0xff] }
  0x34   :  { %v466_v9 = vmax.f32 %v338_v60, 0.0  ;;  %1785 = vst [vmem:[%s2702_s3 + $0xc0] sm:$0xff] %v1565_v0   ;;  %v467_v14 = vmax.f32 %v339_v4, 0.0  ;;  %v207_v15 = vmul.f32 %v1856_v2, %v72_v62  ;;  %v208_v16 = vmul.f32 %v1856_v2, %v73_v63  ;;  %v87_v4 = vld [vmem:[%s2699_s0 + $0x248] sm:$0xff] }
  0x35   :  { %v1575_v13 = vpack.c.bf16 %v465_v3, %v464_v1  ;;  %1786 = vst [vmem:[%s2702_s3 + $0xc8] sm:$0xff] %v1570_v8   ;;  %v341_v18 = vadd.f32 %v1863_v5, %v206_v10  ;;  %v468_v19 = vmax.f32 %v340_v11, 0.0  ;;  %v209_v20 = vmul.f32 %v1856_v2, %v74_v6  ;;  %v88_v10 = vld [vmem:[%s2699_s0 + $0x250] sm:$0xff]  ;;  %v89_v11 = vld [vmem:[%s2699_s0 + $0x258] sm:$0xff] }
  0x36   :  { %v210_v21 = vmul.f32 %v1856_v2, %v75_v7  ;;  %v1580_v23 = vpack.c.bf16 %v467_v14, %v466_v9  ;;  %v342_v24 = vadd.f32 %v1863_v5, %v207_v15  ;;  %v343_v25 = vadd.f32 %v1863_v5, %v208_v16  ;;  %v90_v16 = vld [vmem:[%s2699_s0 + $0x260] sm:$0xff] }
  0x37   :  { %1787 = vst [vmem:[%s2702_s3 + $0xd0] sm:$0xff] %v1575_v13   ;;  %v211_v26 = vmul.f32 %v1856_v2, %v76_v12  ;;  %v469_v27 = vmax.f32 %v341_v18, 0.0  ;;  %v344_v28 = vadd.f32 %v1863_v5, %v209_v20  ;;  %v212_v30 = vmul.f32 %v1856_v2, %v77_v17  ;;  %v91_v17 = vld [vmem:[%s2699_s0 + $0x268] sm:$0xff] }
  0x38   :  { %v345_v29 = vadd.f32 %v1863_v5, %v210_v21  ;;  %1788 = vst [vmem:[%s2702_s3 + $0xd8] sm:$0xff] %v1580_v23   ;;  %v470_v32 = vmax.f32 %v342_v24, 0.0  ;;  %v471_v33 = vmax.f32 %v343_v25, 0.0  ;;  %v213_v35 = vmul.f32 %v1856_v2, %v78_v22  ;;  %v92_v22 = vld [vmem:[%s2699_s0 + $0x270] sm:$0xff] }
  0x39   :  { %v346_v34 = vadd.f32 %v1863_v5, %v211_v26  ;;  %v1585_v38 = vpack.c.bf16 %v469_v27, %v468_v19  ;;  %v472_v39 = vmax.f32 %v344_v28, 0.0  ;;  %v347_v41 = vadd.f32 %v1863_v5, %v212_v30  ;;  %v93_v27 = vld [vmem:[%s2699_s0 + $0x278] sm:$0xff] }
  0x3a   :  { %v473_v40 = vmax.f32 %v345_v29, 0.0  ;;  %v1590_v44 = vpack.c.bf16 %v471_v33, %v470_v32  ;;  %v214_v46 = vmul.f32 %v1856_v2, %v79_v31  ;;  %v348_v47 = vadd.f32 %v1863_v5, %v213_v35  ;;  %v94_v32 = vld [vmem:[%s2699_s0 + $0x280] sm:$0xff] }
  0x3b   :  { %v474_v45 = vmax.f32 %v346_v34, 0.0  ;;  %1789 = vst [vmem:[%s2702_s3 + $0xe0] sm:$0xff] %v1585_v38   ;;  %v475_v50 = vmax.f32 %v347_v41, 0.0  ;;  %v215_v51 = vmul.f32 %v1856_v2, %v80_v36  ;;  %v216_v52 = vmul.f32 %v1856_v2, %v81_v37  ;;  %v95_v41 = vld [vmem:[%s2699_s0 + $0x288] sm:$0xff] }
  0x3c   :  { %v1595_v49 = vpack.c.bf16 %v473_v40, %v472_v39  ;;  %1790 = vst [vmem:[%s2702_s3 + $0xe8] sm:$0xff] %v1590_v44   ;;  %v349_v54 = vadd.f32 %v1863_v5, %v214_v46  ;;  %v476_v55 = vmax.f32 %v348_v47, 0.0  ;;  %v217_v56 = vmul.f32 %v1856_v2, %v82_v42  ;;  %v96_v46 = vld [vmem:[%s2699_s0 + $0x290] sm:$0xff]  ;;  %v97_v47 = vld [vmem:[%s2699_s0 + $0x298] sm:$0xff] }
  0x3d   :  { %v218_v57 = vmul.f32 %v1856_v2, %v83_v43  ;;  %v1600_v59 = vpack.c.bf16 %v475_v50, %v474_v45  ;;  %v350_v60 = vadd.f32 %v1863_v5, %v215_v51  ;;  %v351_v61 = vadd.f32 %v1863_v5, %v216_v52  ;;  %v98_v52 = vld [vmem:[%s2699_s0 + $0x2a0] sm:$0xff] }
  0x3e   :  { %1791 = vst [vmem:[%s2702_s3 + $0xf0] sm:$0xff] %v1595_v49   ;;  %v219_v62 = vmul.f32 %v1856_v2, %v84_v48  ;;  %v477_v63 = vmax.f32 %v349_v54, 0.0  ;;  %v352_v0 = vadd.f32 %v1863_v5, %v217_v56  ;;  %v220_v3 = vmul.f32 %v1856_v2, %v85_v53  ;;  %v99_v53 = vld [vmem:[%s2699_s0 + $0x2a8] sm:$0xff] }
  0x3f   :  { %v353_v1 = vadd.f32 %v1863_v5, %v218_v57  ;;  %1792 = vst [vmem:[%s2702_s3 + $0xf8] sm:$0xff] %v1600_v59   ;;  %v478_v6 = vmax.f32 %v350_v60, 0.0  ;;  %v479_v7 = vmax.f32 %v351_v61, 0.0  ;;  %v221_v9 = vmul.f32 %v1856_v2, %v86_v58  ;;  %v100_v58 = vld [vmem:[%s2699_s0 + $0x2b0] sm:$0xff] }
  0x40   :  { %v354_v8 = vadd.f32 %v1863_v5, %v219_v62  ;;  %v1605_v12 = vpack.c.bf16 %v477_v63, %v476_v55  ;;  %v480_v13 = vmax.f32 %v352_v0, 0.0  ;;  %v355_v15 = vadd.f32 %v1863_v5, %v220_v3  ;;  %v101_v63 = vld [vmem:[%s2699_s0 + $0x2b8] sm:$0xff] }
  0x41   :  { %v481_v14 = vmax.f32 %v353_v1, 0.0  ;;  %v1610_v18 = vpack.c.bf16 %v479_v7, %v478_v6  ;;  %v222_v20 = vmul.f32 %v1856_v2, %v87_v4  ;;  %v356_v21 = vadd.f32 %v1863_v5, %v221_v9  ;;  %v102_v6 = vld [vmem:[%s2699_s0 + $0x2c0] sm:$0xff] }
  0x42   :  { %v482_v19 = vmax.f32 %v354_v8, 0.0  ;;  %1793 = vst [vmem:[%s2702_s3 + $0x100] sm:$0xff] %v1605_v12   ;;  %v483_v24 = vmax.f32 %v355_v15, 0.0  ;;  %v223_v25 = vmul.f32 %v1856_v2, %v88_v10  ;;  %v224_v26 = vmul.f32 %v1856_v2, %v89_v11  ;;  %v103_v15 = vld [vmem:[%s2699_s0 + $0x2c8] sm:$0xff] }
  0x43   :  { %v1615_v23 = vpack.c.bf16 %v481_v14, %v480_v13  ;;  %1794 = vst [vmem:[%s2702_s3 + $0x108] sm:$0xff] %v1610_v18   ;;  %v357_v28 = vadd.f32 %v1863_v5, %v222_v20  ;;  %v484_v29 = vmax.f32 %v356_v21, 0.0  ;;  %v225_v30 = vmul.f32 %v1856_v2, %v90_v16  ;;  %v104_v20 = vld [vmem:[%s2699_s0 + $0x2d0] sm:$0xff]  ;;  %v105_v21 = vld [vmem:[%s2699_s0 + $0x2d8] sm:$0xff] }
  0x44   :  { %v226_v31 = vmul.f32 %v1856_v2, %v91_v17  ;;  %v1620_v33 = vpack.c.bf16 %v483_v24, %v482_v19  ;;  %v358_v34 = vadd.f32 %v1863_v5, %v223_v25  ;;  %v359_v35 = vadd.f32 %v1863_v5, %v224_v26  ;;  %v106_v26 = vld [vmem:[%s2699_s0 + $0x2e0] sm:$0xff] }
  0x45   :  { %1795 = vst [vmem:[%s2702_s3 + $0x110] sm:$0xff] %v1615_v23   ;;  %v227_v36 = vmul.f32 %v1856_v2, %v92_v22  ;;  %v485_v37 = vmax.f32 %v357_v28, 0.0  ;;  %v360_v38 = vadd.f32 %v1863_v5, %v225_v30  ;;  %v228_v40 = vmul.f32 %v1856_v2, %v93_v27  ;;  %v107_v27 = vld [vmem:[%s2699_s0 + $0x2e8] sm:$0xff] }
  0x46   :  { %v361_v39 = vadd.f32 %v1863_v5, %v226_v31  ;;  %1796 = vst [vmem:[%s2702_s3 + $0x118] sm:$0xff] %v1620_v33   ;;  %v486_v42 = vmax.f32 %v358_v34, 0.0  ;;  %v487_v43 = vmax.f32 %v359_v35, 0.0  ;;  %v229_v45 = vmul.f32 %v1856_v2, %v94_v32  ;;  %v108_v32 = vld [vmem:[%s2699_s0 + $0x2f0] sm:$0xff] }
  0x47   :  { %v362_v44 = vadd.f32 %v1863_v5, %v227_v36  ;;  %v1625_v48 = vpack.c.bf16 %v485_v37, %v484_v29  ;;  %v488_v49 = vmax.f32 %v360_v38, 0.0  ;;  %v363_v51 = vadd.f32 %v1863_v5, %v228_v40  ;;  %v109_v37 = vld [vmem:[%s2699_s0 + $0x2f8] sm:$0xff] }
  0x48   :  { %v489_v50 = vmax.f32 %v361_v39, 0.0  ;;  %v1630_v54 = vpack.c.bf16 %v487_v43, %v486_v42  ;;  %v230_v56 = vmul.f32 %v1856_v2, %v95_v41  ;;  %v364_v57 = vadd.f32 %v1863_v5, %v229_v45  ;;  %v110_v42 = vld [vmem:[%s2699_s0 + $0x300] sm:$0xff] }
  0x49   :  { %v490_v55 = vmax.f32 %v362_v44, 0.0  ;;  %1797 = vst [vmem:[%s2702_s3 + $0x120] sm:$0xff] %v1625_v48   ;;  %v491_v60 = vmax.f32 %v363_v51, 0.0  ;;  %v231_v61 = vmul.f32 %v1856_v2, %v96_v46  ;;  %v232_v62 = vmul.f32 %v1856_v2, %v97_v47  ;;  %v111_v51 = vld [vmem:[%s2699_s0 + $0x308] sm:$0xff] }
  0x4a   :  { %v1635_v59 = vpack.c.bf16 %v489_v50, %v488_v49  ;;  %1798 = vst [vmem:[%s2702_s3 + $0x128] sm:$0xff] %v1630_v54   ;;  %v365_v0 = vadd.f32 %v1863_v5, %v230_v56  ;;  %v492_v1 = vmax.f32 %v364_v57, 0.0  ;;  %v233_v3 = vmul.f32 %v1856_v2, %v98_v52  ;;  %v112_v56 = vld [vmem:[%s2699_s0 + $0x310] sm:$0xff]  ;;  %v113_v57 = vld [vmem:[%s2699_s0 + $0x318] sm:$0xff] }
  0x4b   :  { %v234_v4 = vmul.f32 %v1856_v2, %v99_v53  ;;  %v1640_v7 = vpack.c.bf16 %v491_v60, %v490_v55  ;;  %v366_v8 = vadd.f32 %v1863_v5, %v231_v61  ;;  %v367_v9 = vadd.f32 %v1863_v5, %v232_v62  ;;  %v114_v62 = vld [vmem:[%s2699_s0 + $0x320] sm:$0xff] }
  0x4c   :  { %1799 = vst [vmem:[%s2702_s3 + $0x130] sm:$0xff] %v1635_v59   ;;  %v235_v10 = vmul.f32 %v1856_v2, %v100_v58  ;;  %v493_v11 = vmax.f32 %v365_v0, 0.0  ;;  %v368_v12 = vadd.f32 %v1863_v5, %v233_v3  ;;  %v236_v14 = vmul.f32 %v1856_v2, %v101_v63  ;;  %v115_v63 = vld [vmem:[%s2699_s0 + $0x328] sm:$0xff] }
  0x4d   :  { %v369_v13 = vadd.f32 %v1863_v5, %v234_v4  ;;  %1800 = vst [vmem:[%s2702_s3 + $0x138] sm:$0xff] %v1640_v7   ;;  %v494_v16 = vmax.f32 %v366_v8, 0.0  ;;  %v495_v17 = vmax.f32 %v367_v9, 0.0  ;;  %v237_v19 = vmul.f32 %v1856_v2, %v102_v6  ;;  %v116_v6 = vld [vmem:[%s2699_s0 + $0x330] sm:$0xff] }
  0x4e   :  { %v370_v18 = vadd.f32 %v1863_v5, %v235_v10  ;;  %v1645_v22 = vpack.c.bf16 %v493_v11, %v492_v1  ;;  %v496_v23 = vmax.f32 %v368_v12, 0.0  ;;  %v371_v25 = vadd.f32 %v1863_v5, %v236_v14  ;;  %v117_v11 = vld [vmem:[%s2699_s0 + $0x338] sm:$0xff] }
  0x4f   :  { %v497_v24 = vmax.f32 %v369_v13, 0.0  ;;  %v1650_v28 = vpack.c.bf16 %v495_v17, %v494_v16  ;;  %v238_v30 = vmul.f32 %v1856_v2, %v103_v15  ;;  %v372_v31 = vadd.f32 %v1863_v5, %v237_v19  ;;  %v118_v16 = vld [vmem:[%s2699_s0 + $0x340] sm:$0xff] }
  0x50   :  { %v498_v29 = vmax.f32 %v370_v18, 0.0  ;;  %1801 = vst [vmem:[%s2702_s3 + $0x140] sm:$0xff] %v1645_v22   ;;  %v499_v34 = vmax.f32 %v371_v25, 0.0  ;;  %v239_v35 = vmul.f32 %v1856_v2, %v104_v20  ;;  %v240_v36 = vmul.f32 %v1856_v2, %v105_v21  ;;  %v119_v25 = vld [vmem:[%s2699_s0 + $0x348] sm:$0xff] }
  0x51   :  { %v1655_v33 = vpack.c.bf16 %v497_v24, %v496_v23  ;;  %1802 = vst [vmem:[%s2702_s3 + $0x148] sm:$0xff] %v1650_v28   ;;  %v373_v38 = vadd.f32 %v1863_v5, %v238_v30  ;;  %v500_v39 = vmax.f32 %v372_v31, 0.0  ;;  %v241_v40 = vmul.f32 %v1856_v2, %v106_v26  ;;  %v120_v30 = vld [vmem:[%s2699_s0 + $0x350] sm:$0xff]  ;;  %v121_v31 = vld [vmem:[%s2699_s0 + $0x358] sm:$0xff] }
  0x52   :  { %v242_v41 = vmul.f32 %v1856_v2, %v107_v27  ;;  %v1660_v43 = vpack.c.bf16 %v499_v34, %v498_v29  ;;  %v374_v44 = vadd.f32 %v1863_v5, %v239_v35  ;;  %v375_v45 = vadd.f32 %v1863_v5, %v240_v36  ;;  %v2536_v35 = vld [vmem:[%s2701_s2] ss:$0 sm:$0xff]  ;;  %v123_v36 = vld [vmem:[%s2699_s0 + $0x368] sm:$0xff] }
  0x53   :  { %1803 = vst [vmem:[%s2702_s3 + $0x150] sm:$0xff] %v1655_v33   ;;  %v243_v46 = vmul.f32 %v1856_v2, %v108_v32  ;;  %v501_v47 = vmax.f32 %v373_v38, 0.0  ;;  %v376_v48 = vadd.f32 %v1863_v5, %v241_v40  ;;  %v244_v50 = vmul.f32 %v1856_v2, %v109_v37 }
  0x54   :  { %v377_v49 = vadd.f32 %v1863_v5, %v242_v41  ;;  %1804 = vst [vmem:[%s2702_s3 + $0x158] sm:$0xff] %v1660_v43   ;;  %v502_v52 = vmax.f32 %v374_v44, 0.0  ;;  %v503_v53 = vmax.f32 %v375_v45, 0.0  ;;  %v245_v55 = vmul.f32 %v1856_v2, %v110_v42  ;;  %v124_v42 = vld [vmem:[%s2699_s0 + $0x370] sm:$0xff] }
  0x55   :  { %v378_v54 = vadd.f32 %v1863_v5, %v243_v46  ;;  %v1665_v58 = vpack.c.bf16 %v501_v47, %v500_v39  ;;  %v504_v59 = vmax.f32 %v376_v48, 0.0  ;;  %v379_v61 = vadd.f32 %v1863_v5, %v244_v50  ;;  %v2548_v39 = vld [vmem:[%s2700_s1] ss:$0 sm:$0xff]  ;;  %v125_v47 = vld [vmem:[%s2699_s0 + $0x378] sm:$0xff] }
  0x56   :  { %v505_v60 = vmax.f32 %v377_v49, 0.0  ;;  %v1670_v0 = vpack.c.bf16 %v503_v53, %v502_v52  ;;  %v246_v3 = vmul.f32 %v1856_v2, %v111_v51  ;;  %v380_v4 = vadd.f32 %v1863_v5, %v245_v55  ;;  %v126_v52 = vld [vmem:[%s2699_s0 + $0x380] sm:$0xff] }
  0x57   :  { %v506_v1 = vmax.f32 %v378_v54, 0.0  ;;  %1805 = vst [vmem:[%s2702_s3 + $0x160] sm:$0xff] %v1665_v58   ;;  %v507_v8 = vmax.f32 %v379_v61, 0.0  ;;  %v247_v9 = vmul.f32 %v1856_v2, %v112_v56  ;;  %v248_v10 = vmul.f32 %v1856_v2, %v113_v57  ;;  %v127_v61 = vld [vmem:[%s2699_s0 + $0x388] sm:$0xff] }
  0x58   :  { %v1675_v7 = vpack.c.bf16 %v505_v60, %v504_v59  ;;  %1806 = vst [vmem:[%s2702_s3 + $0x168] sm:$0xff] %v1670_v0   ;;  %v381_v12 = vadd.f32 %v1863_v5, %v246_v3  ;;  %v508_v13 = vmax.f32 %v380_v4, 0.0  ;;  %v249_v14 = vmul.f32 %v1856_v2, %v114_v62  ;;  %v128_v3 = vld [vmem:[%s2699_s0 + $0x390] sm:$0xff]  ;;  %v129_v4 = vld [vmem:[%s2699_s0 + $0x398] sm:$0xff] }
  0x59   :  { %v250_v15 = vmul.f32 %v1856_v2, %v115_v63  ;;  %v1680_v17 = vpack.c.bf16 %v507_v8, %v506_v1  ;;  %v382_v18 = vadd.f32 %v1863_v5, %v247_v9  ;;  %v383_v19 = vadd.f32 %v1863_v5, %v248_v10  ;;  %v130_v10 = vld [vmem:[%s2699_s0 + $0x3a0] sm:$0xff] }
  0x5a   :  { %1807 = vst [vmem:[%s2702_s3 + $0x170] sm:$0xff] %v1675_v7   ;;  %v251_v20 = vmul.f32 %v1856_v2, %v116_v6  ;;  %v509_v21 = vmax.f32 %v381_v12, 0.0  ;;  %v384_v22 = vadd.f32 %v1863_v5, %v249_v14  ;;  %v252_v24 = vmul.f32 %v1856_v2, %v117_v11  ;;  %v131_v11 = vld [vmem:[%s2699_s0 + $0x3a8] sm:$0xff] }
  0x5b   :  { %v385_v23 = vadd.f32 %v1863_v5, %v250_v15  ;;  %1808 = vst [vmem:[%s2702_s3 + $0x178] sm:$0xff] %v1680_v17   ;;  %v510_v26 = vmax.f32 %v382_v18, 0.0  ;;  %v511_v27 = vmax.f32 %v383_v19, 0.0  ;;  %v253_v29 = vmul.f32 %v1856_v2, %v118_v16  ;;  %v122_v2 = vld [vmem:[%s2699_s0 + $0x360] sm:$0xff]  ;;  %v132_v16 = vld [vmem:[%s2699_s0 + $0x3b0] sm:$0xff] }
  0x5c   :  { %v386_v28 = vadd.f32 %v1863_v5, %v251_v20  ;;  %v1685_v32 = vpack.c.bf16 %v509_v21, %v508_v13  ;;  %v512_v33 = vmax.f32 %v384_v22, 0.0  ;;  %v387_v5 = vadd.f32 %v2536_v35, %v252_v24  ;;  %v133_v21 = vld [vmem:[%s2699_s0 + $0x3b8] sm:$0xff] }
  0x5d   :  { %v513_v34 = vmax.f32 %v385_v23, 0.0  ;;  %v1690_v37 = vpack.c.bf16 %v511_v27, %v510_v26  ;;  %v254_v40 = vmul.f32 %v2548_v39, %v119_v25  ;;  %v388_v41 = vadd.f32 %v2536_v35, %v253_v29  ;;  %v134_v26 = vld [vmem:[%s2699_s0 + $0x3c0] sm:$0xff] }
  0x5e   :  { %v514_v38 = vmax.f32 %v386_v28, 0.0  ;;  %1809 = vst [vmem:[%s2702_s3 + $0x180] sm:$0xff] %v1685_v32   ;;  %v515_v44 = vmax.f32 %v387_v5, 0.0  ;;  %v255_v45 = vmul.f32 %v2548_v39, %v120_v30  ;;  %v256_v46 = vmul.f32 %v2548_v39, %v121_v31  ;;  %v135_v5 = vld [vmem:[%s2699_s0 + $0x3c8] sm:$0xff] }
  0x5f   :  { %v1695_v43 = vpack.c.bf16 %v513_v34, %v512_v33  ;;  %1810 = vst [vmem:[%s2702_s3 + $0x188] sm:$0xff] %v1690_v37   ;;  %v389_v48 = vadd.f32 %v2536_v35, %v254_v40  ;;  %v516_v49 = vmax.f32 %v388_v41, 0.0  ;;  %v257_v50 = vmul.f32 %v2548_v39, %v122_v2  ;;  %v136_v40 = vld [vmem:[%s2699_s0 + $0x3d0] sm:$0xff]  ;;  %v137_v41 = vld [vmem:[%s2699_s0 + $0x3d8] sm:$0xff] }
  0x60   :  { %v258_v51 = vmul.f32 %v2548_v39, %v123_v36  ;;  %v1700_v53 = vpack.c.bf16 %v515_v44, %v514_v38  ;;  %v390_v54 = vadd.f32 %v2536_v35, %v255_v45  ;;  %v391_v55 = vadd.f32 %v2536_v35, %v256_v46  ;;  %v138_v46 = vld [vmem:[%s2699_s0 + $0x3e0] sm:$0xff] }
  0x61   :  { %1811 = vst [vmem:[%s2702_s3 + $0x190] sm:$0xff] %v1695_v43   ;;  %v259_v56 = vmul.f32 %v2548_v39, %v124_v42  ;;  %v517_v57 = vmax.f32 %v389_v48, 0.0  ;;  %v392_v58 = vadd.f32 %v2536_v35, %v257_v50  ;;  %v260_v60 = vmul.f32 %v2548_v39, %v125_v47  ;;  %v139_v47 = vld [vmem:[%s2699_s0 + $0x3e8] sm:$0xff] }
  0x62   :  { %v393_v59 = vadd.f32 %v2536_v35, %v258_v51  ;;  %1812 = vst [vmem:[%s2702_s3 + $0x198] sm:$0xff] %v1700_v53   ;;  %v518_v62 = vmax.f32 %v390_v54, 0.0  ;;  %v519_v63 = vmax.f32 %v391_v55, 0.0  ;;  %v261_v1 = vmul.f32 %v2548_v39, %v126_v52  ;;  %v140_v52 = vld [vmem:[%s2699_s0 + $0x3f0] sm:$0xff] }
  0x63   :  { %v394_v0 = vadd.f32 %v2536_v35, %v259_v56  ;;  %v1705_v6 = vpack.c.bf16 %v517_v57, %v516_v49  ;;  %v520_v7 = vmax.f32 %v392_v58, 0.0  ;;  %v395_v9 = vadd.f32 %v2536_v35, %v260_v60  ;;  %v141_v57 = vld [vmem:[%s2699_s0 + $0x3f8] sm:$0xff] }
  0x64   :  { %v521_v8 = vmax.f32 %v393_v59, 0.0  ;;  %v1710_v12 = vpack.c.bf16 %v519_v63, %v518_v62  ;;  %v262_v14 = vmul.f32 %v2548_v39, %v127_v61  ;;  %v396_v15 = vadd.f32 %v2536_v35, %v261_v1 }
  0x65   :  { %v522_v13 = vmax.f32 %v394_v0, 0.0  ;;  %1813 = vst [vmem:[%s2702_s3 + $0x1a0] sm:$0xff] %v1705_v6   ;;  %v523_v18 = vmax.f32 %v395_v9, 0.0  ;;  %v263_v19 = vmul.f32 %v2548_v39, %v128_v3  ;;  %v264_v20 = vmul.f32 %v2548_v39, %v129_v4 }
  0x66   :  { %v1715_v17 = vpack.c.bf16 %v521_v8, %v520_v7  ;;  %1814 = vst [vmem:[%s2702_s3 + $0x1a8] sm:$0xff] %v1710_v12   ;;  %v397_v22 = vadd.f32 %v2536_v35, %v262_v14  ;;  %v524_v23 = vmax.f32 %v396_v15, 0.0  ;;  %v265_v24 = vmul.f32 %v2548_v39, %v130_v10 }
  0x67   :  { %v266_v25 = vmul.f32 %v2548_v39, %v131_v11  ;;  %v1720_v27 = vpack.c.bf16 %v523_v18, %v522_v13  ;;  %v398_v28 = vadd.f32 %v2536_v35, %v263_v19  ;;  %v399_v29 = vadd.f32 %v2536_v35, %v264_v20 }
  0x68   :  { %1815 = vst [vmem:[%s2702_s3 + $0x1b0] sm:$0xff] %v1715_v17   ;;  %v267_v30 = vmul.f32 %v2548_v39, %v132_v16  ;;  %v525_v31 = vmax.f32 %v397_v22, 0.0  ;;  %v400_v32 = vadd.f32 %v2536_v35, %v265_v24  ;;  %v268_v34 = vmul.f32 %v2548_v39, %v133_v21 }
  0x69   :  { %v401_v33 = vadd.f32 %v2536_v35, %v266_v25  ;;  %1816 = vst [vmem:[%s2702_s3 + $0x1b8] sm:$0xff] %v1720_v27   ;;  %v526_v2 = vmax.f32 %v398_v28, 0.0  ;;  %v527_v36 = vmax.f32 %v399_v29, 0.0  ;;  %v269_v38 = vmul.f32 %v2548_v39, %v134_v26 }
  0x6a   :  { %v402_v37 = vadd.f32 %v2536_v35, %v267_v30  ;;  %v1725_v42 = vpack.c.bf16 %v525_v31, %v524_v23  ;;  %v528_v43 = vmax.f32 %v400_v32, 0.0  ;;  %v403_v45 = vadd.f32 %v2536_v35, %v268_v34 }
  0x6b   :  { %v529_v44 = vmax.f32 %v401_v33, 0.0  ;;  %v1730_v48 = vpack.c.bf16 %v527_v36, %v526_v2  ;;  %v270_v50 = vmul.f32 %v2548_v39, %v135_v5  ;;  %v404_v51 = vadd.f32 %v2536_v35, %v269_v38 }
  0x6c   :  { %v530_v49 = vmax.f32 %v402_v37, 0.0  ;;  %1817 = vst [vmem:[%s2702_s3 + $0x1c0] sm:$0xff] %v1725_v42   ;;  %v531_v54 = vmax.f32 %v403_v45, 0.0  ;;  %v271_v55 = vmul.f32 %v2548_v39, %v136_v40  ;;  %v272_v56 = vmul.f32 %v2548_v39, %v137_v41 }
  0x6d   :  { %v1735_v53 = vpack.c.bf16 %v529_v44, %v528_v43  ;;  %1818 = vst [vmem:[%s2702_s3 + $0x1c8] sm:$0xff] %v1730_v48   ;;  %v405_v58 = vadd.f32 %v2536_v35, %v270_v50  ;;  %v532_v59 = vmax.f32 %v404_v51, 0.0  ;;  %v273_v60 = vmul.f32 %v2548_v39, %v138_v46 }
  0x6e   :  { %v274_v61 = vmul.f32 %v2548_v39, %v139_v47  ;;  %v1740_v62 = vpack.c.bf16 %v531_v54, %v530_v49  ;;  %v406_v63 = vadd.f32 %v2536_v35, %v271_v55  ;;  %v407_v0 = vadd.f32 %v2536_v35, %v272_v56 }
  0x6f   :  { %1819 = vst [vmem:[%s2702_s3 + $0x1d0] sm:$0xff] %v1735_v53   ;;  %v275_v1 = vmul.f32 %v2548_v39, %v140_v52  ;;  %v533_v3 = vmax.f32 %v405_v58, 0.0  ;;  %v408_v4 = vadd.f32 %v2536_v35, %v273_v60  ;;  %v276_v7 = vmul.f32 %v2548_v39, %v141_v57 }
  0x70   :  { %v409_v6 = vadd.f32 %v2536_v35, %v274_v61  ;;  %1820 = vst [vmem:[%s2702_s3 + $0x1d8] sm:$0xff] %v1740_v62   ;;  %v534_v8 = vmax.f32 %v406_v63, 0.0  ;;  %v535_v9 = vmax.f32 %v407_v0, 0.0 }
  0x71   :  { %v410_v10 = vadd.f32 %v2536_v35, %v275_v1  ;;  %v1745_v11 = vpack.c.bf16 %v533_v3, %v532_v59  ;;  %v536_v12 = vmax.f32 %v408_v4, 0.0  ;;  %v411_v14 = vadd.f32 %v2536_v35, %v276_v7 }
  0x72   :  { %v537_v13 = vmax.f32 %v409_v6, 0.0  ;;  %v1750_v15 = vpack.c.bf16 %v535_v9, %v534_v8 }
  0x73   :  { %v538_v16 = vmax.f32 %v410_v10, 0.0  ;;  %1821 = vst [vmem:[%s2702_s3 + $0x1e0] sm:$0xff] %v1745_v11   ;;  %v539_v17 = vmax.f32 %v411_v14, 0.0 }
  0x74   :  { %v1755_v39 = vpack.c.bf16 %v537_v13, %v536_v12  ;;  %1822 = vst [vmem:[%s2702_s3 + $0x1e8] sm:$0xff] %v1750_v15  }
  0x75   :  { %v1760_v18 = vpack.c.bf16 %v539_v17, %v538_v16 }
  0x76   :  { %1823 = vst [vmem:[%s2702_s3 + $0x1f0] sm:$0xff] %v1755_v39  }
  0x77   :  { %1824 = vst [vmem:[%s2702_s3 + $0x1f8] sm:$0xff] %v1760_v18  }

// kernel: residual_block_forward.4
= control target key start
LH: loop header
LB: loop body
LE: loop exit
PB: predicated region body
PF: predicated region fallthrough
CT: control target
= control target key end

     0   :  { %s2535_s15 = smov 0   ;;  %s2537_s16 = smov 0   ;;  %s3523_s0 = inlined_call_operand.vmem [shape: bf16[1024,128], index: 0, kind: input, shape index: {}]   ;;  %s3524_s1 = inlined_call_operand.vmem [shape: bf16[128,256], index: 1, kind: input, shape index: {}]   ;;  %s3525_s2 = inlined_call_operand.vmem [shape: f32[1024,256], index: 2, kind: output, shape index: {0}]   ;;  %s3526_s3 = inlined_call_operand.vmem [shape: f32[16,256], index: 3, kind: output, shape index: {1}]   ;;  %s3527_s4 = inlined_call_operand.vmem [shape: f32[16,256], index: 4, kind: output, shape index: {2}]  }
   0x1   :  { %s2539_s17 = smov 0  }
   0x2 LB: > { %s27_s18 = sadd.s32 1, %s2503_s16  ;;  %p2325_p0 = scmp.ge.s32.totalorder %s2507_s17, 1  ;;  %s2507_s17 = sphi %s2539_s17, %s15_s17   ;;  %s2503_s16 = sphi %s2537_s16, %s3613_s16   ;;  %s2499_s15 = sphi %s2535_s15, %s3612_s15  }
   0x3   : > { %p29_p1 = scmp.ge.s32.totalorder %s27_s18, 2  ;;  %p197_p2 = scmp.lt.s32.totalorder %s2507_s17, 3 }
   0x5   : > { %s3615_s18 = smov (%p29_p1, %s27_s18), 0  ;;  %p198_p3 = pnand %p2325_p0, %p197_p2 }
   0x7   : > { %201 = sbr.rel (%p198_p3) target bundleno = 448 (0x1c0), region = 28 }
   0xc   : > { %v2429_v0 = vld [vmem:[%s3524_s1 + $0x74] ss:$8 sps:$4 sm:$0xff]   ;;  %s2326_s21 = sshll.u32 %s2499_s15, 6  ;;  %v2431_v1 = vld [vmem:[%s3524_s1 + $0x70] ss:$8 sps:$4 sm:$0xff]   ;;  %v2509_v2 = vmov 0  }
   0xd   : > { %921 = vmatprep.mubr.bf16.mxu0 %v2509_v2  ;;  %p244_p4 = scmp.lt.s32.totalorder %s2326_s21, 127  ;;  %1081 = vmatprep.mubr.bf16.mxu1 %v2509_v2  ;;  %v2432_v3 = vld [vmem:[%s3524_s1 + $0x64] ss:$8 sps:$4 sm:$0xff]   ;;  %v2434_v4 = vld [vmem:[%s3524_s1 + $0x60] ss:$8 sps:$4 sm:$0xff]   ;;  %p266_p5 = scmp.lt.s32.totalorder %s2499_s15, 1 }
   0xe   : > { %889 = vmatprep.subr.bf16.mxu0 %v2429_v0  ;;  %2388 = vmatprep.subr.bf16.mxu1 %v2429_v0  ;;  %v2435_v5 = vld [vmem:[%s3524_s1 + $0x54] ss:$8 sps:$4 sm:$0xff]   ;;  %v2437_v6 = vld [vmem:[%s3524_s1 + $0x50] ss:$8 sps:$4 sm:$0xff]   ;;  %v2438_v7 = vld [vmem:[%s3524_s1 + $0x44] ss:$8 sps:$4 sm:$0xff]  }
   0xf   : > { %890 = vmatpush1.bf16.msra.mxu0 %v2431_v1  ;;  %s3617_s21 = smov (!%p244_p4, %s2326_s21), 127  ;;  %2396 = vmatpush1.bf16.msra.mxu1 %v2431_v1  ;;  %v2440_v8 = vld [vmem:[%s3524_s1 + $0x40] ss:$8 sps:$4 sm:$0xff]   ;;  %v2441_v9 = vld [vmem:[%s3524_s1 + $0x34] ss:$8 sps:$4 sm:$0xff]   ;;  %s3619_s15 = smov (!%p266_p5, %s2499_s15), 1 }
  0x10   : > { %891 = vmatprep.subr.bf16.mxu0 %v2432_v3  ;;  %2389 = vmatprep.subr.bf16.mxu1 %v2432_v3  ;;  %s2327_s30 = sshll.u32 %s3617_s21, 2  ;;  %v2443_v10 = vld [vmem:[%s3524_s1 + $0x30] ss:$8 sps:$4 sm:$0xff]   ;;  %v2444_v11 = vld [vmem:[%s3524_s1 + $0x24] ss:$8 sps:$4 sm:$0xff]   ;;  %s2385_s9 = sshll.u32 %s3617_s21, 4 }
  0x11   : > { %s2585_s11 = scalar_lea.vmem %s3523_s0, %s2327_s30  ;;  %v2446_v12 = vld [vmem:[%s3524_s1 + $0x20] ss:$8 sps:$4 sm:$0xff]   ;;  %v2447_v13 = vld [vmem:[%s3524_s1 + $0x14] ss:$8 sps:$4 sm:$0xff]   ;;  %v2449_v14 = vld [vmem:[%s3524_s1 + $0x10] ss:$8 sps:$4 sm:$0xff]   ;;  %s2680_s13 = scalar_lea.vmem %s3525_s2, %s2385_s9 }
  0x12   : > { %v2450_v15 = vld [vmem:[%s3524_s1 + $0x4] ss:$8 sps:$4 sm:$0xff]   ;;  %v2452_v16 = vld [vmem:[%s3524_s1] ss:$8 sps:$4 sm:$0xff]   ;;  %v2455_v21 = vld [vmem:[%s2585_s11 + $0x10] sm:$0xff]   ;;  %s2386_s21 = sshll.u32 %s3619_s15, 4 }
  0x13   : > { %892 = vmatpush1.bf16.msra.mxu0 %v2434_v4  ;;  %2397 = vmatpush1.bf16.msra.mxu1 %v2434_v4  ;;  %v2453_v17 = vld [vmem:[%s2585_s11] sm:$0xff]   ;;  %v2454_v19 = vld [vmem:[%s2585_s11 + $0x8] sm:$0xff]   ;;  %v2465_v22 = vld [vmem:[%s2585_s11 + $0x90] sm:$0xff]   ;;  %s270_s19 = scalar_lea.vmem %s3526_s3, %s2386_s21  ;;  %s275_s23 = scalar_lea.vmem %s3527_s4, %s2386_s21 }
  0x14   : > { %893 = vmatprep.subr.bf16.mxu0 %v2435_v5  ;;  %2390 = vmatprep.subr.bf16.mxu1 %v2435_v5  ;;  %v2461_v18 = vld [vmem:[%s2585_s11 + $0x80] sm:$0xff]   ;;  %v2463_v20 = vld [vmem:[%s2585_s11 + $0x88] sm:$0xff]   ;;  %v2456_v23 = vld [vmem:[%s2585_s11 + $0x18] sm:$0xff]  }
  0x15   : > { %v2467_v24 = vld [vmem:[%s2585_s11 + $0x98] sm:$0xff]   ;;  %v2457_v25 = vld [vmem:[%s2585_s11 + $0x20] sm:$0xff]   ;;  %v2458_v27 = vld [vmem:[%s2585_s11 + $0x28] sm:$0xff]  }
  0x16   : > { %v2469_v26 = vld [vmem:[%s2585_s11 + $0xa0] sm:$0xff]   ;;  %v2471_v28 = vld [vmem:[%s2585_s11 + $0xa8] sm:$0xff]   ;;  %v2459_v29 = vld [vmem:[%s2585_s11 + $0x30] sm:$0xff]  }
  0x17   : > { %894 = vmatpush1.bf16.msra.mxu0 %v2437_v6  ;;  %2398 = vmatpush1.bf16.msra.mxu1 %v2437_v6  ;;  %v2473_v30 = vld [vmem:[%s2585_s11 + $0xb0] sm:$0xff]   ;;  %v2460_v31 = vld [vmem:[%s2585_s11 + $0x38] sm:$0xff]   ;;  %v2462_v33 = vld [vmem:[%s2585_s11 + $0x40] sm:$0xff]  }
  0x18   : > { %895 = vmatprep.subr.bf16.mxu0 %v2438_v7  ;;  %2391 = vmatprep.subr.bf16.mxu1 %v2438_v7  ;;  %v2475_v32 = vld [vmem:[%s2585_s11 + $0xb8] sm:$0xff]   ;;  %v2477_v34 = vld [vmem:[%s2585_s11 + $0xc0] sm:$0xff]   ;;  %v2464_v35 = vld [vmem:[%s2585_s11 + $0x48] sm:$0xff]  }
  0x19   : > { %v2478_v36 = vld [vmem:[%s2585_s11 + $0xc8] sm:$0xff]   ;;  %v2466_v37 = vld [vmem:[%s2585_s11 + $0x50] sm:$0xff]   ;;  %v2468_v39 = vld [vmem:[%s2585_s11 + $0x58] sm:$0xff]  }
  0x1a   : > { %v2479_v38 = vld [vmem:[%s2585_s11 + $0xd0] sm:$0xff]   ;;  %v2480_v40 = vld [vmem:[%s2585_s11 + $0xd8] sm:$0xff]   ;;  %v2470_v41 = vld [vmem:[%s2585_s11 + $0x60] sm:$0xff]  }
  0x1b   : > { %896 = vmatpush1.bf16.msra.mxu0 %v2440_v8  ;;  %2399 = vmatpush1.bf16.msra.mxu1 %v2440_v8  ;;  %v2481_v42 = vld [vmem:[%s2585_s11 + $0xe0] sm:$0xff]   ;;  %v2472_v43 = vld [vmem:[%s2585_s11 + $0x68] sm:$0xff]   ;;  %v2474_v45 = vld [vmem:[%s2585_s11 + $0x70] sm:$0xff]  }
  0x1c   : > { %897 = vmatprep.subr.bf16.mxu0 %v2441_v9  ;;  %2392 = vmatprep.subr.bf16.mxu1 %v2441_v9  ;;  %v2482_v44 = vld [vmem:[%s2585_s11 + $0xe8] sm:$0xff]   ;;  %v2483_v46 = vld [vmem:[%s2585_s11 + $0xf0] sm:$0xff]   ;;  %v2476_v47 = vld [vmem:[%s2585_s11 + $0x78] sm:$0xff]  }
  0x1d   : > { %v2484_v48 = vld [vmem:[%s2585_s11 + $0xf8] sm:$0xff]  }
  0x1f   : > { %898 = vmatpush1.bf16.msra.mxu0 %v2443_v10  ;;  %2400 = vmatpush1.bf16.msra.mxu1 %v2443_v10 }
  0x20   : > { %899 = vmatprep.subr.bf16.mxu0 %v2444_v11  ;;  %2393 = vmatprep.subr.bf16.mxu1 %v2444_v11 }
  0x23   : > { %900 = vmatpush1.bf16.msra.mxu0 %v2446_v12  ;;  %2401 = vmatpush1.bf16.msra.mxu1 %v2446_v12 }
  0x24   : > { %901 = vmatprep.subr.bf16.mxu0 %v2447_v13  ;;  %2394 = vmatprep.subr.bf16.mxu1 %v2447_v13 }
  0x27   : > { %902 = vmatpush1.bf16.msra.mxu0 %v2449_v14  ;;  %2402 = vmatpush1.bf16.msra.mxu1 %v2449_v14 }
  0x28   : > { %903 = vmatprep.subr.bf16.mxu0 %v2450_v15  ;;  %2395 = vmatprep.subr.bf16.mxu1 %v2450_v15 }
  0x2b   : > { %904 = vmatpush1.bf16.msra.mxu0 %v2452_v16  ;;  %2403 = vmatpush1.bf16.msra.mxu1 %v2452_v16 }
  0x2e   : > { %922 = vmatmul.mubr.bf16.vlgmr.msra.gmra.mxu0 %v2453_v17  ;;  %1082 = vmatmul.mubr.bf16.vlgmr.msra.gmra.mxu1 %v2461_v18 }
  0x2f   : > { %931 = vmatprep.mubr.bf16.mxu0 %v2509_v2  ;;  %1091 = vmatprep.mubr.bf16.mxu1 %v2509_v2 }
  0x36   : > { %932 = vmatmul.mubr.bf16.gmra.mxu0 %v2454_v19  ;;  %1092 = vmatmul.mubr.bf16.gmra.mxu1 %v2463_v20 }
  0x37   : > { %941 = vmatprep.mubr.bf16.mxu0 %v2509_v2  ;;  %1101 = vmatprep.mubr.bf16.mxu1 %v2509_v2 }
  0x3e   : > { %942 = vmatmul.mubr.bf16.gmra.mxu0 %v2455_v21  ;;  %1102 = vmatmul.mubr.bf16.gmra.mxu1 %v2465_v22 }
  0x3f   : > { %951 = vmatprep.mubr.bf16.mxu0 %v2509_v2  ;;  %1111 = vmatprep.mubr.bf16.mxu1 %v2509_v2 }
  0x46   : > { %952 = vmatmul.mubr.bf16.gmra.mxu0 %v2456_v23  ;;  %1112 = vmatmul.mubr.bf16.gmra.mxu1 %v2467_v24 }
  0x47   : > { %961 = vmatprep.mubr.bf16.mxu0 %v2509_v2  ;;  %1121 = vmatprep.mubr.bf16.mxu1 %v2509_v2 }
  0x4e   : > { %962 = vmatmul.mubr.bf16.gmra.mxu0 %v2457_v25  ;;  %1122 = vmatmul.mubr.bf16.gmra.mxu1 %v2469_v26 }
  0x4f   : > { %971 = vmatprep.mubr.bf16.mxu0 %v2509_v2  ;;  %1131 = vmatprep.mubr.bf16.mxu1 %v2509_v2 }
  0x56   : > { %972 = vmatmul.mubr.bf16.gmra.mxu0 %v2458_v27  ;;  %1132 = vmatmul.mubr.bf16.gmra.mxu1 %v2471_v28 }
  0x57   : > { %981 = vmatprep.mubr.bf16.mxu0 %v2509_v2  ;;  %1141 = vmatprep.mubr.bf16.mxu1 %v2509_v2 }
  0x5e   : > { %982 = vmatmul.mubr.bf16.gmra.mxu0 %v2459_v29  ;;  %1142 = vmatmul.mubr.bf16.gmra.mxu1 %v2473_v30 }
  0x5f   : > { %991 = vmatprep.mubr.bf16.mxu0 %v2509_v2  ;;  %1151 = vmatprep.mubr.bf16.mxu1 %v2509_v2 }
  0x66   : > { %992 = vmatmul.mubr.bf16.gmra.mxu0 %v2460_v31  ;;  %1152 = vmatmul.mubr.bf16.gmra.mxu1 %v2475_v32 }
  0x67   : > { %1001 = vmatprep.mubr.bf16.mxu0 %v2509_v2  ;;  %1161 = vmatprep.mubr.bf16.mxu1 %v2509_v2 }
  0x6e   : > { %1002 = vmatmul.mubr.bf16.gmra.mxu0 %v2462_v33  ;;  %1162 = vmatmul.mubr.bf16.gmra.mxu1 %v2477_v34 }
  0x6f   : > { %1011 = vmatprep.mubr.bf16.mxu0 %v2509_v2  ;;  %1171 = vmatprep.mubr.bf16.mxu1 %v2509_v2 }
  0x76   : > { %1012 = vmatmul.mubr.bf16.gmra.mxu0 %v2464_v35  ;;  %1172 = vmatmul.mubr.bf16.gmra.mxu1 %v2478_v36 }
  0x77   : > { %1021 = vmatprep.mubr.bf16.mxu0 %v2509_v2  ;;  %1181 = vmatprep.mubr.bf16.mxu1 %v2509_v2 }
  0x7e   : > { %1022 = vmatmul.mubr.bf16.gmra.mxu0 %v2466_v37  ;;  %1182 = vmatmul.mubr.bf16.gmra.mxu1 %v2479_v38 }
  0x7f   : > { %1031 = vmatprep.mubr.bf16.mxu0 %v2509_v2  ;;  %1191 = vmatprep.mubr.bf16.mxu1 %v2509_v2 }
  0x86   : > { %1032 = vmatmul.mubr.bf16.gmra.mxu0 %v2468_v39  ;;  %1192 = vmatmul.mubr.bf16.gmra.mxu1 %v2480_v40 }
  0x87   : > { %1041 = vmatprep.mubr.bf16.mxu0 %v2509_v2  ;;  %1201 = vmatprep.mubr.bf16.mxu1 %v2509_v2 }
  0x8e   : > { %1042 = vmatmul.mubr.bf16.gmra.mxu0 %v2470_v41  ;;  %1202 = vmatmul.mubr.bf16.gmra.mxu1 %v2481_v42 }
  0x8f   : > { %1051 = vmatprep.mubr.bf16.mxu0 %v2509_v2  ;;  %1211 = vmatprep.mubr.bf16.mxu1 %v2509_v2 }
  0x96   : > { %1052 = vmatmul.mubr.bf16.gmra.mxu0 %v2472_v43  ;;  %1212 = vmatmul.mubr.bf16.gmra.mxu1 %v2482_v44 }
  0x97   : > { %1061 = vmatprep.mubr.bf16.mxu0 %v2509_v2  ;;  %1221 = vmatprep.mubr.bf16.mxu1 %v2509_v2 }
  0x9e   : > { %1062 = vmatmul.mubr.bf16.gmra.mxu0 %v2474_v45  ;;  %1222 = vmatmul.mubr.bf16.gmra.mxu1 %v2483_v46 }
  0x9f   : > { %1071 = vmatprep.mubr.bf16.mxu0 %v2509_v2  ;;  %1231 = vmatprep.mubr.bf16.mxu1 %v2509_v2 }
  0xa6   : > { %1072 = vmatmul.mubr.bf16.gmra.mxu0 %v2476_v47  ;;  %1232 = vmatmul.mubr.bf16.gmra.mxu1 %v2484_v48 }
  0xee   : > { %v2682_v49 = vpop.f32.mrf.mxu0  ;;  %v2684_v50 = vpop.f32.mrf.mxu1 }
  0xef   : > { %1629 = vst [vmem:[%s2680_s13] sm:$0xff] %v2682_v49  ;;  %1693 = vst [vmem:[%s2680_s13 + $0x200] sm:$0xff] %v2684_v50 }
  0xf0   : > { %v2690_v51 = vpop.f32.mrf.mxu0  ;;  %v2692_v52 = vpop.f32.mrf.mxu1 }
  0xf1   : > { %1630 = vst [vmem:[%s2680_s13 + $0x8] sm:$0xff] %v2690_v51  ;;  %1694 = vst [vmem:[%s2680_s13 + $0x208] sm:$0xff] %v2692_v52 }
  0xf2   : > { %v2698_v53 = vpop.f32.mrf.mxu0  ;;  %v2700_v54 = vpop.f32.mrf.mxu1 }
  0xf3   : > { %1631 = vst [vmem:[%s2680_s13 + $0x10] sm:$0xff] %v2698_v53  ;;  %1695 = vst [vmem:[%s2680_s13 + $0x210] sm:$0xff] %v2700_v54 }
  0xf4   : > { %v2706_v55 = vpop.f32.mrf.mxu0  ;;  %v2708_v56 = vpop.f32.mrf.mxu1 }
  0xf5   : > { %1632 = vst [vmem:[%s2680_s13 + $0x18] sm:$0xff] %v2706_v55  ;;  %1696 = vst [vmem:[%s2680_s13 + $0x218] sm:$0xff] %v2708_v56 }
  0xf6   : > { %v2714_v57 = vpop.f32.mrf.mxu0  ;;  %v2716_v58 = vpop.f32.mrf.mxu1 }
  0xf7   : > { %1633 = vst [vmem:[%s2680_s13 + $0x20] sm:$0xff] %v2714_v57  ;;  %1697 = vst [vmem:[%s2680_s13 + $0x220] sm:$0xff] %v2716_v58 }
  0xf8   : > { %v2722_v59 = vpop.f32.mrf.mxu0  ;;  %v2724_v60 = vpop.f32.mrf.mxu1 }
  0xf9   : > { %1634 = vst [vmem:[%s2680_s13 + $0x28] sm:$0xff] %v2722_v59  ;;  %1698 = vst [vmem:[%s2680_s13 + $0x228] sm:$0xff] %v2724_v60 }
  0xfa   : > { %v2730_v61 = vpop.f32.mrf.mxu0  ;;  %v2732_v62 = vpop.f32.mrf.mxu1 }
  0xfb   : > { %1635 = vst [vmem:[%s2680_s13 + $0x30] sm:$0xff] %v2730_v61  ;;  %1699 = vst [vmem:[%s2680_s13 + $0x230] sm:$0xff] %v2732_v62 }
  0xfc   : > { %v2738_v63 = vpop.f32.mrf.mxu0  ;;  %v2740_v0 = vpop.f32.mrf.mxu1 }
  0xfd   : > { %1636 = vst [vmem:[%s2680_s13 + $0x38] sm:$0xff] %v2738_v63  ;;  %1700 = vst [vmem:[%s2680_s13 + $0x238] sm:$0xff] %v2740_v0 }
  0xfe   : > { %v2746_v1 = vpop.f32.mrf.mxu0  ;;  %v2748_v2 = vpop.f32.mrf.mxu1 }
  0xff   : > { %1637 = vst [vmem:[%s2680_s13 + $0x40] sm:$0xff] %v2746_v1  ;;  %1701 = vst [vmem:[%s2680_s13 + $0x240] sm:$0xff] %v2748_v2 }
 0x100   : > { %v2754_v3 = vpop.f32.mrf.mxu0  ;;  %v2756_v4 = vpop.f32.mrf.mxu1 }
 0x101   : > { %1638 = vst [vmem:[%s2680_s13 + $0x48] sm:$0xff] %v2754_v3  ;;  %1702 = vst [vmem:[%s2680_s13 + $0x248] sm:$0xff] %v2756_v4 }
 0x102   : > { %v2762_v5 = vpop.f32.mrf.mxu0  ;;  %v2764_v6 = vpop.f32.mrf.mxu1 }
 0x103   : > { %1639 = vst [vmem:[%s2680_s13 + $0x50] sm:$0xff] %v2762_v5  ;;  %1703 = vst [vmem:[%s2680_s13 + $0x250] sm:$0xff] %v2764_v6 }
 0x104   : > { %v2770_v7 = vpop.f32.mrf.mxu0  ;;  %v2772_v8 = vpop.f32.mrf.mxu1 }
 0x105   : > { %1640 = vst [vmem:[%s2680_s13 + $0x58] sm:$0xff] %v2770_v7  ;;  %1704 = vst [vmem:[%s2680_s13 + $0x258] sm:$0xff] %v2772_v8 }
 0x106   : > { %v2778_v9 = vpop.f32.mrf.mxu0  ;;  %v2780_v10 = vpop.f32.mrf.mxu1 }
 0x107   : > { %1641 = vst [vmem:[%s2680_s13 + $0x60] sm:$0xff] %v2778_v9  ;;  %1705 = vst [vmem:[%s2680_s13 + $0x260] sm:$0xff] %v2780_v10 }
 0x108   : > { %v2786_v11 = vpop.f32.mrf.mxu0  ;;  %v2788_v12 = vpop.f32.mrf.mxu1 }
 0x109   : > { %1642 = vst [vmem:[%s2680_s13 + $0x68] sm:$0xff] %v2786_v11  ;;  %1706 = vst [vmem:[%s2680_s13 + $0x268] sm:$0xff] %v2788_v12 }
 0x10a   : > { %v2794_v13 = vpop.f32.mrf.mxu0  ;;  %v2796_v14 = vpop.f32.mrf.mxu1 }
 0x10b   : > { %1643 = vst [vmem:[%s2680_s13 + $0x70] sm:$0xff] %v2794_v13  ;;  %1707 = vst [vmem:[%s2680_s13 + $0x270] sm:$0xff] %v2796_v14 }
 0x10c   : > { %v2802_v15 = vpop.f32.mrf.mxu0  ;;  %v2804_v16 = vpop.f32.mrf.mxu1 }
 0x10d   : > { %1644 = vst [vmem:[%s2680_s13 + $0x78] sm:$0xff] %v2802_v15  ;;  %1708 = vst [vmem:[%s2680_s13 + $0x278] sm:$0xff] %v2804_v16 }
 0x10e   : > { %v2810_v17 = vpop.f32.mrf.mxu0  ;;  %v2812_v18 = vpop.f32.mrf.mxu1 }
 0x10f   : > { %1645 = vst [vmem:[%s2680_s13 + $0x80] sm:$0xff] %v2810_v17  ;;  %1709 = vst [vmem:[%s2680_s13 + $0x280] sm:$0xff] %v2812_v18 }
 0x110   : > { %v2818_v19 = vpop.f32.mrf.mxu0  ;;  %v2820_v20 = vpop.f32.mrf.mxu1 }
 0x111   : > { %3570 = vst [vmem:[#allocation3_spill] sm:$0xff] %v2820_v20  ;;  %1646 = vst [vmem:[%s2680_s13 + $0x88] sm:$0xff] %v2818_v19 }
 0x112   : > { %1710 = vst [vmem:[%s2680_s13 + $0x288] sm:$0xff] %v2820_v20  ;;  %v2826_v21 = vpop.f32.mrf.mxu0  ;;  %v2828_v22 = vpop.f32.mrf.mxu1 }
 0x113   : > { %3571 = vst [vmem:[#allocation4_spill] sm:$0xff] %v2828_v22  ;;  %1647 = vst [vmem:[%s2680_s13 + $0x90] sm:$0xff] %v2826_v21 }
 0x114   : > { %1711 = vst [vmem:[%s2680_s13 + $0x290] sm:$0xff] %v2828_v22  ;;  %v2834_v23 = vpop.f32.mrf.mxu0  ;;  %v2836_v24 = vpop.f32.mrf.mxu1  ;;  %v1902_v22 = vmul.f32 %v2738_v63, %v2738_v63 }
 0x115   : > { %3572 = vst [vmem:[#allocation5_spill] sm:$0xff] %v2836_v24  ;;  %1648 = vst [vmem:[%s2680_s13 + $0x98] sm:$0xff] %v2834_v23 }
 0x116   : > { %1712 = vst [vmem:[%s2680_s13 + $0x298] sm:$0xff] %v2836_v24  ;;  %v2842_v25 = vpop.f32.mrf.mxu0  ;;  %v2844_v26 = vpop.f32.mrf.mxu1 }
 0x117   : > { %3573 = vst [vmem:[#allocation6_spill] sm:$0xff] %v2844_v26  ;;  %1649 = vst [vmem:[%s2680_s13 + $0xa0] sm:$0xff] %v2842_v25 }
 0x118   : > { %1713 = vst [vmem:[%s2680_s13 + $0x2a0] sm:$0xff] %v2844_v26  ;;  %v2850_v27 = vpop.f32.mrf.mxu0  ;;  %v2852_v28 = vpop.f32.mrf.mxu1 }
 0x119   : > { %3574 = vst [vmem:[#allocation7_spill] sm:$0xff] %v2852_v28  ;;  %1650 = vst [vmem:[%s2680_s13 + $0xa8] sm:$0xff] %v2850_v27 }
 0x11a   : > { %1714 = vst [vmem:[%s2680_s13 + $0x2a8] sm:$0xff] %v2852_v28  ;;  %v2858_v29 = vpop.f32.mrf.mxu0  ;;  %v2860_v30 = vpop.f32.mrf.mxu1 }
 0x11b   : > { %3575 = vst [vmem:[#allocation8_spill] sm:$0xff] %v2860_v30  ;;  %1651 = vst [vmem:[%s2680_s13 + $0xb0] sm:$0xff] %v2858_v29 }
 0x11c   : > { %1715 = vst [vmem:[%s2680_s13 + $0x2b0] sm:$0xff] %v2860_v30  ;;  %v2866_v31 = vpop.f32.mrf.mxu0  ;;  %v2868_v32 = vpop.f32.mrf.mxu1 }
 0x11d   : > { %3576 = vst [vmem:[#allocation9_spill] sm:$0xff] %v2868_v32  ;;  %1652 = vst [vmem:[%s2680_s13 + $0xb8] sm:$0xff] %v2866_v31 }
 0x11e   : > { %1716 = vst [vmem:[%s2680_s13 + $0x2b8] sm:$0xff] %v2868_v32  ;;  %v2874_v33 = vpop.f32.mrf.mxu0  ;;  %v2876_v34 = vpop.f32.mrf.mxu1  ;;  %v1900_v32 = vmul.f32 %v2722_v59, %v2722_v59 }
 0x11f   : > { %3577 = vst [vmem:[#allocation10_spill] sm:$0xff] %v2876_v34  ;;  %1653 = vst [vmem:[%s2680_s13 + $0xc0] sm:$0xff] %v2874_v33 }
 0x120   : > { %1717 = vst [vmem:[%s2680_s13 + $0x2c0] sm:$0xff] %v2876_v34  ;;  %v2882_v35 = vpop.f32.mrf.mxu0  ;;  %v2884_v36 = vpop.f32.mrf.mxu1  ;;  %v1899_v34 = vmul.f32 %v2714_v57, %v2714_v57 }
 0x121   : > { %3578 = vst [vmem:[#allocation11_spill] sm:$0xff] %v2884_v36  ;;  %1654 = vst [vmem:[%s2680_s13 + $0xc8] sm:$0xff] %v2882_v35 }
 0x122   : > { %1718 = vst [vmem:[%s2680_s13 + $0x2c8] sm:$0xff] %v2884_v36  ;;  %v2890_v37 = vpop.f32.mrf.mxu0  ;;  %v2892_v38 = vpop.f32.mrf.mxu1  ;;  %v1757_v36 = vadd.f32 %v2698_v53, %v2682_v49 }
 0x123   : > { %3579 = vst [vmem:[#allocation12_spill] sm:$0xff] %v2892_v38  ;;  %1655 = vst [vmem:[%s2680_s13 + $0xd0] sm:$0xff] %v2890_v37 }
 0x124   : > { %1719 = vst [vmem:[%s2680_s13 + $0x2d0] sm:$0xff] %v2892_v38  ;;  %v2898_v39 = vpop.f32.mrf.mxu0  ;;  %v2900_v40 = vpop.f32.mrf.mxu1  ;;  %v1758_v26 = vadd.f32 %v1757_v36, %v2714_v57  ;;  %v1903_v36 = vmul.f32 %v2746_v1, %v2746_v1 }
 0x125   : > { %3580 = vst [vmem:[#allocation13_spill] sm:$0xff] %v2900_v40  ;;  %1656 = vst [vmem:[%s2680_s13 + $0xd8] sm:$0xff] %v2898_v39 }
 0x126   : > { %1720 = vst [vmem:[%s2680_s13 + $0x2d8] sm:$0xff] %v2900_v40  ;;  %v2906_v41 = vpop.f32.mrf.mxu0  ;;  %v2908_v42 = vpop.f32.mrf.mxu1  ;;  %v1759_v57 = vadd.f32 %v1758_v26, %v2730_v61 }
 0x127   : > { %3581 = vst [vmem:[#allocation14_spill] sm:$0xff] %v2908_v42  ;;  %1657 = vst [vmem:[%s2680_s13 + $0xe0] sm:$0xff] %v2906_v41 }
 0x128   : > { %1721 = vst [vmem:[%s2680_s13 + $0x2e0] sm:$0xff] %v2908_v42  ;;  %v2914_v43 = vpop.f32.mrf.mxu0  ;;  %v2916_v44 = vpop.f32.mrf.mxu1  ;;  %v1897_v42 = vmul.f32 %v2698_v53, %v2698_v53  ;;  %v1826_v53 = vadd.f32 %v2706_v55, %v2690_v51  ;;  %v1760_v26 = vadd.f32 %v1759_v57, %v2746_v1 }
 0x129   : > { %3582 = vst [vmem:[#allocation15_spill] sm:$0xff] %v2916_v44  ;;  %1658 = vst [vmem:[%s2680_s13 + $0xe8] sm:$0xff] %v2914_v43 }
 0x12a   : > { %1722 = vst [vmem:[%s2680_s13 + $0x2e8] sm:$0xff] %v2916_v44  ;;  %v2922_v45 = vpop.f32.mrf.mxu0  ;;  %v2924_v46 = vpop.f32.mrf.mxu1  ;;  %v1898_v44 = vmul.f32 %v2706_v55, %v2706_v55  ;;  %v1827_v55 = vadd.f32 %v1826_v53, %v2722_v59 }
 0x12b   : > { %3583 = vst [vmem:[#allocation16_spill] sm:$0xff] %v2924_v46  ;;  %1659 = vst [vmem:[%s2680_s13 + $0xf0] sm:$0xff] %v2922_v45 }
 0x12c   : > { %1723 = vst [vmem:[%s2680_s13 + $0x2f0] sm:$0xff] %v2924_v46  ;;  %v2930_v47 = vpop.f32.mrf.mxu0  ;;  %v2932_v48 = vpop.f32.mrf.mxu1  ;;  %v1895_v46 = vmul.f32 %v2682_v49, %v2682_v49 }
 0x12d   : > { %3584 = vst [vmem:[#allocation17_spill] sm:$0xff] %v2932_v48  ;;  %1660 = vst [vmem:[%s2680_s13 + $0xf8] sm:$0xff] %v2930_v47 }
 0x12e   : > { %1724 = vst [vmem:[%s2680_s13 + $0x2f8] sm:$0xff] %v2932_v48  ;;  %v2942_v40 = vpop.f32.mrf.mxu0  ;;  %v2944_v38 = vpop.f32.mrf.mxu1  ;;  %v1896_v48 = vmul.f32 %v2690_v51, %v2690_v51  ;;  %v2023_v49 = vadd.f32 %v1897_v42, %v1895_v46  ;;  %v1904_v46 = vmul.f32 %v2754_v3, %v2754_v3 }
 0x12f   : > { %3585 = vst [vmem:[#allocation18_spill] sm:$0xff] %v2944_v38  ;;  %1661 = vst [vmem:[%s2680_s13 + $0x100] sm:$0xff] %v2942_v40 }
 0x130   : > { %1725 = vst [vmem:[%s2680_s13 + $0x300] sm:$0xff] %v2944_v38  ;;  %v2960_v30 = vpop.f32.mrf.mxu0  ;;  %v2962_v28 = vpop.f32.mrf.mxu1  ;;  %v1901_v38 = vmul.f32 %v2730_v61, %v2730_v61  ;;  %v2092_v24 = vadd.f32 %v1898_v44, %v1896_v48  ;;  %v2024_v51 = vadd.f32 %v2023_v49, %v1899_v34  ;;  %v1828_v61 = vadd.f32 %v1827_v55, %v2738_v63 }
 0x131   : > { %3586 = vst [vmem:[#allocation19_spill] sm:$0xff] %v2962_v28  ;;  %1662 = vst [vmem:[%s2680_s13 + $0x108] sm:$0xff] %v2960_v30  ;;  %v1905_v34 = vmul.f32 %v2762_v5, %v2762_v5  ;;  %v1908_v55 = vmul.f32 %v2786_v11, %v2786_v11 }
 0x132   : > { %1726 = vst [vmem:[%s2680_s13 + $0x308] sm:$0xff] %v2962_v28  ;;  %v2975_v20 = vpop.f32.mrf.mxu0  ;;  %v2977_v42 = vpop.f32.mrf.mxu1  ;;  %v2093_v44 = vadd.f32 %v2092_v24, %v1900_v32  ;;  %v2025_v59 = vadd.f32 %v2024_v51, %v1901_v38  ;;  %v1906_v32 = vmul.f32 %v2770_v7, %v2770_v7  ;;  %v1829_v1 = vadd.f32 %v1828_v61, %v2754_v3 }
 0x133   : > { %1663 = vst [vmem:[%s2680_s13 + $0x110] sm:$0xff] %v2975_v20  ;;  %1727 = vst [vmem:[%s2680_s13 + $0x310] sm:$0xff] %v2977_v42  ;;  %v1761_v38 = vadd.f32 %v1760_v26, %v2762_v5  ;;  %v1907_v51 = vmul.f32 %v2778_v9, %v2778_v9  ;;  %v1910_v61 = vmul.f32 %v2802_v15, %v2802_v15 }
 0x134   : > { %v2989_v48 = vpop.f32.mrf.mxu0  ;;  %v2991_v28 = vpop.f32.mrf.mxu1  ;;  %v2094_v24 = vadd.f32 %v2093_v44, %v1902_v22  ;;  %v2026_v63 = vadd.f32 %v2025_v59, %v1903_v36  ;;  %v1830_v5 = vadd.f32 %v1829_v1, %v2770_v7  ;;  %v1909_v59 = vmul.f32 %v2794_v13, %v2794_v13 }
 0x135   : > { %1664 = vst [vmem:[%s2680_s13 + $0x118] sm:$0xff] %v2989_v48  ;;  %1728 = vst [vmem:[%s2680_s13 + $0x318] sm:$0xff] %v2991_v28  ;;  %v1762_v36 = vadd.f32 %v1761_v38, %v2778_v9  ;;  %v1912_v1 = vmul.f32 %v2818_v19, %v2818_v19 }
 0x136   : > { %v3003_v49 = vpop.f32.mrf.mxu0  ;;  %v3005_v53 = vpop.f32.mrf.mxu1  ;;  %v2095_v22 = vadd.f32 %v2094_v24, %v1904_v46  ;;  %v2027_v3 = vadd.f32 %v2026_v63, %v1905_v34  ;;  %v1831_v9 = vadd.f32 %v1830_v5, %v2786_v11  ;;  %v1911_v63 = vmul.f32 %v2810_v17, %v2810_v17 }
 0x137   : > { %1665 = vst [vmem:[%s2680_s13 + $0x120] sm:$0xff] %v3003_v49  ;;  %1729 = vst [vmem:[%s2680_s13 + $0x320] sm:$0xff] %v3005_v53  ;;  %v1763_v34 = vadd.f32 %v1762_v36, %v2794_v13  ;;  %v1914_v5 = vmul.f32 %v2834_v23, %v2834_v23 }
 0x138   : > { %v3017_v57 = vpop.f32.mrf.mxu0  ;;  %v3019_v44 = vpop.f32.mrf.mxu1  ;;  %v2096_v46 = vadd.f32 %v2095_v22, %v1906_v32  ;;  %v2028_v7 = vadd.f32 %v2027_v3, %v1907_v51  ;;  %v1832_v13 = vadd.f32 %v1831_v9, %v2802_v15  ;;  %v1913_v3 = vmul.f32 %v2826_v21, %v2826_v21 }
 0x139   : > { %1666 = vst [vmem:[%s2680_s13 + $0x128] sm:$0xff] %v3017_v57  ;;  %1730 = vst [vmem:[%s2680_s13 + $0x328] sm:$0xff] %v3019_v44  ;;  %v1764_v51 = vadd.f32 %v1763_v34, %v2810_v17  ;;  %v1916_v9 = vmul.f32 %v2850_v27, %v2850_v27 }
 0x13a   : > { %v3031_v26 = vpop.f32.mrf.mxu0  ;;  %v3033_v24 = vpop.f32.mrf.mxu1  ;;  %v2097_v32 = vadd.f32 %v2096_v46, %v1908_v55  ;;  %v2029_v11 = vadd.f32 %v2028_v7, %v1909_v59  ;;  %v1833_v17 = vadd.f32 %v1832_v13, %v2818_v19  ;;  %v1915_v7 = vmul.f32 %v2842_v25, %v2842_v25 }
 0x13b   : > { %1667 = vst [vmem:[%s2680_s13 + $0x130] sm:$0xff] %v3031_v26  ;;  %1731 = vst [vmem:[%s2680_s13 + $0x330] sm:$0xff] %v3033_v24  ;;  %v1765_v59 = vadd.f32 %v1764_v51, %v2826_v21  ;;  %v1918_v13 = vmul.f32 %v2866_v31, %v2866_v31 }
 0x13c   : > { %v3045_v38 = vpop.f32.mrf.mxu0  ;;  %v3047_v22 = vpop.f32.mrf.mxu1  ;;  %v2098_v55 = vadd.f32 %v2097_v32, %v1910_v61  ;;  %v2030_v15 = vadd.f32 %v2029_v11, %v1911_v63  ;;  %v1834_v21 = vadd.f32 %v1833_v17, %v2834_v23  ;;  %v1917_v11 = vmul.f32 %v2858_v29, %v2858_v29 }
 0x13d   : > { %1668 = vst [vmem:[%s2680_s13 + $0x138] sm:$0xff] %v3045_v38  ;;  %1732 = vst [vmem:[%s2680_s13 + $0x338] sm:$0xff] %v3047_v22  ;;  %v1766_v63 = vadd.f32 %v1765_v59, %v2842_v25  ;;  %v1920_v17 = vmul.f32 %v2882_v35, %v2882_v35 }
 0x13e   : > { %v3059_v36 = vpop.f32.mrf.mxu0  ;;  %v3061_v46 = vpop.f32.mrf.mxu1  ;;  %v2099_v61 = vadd.f32 %v2098_v55, %v1912_v1  ;;  %v2031_v19 = vadd.f32 %v2030_v15, %v1913_v3  ;;  %v1835_v25 = vadd.f32 %v1834_v21, %v2850_v27  ;;  %v1919_v15 = vmul.f32 %v2874_v33, %v2874_v33 }
 0x13f   : > { %1669 = vst [vmem:[%s2680_s13 + $0x140] sm:$0xff] %v3059_v36  ;;  %1733 = vst [vmem:[%s2680_s13 + $0x340] sm:$0xff] %v3061_v46  ;;  %v1767_v3 = vadd.f32 %v1766_v63, %v2858_v29  ;;  %v1922_v21 = vmul.f32 %v2898_v39, %v2898_v39 }
 0x140   : > { %v3073_v34 = vpop.f32.mrf.mxu0  ;;  %v3075_v32 = vpop.f32.mrf.mxu1  ;;  %v2100_v1 = vadd.f32 %v2099_v61, %v1914_v5  ;;  %v2032_v23 = vadd.f32 %v2031_v19, %v1915_v7  ;;  %v1836_v29 = vadd.f32 %v1835_v25, %v2866_v31  ;;  %v1921_v19 = vmul.f32 %v2890_v37, %v2890_v37 }
 0x141   : > { %1670 = vst [vmem:[%s2680_s13 + $0x148] sm:$0xff] %v3073_v34  ;;  %1734 = vst [vmem:[%s2680_s13 + $0x348] sm:$0xff] %v3075_v32  ;;  %v1768_v7 = vadd.f32 %v1767_v3, %v2874_v33  ;;  %v1924_v25 = vmul.f32 %v2914_v43, %v2914_v43 }
 0x142   : > { %v3087_v51 = vpop.f32.mrf.mxu0  ;;  %v3089_v55 = vpop.f32.mrf.mxu1  ;;  %v2101_v5 = vadd.f32 %v2100_v1, %v1916_v9  ;;  %v2033_v27 = vadd.f32 %v2032_v23, %v1917_v11  ;;  %v1837_v33 = vadd.f32 %v1836_v29, %v2882_v35  ;;  %v1923_v23 = vmul.f32 %v2906_v41, %v2906_v41 }
 0x143   : > { %1671 = vst [vmem:[%s2680_s13 + $0x150] sm:$0xff] %v3087_v51  ;;  %1735 = vst [vmem:[%s2680_s13 + $0x350] sm:$0xff] %v3089_v55  ;;  %v1769_v11 = vadd.f32 %v1768_v7, %v2890_v37  ;;  %v1926_v29 = vmul.f32 %v2930_v47, %v2930_v47 }
 0x144   : > { %v3101_v59 = vpop.f32.mrf.mxu0  ;;  %v3103_v61 = vpop.f32.mrf.mxu1  ;;  %v2102_v9 = vadd.f32 %v2101_v5, %v1918_v13  ;;  %v2034_v31 = vadd.f32 %v2033_v27, %v1919_v15  ;;  %v1838_v37 = vadd.f32 %v1837_v33, %v2898_v39  ;;  %v1925_v27 = vmul.f32 %v2922_v45, %v2922_v45 }
 0x145   : > { %1672 = vst [vmem:[%s2680_s13 + $0x158] sm:$0xff] %v3101_v59  ;;  %1736 = vst [vmem:[%s2680_s13 + $0x358] sm:$0xff] %v3103_v61  ;;  %v1770_v15 = vadd.f32 %v1769_v11, %v2906_v41  ;;  %v1928_v33 = vmul.f32 %v2960_v30, %v2960_v30 }
 0x146   : > { %v3115_v63 = vpop.f32.mrf.mxu0  ;;  %v3117_v1 = vpop.f32.mrf.mxu1  ;;  %v2103_v13 = vadd.f32 %v2102_v9, %v1920_v17  ;;  %v2035_v35 = vadd.f32 %v2034_v31, %v1921_v19  ;;  %v1839_v41 = vadd.f32 %v1838_v37, %v2914_v43  ;;  %v1927_v31 = vmul.f32 %v2942_v40, %v2942_v40 }
 0x147   : > { %1673 = vst [vmem:[%s2680_s13 + $0x160] sm:$0xff] %v3115_v63  ;;  %1737 = vst [vmem:[%s2680_s13 + $0x360] sm:$0xff] %v3117_v1  ;;  %v1771_v19 = vadd.f32 %v1770_v15, %v2922_v45  ;;  %v1930_v37 = vmul.f32 %v2989_v48, %v2989_v48 }
 0x148   : > { %v3129_v3 = vpop.f32.mrf.mxu0  ;;  %v3131_v5 = vpop.f32.mrf.mxu1  ;;  %v2104_v17 = vadd.f32 %v2103_v13, %v1922_v21  ;;  %v2036_v39 = vadd.f32 %v2035_v35, %v1923_v23  ;;  %v1840_v45 = vadd.f32 %v1839_v41, %v2930_v47  ;;  %v1929_v35 = vmul.f32 %v2975_v20, %v2975_v20 }
 0x149   : > { %1674 = vst [vmem:[%s2680_s13 + $0x168] sm:$0xff] %v3129_v3  ;;  %1738 = vst [vmem:[%s2680_s13 + $0x368] sm:$0xff] %v3131_v5  ;;  %v1772_v23 = vadd.f32 %v1771_v19, %v2942_v40  ;;  %v1932_v41 = vmul.f32 %v3017_v57, %v3017_v57 }
 0x14a   : > { %v3143_v7 = vpop.f32.mrf.mxu0  ;;  %v3145_v9 = vpop.f32.mrf.mxu1  ;;  %v2105_v21 = vadd.f32 %v2104_v17, %v1924_v25  ;;  %v2037_v43 = vadd.f32 %v2036_v39, %v1925_v27  ;;  %v1841_v40 = vadd.f32 %v1840_v45, %v2960_v30  ;;  %v1931_v39 = vmul.f32 %v3003_v49, %v3003_v49 }
 0x14b   : > { %1675 = vst [vmem:[%s2680_s13 + $0x170] sm:$0xff] %v3143_v7  ;;  %1739 = vst [vmem:[%s2680_s13 + $0x370] sm:$0xff] %v3145_v9  ;;  %v1773_v27 = vadd.f32 %v1772_v23, %v2975_v20  ;;  %v1934_v45 = vmul.f32 %v3045_v38, %v3045_v38 }
 0x14c   : > { %v3157_v11 = vpop.f32.mrf.mxu0  ;;  %v3159_v13 = vpop.f32.mrf.mxu1  ;;  %v2106_v25 = vadd.f32 %v2105_v21, %v1926_v29  ;;  %v2038_v47 = vadd.f32 %v2037_v43, %v1927_v31  ;;  %v1842_v20 = vadd.f32 %v1841_v40, %v2989_v48  ;;  %v1933_v43 = vmul.f32 %v3031_v26, %v3031_v26 }
 0x14d   : > { %1676 = vst [vmem:[%s2680_s13 + $0x178] sm:$0xff] %v3157_v11  ;;  %1740 = vst [vmem:[%s2680_s13 + $0x378] sm:$0xff] %v3159_v13  ;;  %v1774_v31 = vadd.f32 %v1773_v27, %v3003_v49  ;;  %v1936_v40 = vmul.f32 %v3073_v34, %v3073_v34 }
 0x14e   : > { %v3171_v15 = vpop.f32.mrf.mxu0  ;;  %v3173_v17 = vpop.f32.mrf.mxu1  ;;  %v2107_v29 = vadd.f32 %v2106_v25, %v1928_v33  ;;  %v2039_v30 = vadd.f32 %v2038_v47, %v1929_v35  ;;  %v1843_v49 = vadd.f32 %v1842_v20, %v3017_v57  ;;  %v1935_v47 = vmul.f32 %v3059_v36, %v3059_v36 }
 0x14f   : > { %1677 = vst [vmem:[%s2680_s13 + $0x180] sm:$0xff] %v3171_v15  ;;  %1741 = vst [vmem:[%s2680_s13 + $0x380] sm:$0xff] %v3173_v17  ;;  %v1775_v35 = vadd.f32 %v1774_v31, %v3031_v26  ;;  %v1938_v20 = vmul.f32 %v3101_v59, %v3101_v59 }
 0x150   : > { %v3185_v19 = vpop.f32.mrf.mxu0  ;;  %v3187_v21 = vpop.f32.mrf.mxu1  ;;  %v2108_v33 = vadd.f32 %v2107_v29, %v1930_v37  ;;  %v2040_v48 = vadd.f32 %v2039_v30, %v1931_v39  ;;  %v1844_v26 = vadd.f32 %v1843_v49, %v3045_v38  ;;  %v1937_v30 = vmul.f32 %v3087_v51, %v3087_v51 }
 0x151   : > { %1678 = vst [vmem:[%s2680_s13 + $0x188] sm:$0xff] %v3185_v19  ;;  %1742 = vst [vmem:[%s2680_s13 + $0x388] sm:$0xff] %v3187_v21  ;;  %v1776_v39 = vadd.f32 %v1775_v35, %v3059_v36  ;;  %v1940_v49 = vmul.f32 %v3129_v3, %v3129_v3 }
 0x152   : > { %v3199_v23 = vpop.f32.mrf.mxu0  ;;  %v3201_v25 = vpop.f32.mrf.mxu1  ;;  %v2109_v37 = vadd.f32 %v2108_v33, %v1932_v41  ;;  %v2041_v57 = vadd.f32 %v2040_v48, %v1933_v43  ;;  %v1845_v38 = vadd.f32 %v1844_v26, %v3073_v34  ;;  %v1939_v48 = vmul.f32 %v3115_v63, %v3115_v63 }
 0x153   : > { %1679 = vst [vmem:[%s2680_s13 + $0x190] sm:$0xff] %v3199_v23  ;;  %1743 = vst [vmem:[%s2680_s13 + $0x390] sm:$0xff] %v3201_v25  ;;  %v1777_v36 = vadd.f32 %v1776_v39, %v3087_v51  ;;  %v1942_v26 = vmul.f32 %v3157_v11, %v3157_v11 }
 0x154   : > { %v3213_v27 = vpop.f32.mrf.mxu0  ;;  %v3215_v29 = vpop.f32.mrf.mxu1  ;;  %v2110_v41 = vadd.f32 %v2109_v37, %v1934_v45  ;;  %v2042_v43 = vadd.f32 %v2041_v57, %v1935_v47  ;;  %v1846_v34 = vadd.f32 %v1845_v38, %v3101_v59  ;;  %v1941_v57 = vmul.f32 %v3143_v7, %v3143_v7 }
 0x155   : > { %1680 = vst [vmem:[%s2680_s13 + $0x198] sm:$0xff] %v3213_v27  ;;  %1744 = vst [vmem:[%s2680_s13 + $0x398] sm:$0xff] %v3215_v29  ;;  %v1778_v51 = vadd.f32 %v1777_v36, %v3115_v63  ;;  %v1944_v38 = vmul.f32 %v3185_v19, %v3185_v19 }
 0x156   : > { %v1053_v31 = vpop.f32.mrf.mxu0  ;;  %v3227_v33 = vpop.f32.mrf.mxu1  ;;  %v2111_v45 = vadd.f32 %v2110_v41, %v1936_v40  ;;  %v2043_v47 = vadd.f32 %v2042_v43, %v1937_v30  ;;  %v1847_v59 = vadd.f32 %v1846_v34, %v3129_v3  ;;  %v1943_v43 = vmul.f32 %v3171_v15, %v3171_v15 }
 0x157   : > { %1681 = vst [vmem:[%s2680_s13 + $0x1a0] sm:$0xff] %v1053_v31  ;;  %1745 = vst [vmem:[%s2680_s13 + $0x3a0] sm:$0xff] %v3227_v33  ;;  %v1779_v63 = vadd.f32 %v1778_v51, %v3143_v7  ;;  %v1946_v34 = vmul.f32 %v3213_v27, %v3213_v27 }
 0x158   : > { %v1055_v35 = vpop.f32.mrf.mxu0  ;;  %v3238_v37 = vpop.f32.mrf.mxu1  ;;  %v2112_v40 = vadd.f32 %v2111_v45, %v1938_v20  ;;  %v2044_v30 = vadd.f32 %v2043_v47, %v1939_v48  ;;  %v1848_v3 = vadd.f32 %v1847_v59, %v3157_v11  ;;  %v1945_v47 = vmul.f32 %v3199_v23, %v3199_v23 }
 0x159   : > { %3587 = vst [vmem:[#allocation20_spill] sm:$0xff] %v3238_v37  ;;  %1682 = vst [vmem:[%s2680_s13 + $0x1a8] sm:$0xff] %v1055_v35  ;;  %v1780_v7 = vadd.f32 %v1779_v63, %v3171_v15  ;;  %v1948_v63 = vmul.f32 %v1055_v35, %v1055_v35 }
 0x15a   : > { %1746 = vst [vmem:[%s2680_s13 + $0x3a8] sm:$0xff] %v3238_v37  ;;  %v1057_v39 = vpop.f32.mrf.mxu0  ;;  %v3249_v41 = vpop.f32.mrf.mxu1  ;;  %v2113_v20 = vadd.f32 %v2112_v40, %v1940_v49  ;;  %v2045_v48 = vadd.f32 %v2044_v30, %v1941_v57  ;;  %v1849_v11 = vadd.f32 %v1848_v3, %v3185_v19  ;;  %v1947_v30 = vmul.f32 %v1053_v31, %v1053_v31 }
 0x15b   : > { %3588 = vst [vmem:[#allocation21_spill] sm:$0xff] %v3249_v41  ;;  %1683 = vst [vmem:[%s2680_s13 + $0x1b0] sm:$0xff] %v1057_v39  ;;  %v1781_v15 = vadd.f32 %v1780_v7, %v3199_v23 }
 0x15c   : > { %1747 = vst [vmem:[%s2680_s13 + $0x3b0] sm:$0xff] %v3249_v41  ;;  %v1059_v36 = vpop.f32.mrf.mxu0  ;;  %v3260_v45 = vpop.f32.mrf.mxu1  ;;  %v2114_v49 = vadd.f32 %v2113_v20, %v1942_v26  ;;  %v2046_v57 = vadd.f32 %v2045_v48, %v1943_v43  ;;  %v1850_v41 = vadd.f32 %v1849_v11, %v3213_v27  ;;  %v1949_v43 = vmul.f32 %v1057_v39, %v1057_v39 }
 0x15d   : > { %3589 = vst [vmem:[#allocation22_spill] sm:$0xff] %v3260_v45  ;;  %1684 = vst [vmem:[%s2680_s13 + $0x1b8] sm:$0xff] %v1059_v36  ;;  %v1782_v37 = vadd.f32 %v1781_v15, %v1053_v31  ;;  %v1950_v23 = vmul.f32 %v1059_v36, %v1059_v36 }
 0x15e   : > { %1748 = vst [vmem:[%s2680_s13 + $0x3b8] sm:$0xff] %v3260_v45  ;;  %v1063_v51 = vpop.f32.mrf.mxu0  ;;  %v3271_v40 = vpop.f32.mrf.mxu1  ;;  %v2115_v59 = vadd.f32 %v2114_v49, %v1944_v38  ;;  %v2047_v45 = vadd.f32 %v2046_v57, %v1945_v47  ;;  %v1851_v7 = vadd.f32 %v1850_v41, %v1055_v35 }
 0x15f   : > { %3590 = vst [vmem:[#allocation23_spill] sm:$0xff] %v3271_v40  ;;  %1685 = vst [vmem:[%s2680_s13 + $0x1c0] sm:$0xff] %v1063_v51  ;;  %v1783_v49 = vadd.f32 %v1782_v37, %v1057_v39 }
 0x160   : > { %1749 = vst [vmem:[%s2680_s13 + $0x3c0] sm:$0xff] %v3271_v40  ;;  %v1065_v26 = vpop.f32.mrf.mxu0  ;;  %v3278_v20 = vpop.f32.mrf.mxu1  ;;  %v2116_v19 = vadd.f32 %v2115_v59, %v1946_v34  ;;  %v2048_v38 = vadd.f32 %v2047_v45, %v1947_v30  ;;  %v1951_v40 = vmul.f32 %v1063_v51, %v1063_v51  ;;  %v1852_v11 = vadd.f32 %v1851_v7, %v1059_v36 }
 0x161   : > { %1686 = vst [vmem:[%s2680_s13 + $0x1c8] sm:$0xff] %v1065_v26  ;;  %1750 = vst [vmem:[%s2680_s13 + $0x3c8] sm:$0xff] %v3278_v20  ;;  %v1952_v31 = vmul.f32 %v1065_v26, %v1065_v26  ;;  %v1784_v15 = vadd.f32 %v1783_v49, %v1063_v51 }
 0x162   : > { %v1067_v48 = vpop.f32.mrf.mxu0  ;;  %v3284_v3 = vpop.f32.mrf.mxu1  ;;  %v2117_v27 = vadd.f32 %v2116_v19, %v1948_v63  ;;  %v2049_v34 = vadd.f32 %v2048_v38, %v1949_v43  ;;  %v1853_v30 = vadd.f32 %v1852_v11, %v1065_v26 }
 0x163   : > { %1687 = vst [vmem:[%s2680_s13 + $0x1d0] sm:$0xff] %v1067_v48  ;;  %1751 = vst [vmem:[%s2680_s13 + $0x3d0] sm:$0xff] %v3284_v3  ;;  %v1953_v59 = vmul.f32 %v1067_v48, %v1067_v48  ;;  %v1785_v63 = vadd.f32 %v1784_v15, %v1067_v48 }
 0x164   : > { %v1069_v47 = vpop.f32.mrf.mxu0  ;;  %v3289_v57 = vpop.f32.mrf.mxu1  ;;  %v2118_v35 = vadd.f32 %v2117_v27, %v1950_v23  ;;  %v2050_v45 = vadd.f32 %v2049_v34, %v1951_v40 }
 0x165   : > { %1688 = vst [vmem:[%s2680_s13 + $0x1d8] sm:$0xff] %v1069_v47  ;;  %1752 = vst [vmem:[%s2680_s13 + $0x3d8] sm:$0xff] %v3289_v57  ;;  %v1954_v37 = vmul.f32 %v1069_v47, %v1069_v47  ;;  %v1854_v38 = vadd.f32 %v1853_v30, %v1069_v47  ;;  %v1959_v47 = vmul.f32 %v2684_v50, %v2684_v50 }
 0x166   : > { %v1073_v39 = vpop.f32.mrf.mxu0  ;;  %v3294_v41 = vpop.f32.mrf.mxu1  ;;  %v2119_v36 = vadd.f32 %v2118_v35, %v1952_v31  ;;  %v2051_v23 = vadd.f32 %v2050_v45, %v1953_v59 }
 0x167   : > { %1689 = vst [vmem:[%s2680_s13 + $0x1e0] sm:$0xff] %v1073_v39  ;;  %v1955_v19 = vmul.f32 %v1073_v39, %v1073_v39  ;;  %1753 = vst [vmem:[%s2680_s13 + $0x3e0] sm:$0xff] %v3294_v41  ;;  %v1786_v7 = vadd.f32 %v1785_v63, %v1073_v39  ;;  %v1960_v63 = vmul.f32 %v2692_v52, %v2692_v52 }
 0x168   : > { %v1075_v51 = vpop.f32.mrf.mxu0  ;;  %v3299_v43 = vpop.f32.mrf.mxu1  ;;  %v2120_v40 = vadd.f32 %v2119_v36, %v1954_v37 }
 0x169   : > { %1690 = vst [vmem:[%s2680_s13 + $0x1e8] sm:$0xff] %v1075_v51  ;;  %v1956_v49 = vmul.f32 %v1075_v51, %v1075_v51  ;;  %1754 = vst [vmem:[%s2680_s13 + $0x3e8] sm:$0xff] %v3299_v43  ;;  %v2052_v27 = vadd.f32 %v2051_v23, %v1955_v19  ;;  %v1855_v34 = vadd.f32 %v1854_v38, %v1075_v51 }
 0x16a   : > { %v1077_v26 = vpop.f32.mrf.mxu0  ;;  %v3304_v48 = vpop.f32.mrf.mxu1  ;;  %v1961_v19 = vmul.f32 %v2700_v54, %v2700_v54 }
 0x16b   : > { %1691 = vst [vmem:[%s2680_s13 + $0x1f0] sm:$0xff] %v1077_v26  ;;  %v1787_v31 = vadd.f32 %v1786_v7, %v1077_v26  ;;  %v1957_v11 = vmul.f32 %v1077_v26, %v1077_v26  ;;  %1755 = vst [vmem:[%s2680_s13 + $0x3f0] sm:$0xff] %v3304_v48  ;;  %v2121_v15 = vadd.f32 %v2120_v40, %v1956_v49 }
 0x16c   : > { %v1079_v59 = vpop.f32.mrf.mxu0  ;;  %v3311_v35 = vpop.f32.mrf.mxu1  ;;  %v1963_v7 = vmul.f32 %v2716_v58, %v2716_v58 }
 0x16d   : > { %v1788_v37 = vadd.f32 %v1787_v31, %v2684_v50  ;;  %v2053_v39 = vadd.f32 %v2052_v27, %v1957_v11  ;;  %1692 = vst [vmem:[%s2680_s13 + $0x1f8] sm:$0xff] %v1079_v59  ;;  %v1856_v45 = vadd.f32 %v1855_v34, %v1079_v59  ;;  %v1958_v30 = vmul.f32 %v1079_v59, %v1079_v59 }
 0x16e   : > { %1756 = vst [vmem:[%s2680_s13 + $0x3f8] sm:$0xff] %v3311_v35  ;;  %v1962_v50 = vmul.f32 %v2708_v56, %v2708_v56  ;;  %v1964_v34 = vmul.f32 %v2724_v60, %v2724_v60 }
 0x16f   : > { %v1789_v36 = vadd.f32 %v1788_v37, %v2700_v54  ;;  %v2054_v51 = vadd.f32 %v2053_v39, %v1959_v47  ;;  %v1857_v23 = vadd.f32 %v1856_v45, %v2692_v52  ;;  %v2122_v38 = vadd.f32 %v2121_v15, %v1958_v30 }
 0x170   : > { %v1965_v54 = vmul.f32 %v2732_v62, %v2732_v62  ;;  %v1966_v15 = vmul.f32 %v2740_v0, %v2740_v0  ;;  %v1968_v45 = vmul.f32 %v2756_v4, %v2756_v4 }
 0x171   : > { %v1790_v49 = vadd.f32 %v1789_v36, %v2716_v58  ;;  %v2055_v40 = vadd.f32 %v2054_v51, %v1961_v19  ;;  %v1858_v26 = vadd.f32 %v1857_v23, %v2708_v56  ;;  %v2123_v27 = vadd.f32 %v2122_v38, %v1960_v63 }
 0x172   : > { %v1967_v58 = vmul.f32 %v2748_v2, %v2748_v2  ;;  %v1970_v36 = vmul.f32 %v2772_v8, %v2772_v8 }
 0x173   : > { %v1791_v52 = vadd.f32 %v1790_v49, %v2732_v62  ;;  %v2056_v31 = vadd.f32 %v2055_v40, %v1963_v7  ;;  %v1859_v11 = vadd.f32 %v1858_v26, %v2724_v60  ;;  %v2124_v47 = vadd.f32 %v2123_v27, %v1962_v50 }
 0x174   : > { %v1969_v62 = vmul.f32 %v2764_v6, %v2764_v6  ;;  %v1972_v50 = vmul.f32 %v2788_v12, %v2788_v12  ;;  %v1974_v26 = vmul.f32 %v2804_v16, %v2804_v16 }
 0x175   : > { %v1792_v56 = vadd.f32 %v1791_v52, %v2748_v2  ;;  %v2057_v59 = vadd.f32 %v2056_v31, %v1965_v54  ;;  %v1860_v37 = vadd.f32 %v1859_v11, %v2740_v0  ;;  %v2125_v39 = vadd.f32 %v2124_v47, %v1964_v34  ;;  %v3591_v52 = vld [vmem:[#allocation3_spill] sm:$0xff] }
 0x176   : > { %v1971_v2 = vmul.f32 %v2780_v10, %v2780_v10  ;;  %v1976_v31 = vmul.f32 %v3591_v52, %v3591_v52 }
 0x177   : > { %v1793_v60 = vadd.f32 %v1792_v56, %v2764_v6  ;;  %v2058_v30 = vadd.f32 %v2057_v59, %v1967_v58  ;;  %v1861_v63 = vadd.f32 %v1860_v37, %v2756_v4  ;;  %v2126_v19 = vadd.f32 %v2125_v39, %v1966_v15  ;;  %v3593_v56 = vld [vmem:[#allocation5_spill] sm:$0xff]  ;;  %v3594_v37 = vld [vmem:[#allocation6_spill] sm:$0xff] }
 0x178   : > { %v1973_v6 = vmul.f32 %v2796_v14, %v2796_v14  ;;  %v1978_v59 = vmul.f32 %v3593_v56, %v3593_v56 }
 0x179   : > { %v1794_v0 = vadd.f32 %v1793_v60, %v2780_v10  ;;  %v2059_v51 = vadd.f32 %v2058_v30, %v1969_v62  ;;  %v1862_v23 = vadd.f32 %v1861_v63, %v2772_v8  ;;  %v2127_v38 = vadd.f32 %v2126_v19, %v1968_v45  ;;  %v3595_v60 = vld [vmem:[#allocation7_spill] sm:$0xff]  ;;  %v3596_v63 = vld [vmem:[#allocation8_spill] sm:$0xff] }
 0x17a   : > { %v1975_v10 = vmul.f32 %v2812_v18, %v2812_v18  ;;  %v1980_v30 = vmul.f32 %v3595_v60, %v3595_v60  ;;  %v1981_v19 = vmul.f32 %v3596_v63, %v3596_v63 }
 0x17b   : > { %v1795_v4 = vadd.f32 %v1794_v0, %v2796_v14  ;;  %v2060_v7 = vadd.f32 %v2059_v51, %v1971_v2  ;;  %v1863_v49 = vadd.f32 %v1862_v23, %v2788_v12  ;;  %v2128_v40 = vadd.f32 %v2127_v38, %v1970_v36  ;;  %v3592_v14 = vld [vmem:[#allocation4_spill] sm:$0xff]  ;;  %v3597_v23 = vld [vmem:[#allocation9_spill] sm:$0xff] }
 0x17c   : > { %v1977_v11 = vmul.f32 %v3592_v14, %v3592_v14  ;;  %v1982_v38 = vmul.f32 %v3597_v23, %v3597_v23 }
 0x17d   : > { %v2061_v8 = vadd.f32 %v2060_v7, %v1973_v6  ;;  %v1864_v27 = vadd.f32 %v1863_v49, %v2804_v16  ;;  %v2129_v34 = vadd.f32 %v2128_v40, %v1972_v50  ;;  %v1796_v54 = vadd.f32 %v1795_v4, %v2812_v18  ;;  %v3598_v50 = vld [vmem:[#allocation10_spill] sm:$0xff] }
 0x17e   : > { %v1979_v16 = vmul.f32 %v3594_v37, %v3594_v37  ;;  %v1983_v6 = vmul.f32 %v3598_v50, %v3598_v50 }
 0x17f   : > { %v1865_v12 = vadd.f32 %v1864_v27, %v3591_v52  ;;  %v2130_v47 = vadd.f32 %v2129_v34, %v1974_v26  ;;  %v1797_v15 = vadd.f32 %v1796_v54, %v3592_v14  ;;  %v2062_v58 = vadd.f32 %v2061_v8, %v1975_v10  ;;  %v3599_v26 = vld [vmem:[#allocation11_spill] sm:$0xff]  ;;  %v3600_v8 = vld [vmem:[#allocation12_spill] sm:$0xff]  ;;  %v3601_v14 = vld [vmem:[#allocation13_spill] sm:$0xff] }
 0x180   : > { %v1984_v10 = vmul.f32 %v3599_v26, %v3599_v26  ;;  %v1985_v27 = vmul.f32 %v3600_v8, %v3600_v8 }
 0x181   : > { %v2131_v39 = vadd.f32 %v2130_v47, %v1976_v31  ;;  %v1798_v18 = vadd.f32 %v1797_v15, %v3594_v37  ;;  %v2063_v45 = vadd.f32 %v2062_v58, %v1977_v11  ;;  %v1866_v62 = vadd.f32 %v1865_v12, %v3593_v56  ;;  %v3602_v12 = vld [vmem:[#allocation14_spill] sm:$0xff]  ;;  %v3603_v37 = vld [vmem:[#allocation15_spill] sm:$0xff] }
 0x182   : > { %v1986_v11 = vmul.f32 %v3601_v14, %v3601_v14  ;;  %v1987_v47 = vmul.f32 %v3602_v12, %v3602_v12 }
 0x183   : > { %v1799_v36 = vadd.f32 %v1798_v18, %v3596_v63  ;;  %v2064_v2 = vadd.f32 %v2063_v45, %v1979_v16  ;;  %v1867_v0 = vadd.f32 %v1866_v62, %v3595_v60  ;;  %v2132_v51 = vadd.f32 %v2131_v39, %v1978_v59  ;;  %v3604_v39 = vld [vmem:[#allocation16_spill] sm:$0xff]  ;;  %v3605_v63 = vld [vmem:[#allocation17_spill] sm:$0xff] }
 0x184   : > { %v1988_v16 = vmul.f32 %v3603_v37, %v3603_v37  ;;  %v1989_v18 = vmul.f32 %v3604_v39, %v3604_v39 }
 0x185   : > { %v1800_v4 = vadd.f32 %v1799_v36, %v3598_v50  ;;  %v2065_v7 = vadd.f32 %v2064_v2, %v1981_v19  ;;  %v1868_v49 = vadd.f32 %v1867_v0, %v3597_v23  ;;  %v2133_v40 = vadd.f32 %v2132_v51, %v1980_v30  ;;  %v3606_v36 = vld [vmem:[#allocation18_spill] sm:$0xff]  ;;  %v3607_v50 = vld [vmem:[#allocation19_spill] sm:$0xff] }
 0x186   : > { %v1990_v19 = vmul.f32 %v3605_v63, %v3605_v63  ;;  %v1991_v2 = vmul.f32 %v3606_v36, %v3606_v36 }
 0x187   : > { %v1801_v34 = vadd.f32 %v1800_v4, %v3600_v8  ;;  %v2066_v54 = vadd.f32 %v2065_v7, %v1983_v6  ;;  %v1869_v52 = vadd.f32 %v1868_v49, %v3599_v26  ;;  %v2134_v31 = vadd.f32 %v2133_v40, %v1982_v38 }
 0x188   : > { %v1992_v6 = vmul.f32 %v3607_v50, %v3607_v50  ;;  %v1993_v4 = vmul.f32 %v2977_v42, %v2977_v42  ;;  %v1995_v8 = vmul.f32 %v3005_v53, %v3005_v53 }
 0x189   : > { %v1802_v15 = vadd.f32 %v1801_v34, %v3602_v12  ;;  %v2067_v58 = vadd.f32 %v2066_v54, %v1985_v27  ;;  %v1870_v56 = vadd.f32 %v1869_v52, %v3601_v14  ;;  %v2135_v59 = vadd.f32 %v2134_v31, %v1984_v10 }
 0x18a   : > { %v1994_v10 = vmul.f32 %v2991_v28, %v2991_v28  ;;  %v1996_v31 = vmul.f32 %v3019_v44, %v3019_v44 }
 0x18b   : > { %v1803_v45 = vadd.f32 %v1802_v15, %v3604_v39  ;;  %v2068_v62 = vadd.f32 %v2067_v58, %v1987_v47  ;;  %v1871_v60 = vadd.f32 %v1870_v56, %v3603_v37  ;;  %v2136_v30 = vadd.f32 %v2135_v59, %v1986_v11 }
 0x18c   : > { %v1998_v15 = vmul.f32 %v3047_v22, %v3047_v22  ;;  %v2000_v37 = vmul.f32 %v3075_v32, %v3075_v32 }
 0x18d   : > { %v1804_v0 = vadd.f32 %v1803_v45, %v3606_v36  ;;  %v2069_v51 = vadd.f32 %v2068_v62, %v1989_v18  ;;  %v1872_v23 = vadd.f32 %v1871_v60, %v3605_v63  ;;  %v2137_v38 = vadd.f32 %v2136_v30, %v1988_v16 }
 0x18e   : > { %v2002_v45 = vmul.f32 %v3103_v61, %v3103_v61  ;;  %v2004_v63 = vmul.f32 %v3131_v5, %v3131_v5 }
 0x18f   : > { %v1805_v7 = vadd.f32 %v1804_v0, %v2977_v42  ;;  %v2070_v49 = vadd.f32 %v2069_v51, %v1991_v2  ;;  %v1873_v40 = vadd.f32 %v1872_v23, %v3607_v50  ;;  %v2138_v26 = vadd.f32 %v2137_v38, %v1990_v19 }
 0x190   : > { %v1997_v42 = vmul.f32 %v3033_v24, %v3033_v24  ;;  %v2006_v0 = vmul.f32 %v3159_v13, %v3159_v13  ;;  %v2008_v50 = vmul.f32 %v3187_v21, %v3187_v21 }
 0x191   : > { %v2071_v27 = vadd.f32 %v2070_v49, %v1993_v4  ;;  %v1874_v34 = vadd.f32 %v1873_v40, %v2991_v28  ;;  %v2139_v54 = vadd.f32 %v2138_v26, %v1992_v6  ;;  %v1806_v52 = vadd.f32 %v1805_v7, %v3005_v53 }
 0x192   : > { %v1999_v28 = vmul.f32 %v3061_v46, %v3061_v46  ;;  %v2010_v49 = vmul.f32 %v3215_v29, %v3215_v29 }
 0x193   : > { %v2140_v14 = vadd.f32 %v2139_v54, %v1994_v10  ;;  %v2072_v11 = vadd.f32 %v2071_v27, %v1995_v8  ;;  %v1875_v12 = vadd.f32 %v1874_v34, %v3019_v44  ;;  %v1807_v47 = vadd.f32 %v1806_v52, %v3033_v24  ;;  %v3608_v8 = vld [vmem:[#allocation20_spill] sm:$0xff]  ;;  %v3609_v34 = vld [vmem:[#allocation21_spill] sm:$0xff] }
 0x194   : > { %v2001_v44 = vmul.f32 %v3089_v55, %v3089_v55  ;;  %v2012_v27 = vmul.f32 %v3608_v8, %v3608_v8 }
 0x195   : > { %v2141_v58 = vadd.f32 %v2140_v14, %v1996_v31  ;;  %v2073_v53 = vadd.f32 %v2072_v11, %v1997_v42  ;;  %v1876_v56 = vadd.f32 %v1875_v12, %v3047_v22  ;;  %v1808_v59 = vadd.f32 %v1807_v47, %v3061_v46  ;;  %v3610_v42 = vld [vmem:[#allocation22_spill] sm:$0xff]  ;;  %v3611_v11 = vld [vmem:[#allocation23_spill] sm:$0xff] }
 0x196   : > { %v2003_v22 = vmul.f32 %v3117_v1, %v3117_v1  ;;  %v2014_v14 = vmul.f32 %v3610_v42, %v3610_v42 }
 0x197   : > { %v2142_v16 = vadd.f32 %v2141_v58, %v1998_v15  ;;  %v2074_v24 = vadd.f32 %v2073_v53, %v1999_v28  ;;  %v1877_v39 = vadd.f32 %v1876_v56, %v3075_v32  ;;  %v1809_v18 = vadd.f32 %v1808_v59, %v3089_v55 }
 0x198   : > { %v2005_v32 = vmul.f32 %v3145_v9, %v3145_v9  ;;  %v2016_v28 = vmul.f32 %v3278_v20, %v3278_v20  ;;  %v2017_v58 = vmul.f32 %v3284_v3, %v3284_v3 }
 0x199   : > { %v2143_v62 = vadd.f32 %v2142_v16, %v2000_v37  ;;  %v2075_v46 = vadd.f32 %v2074_v24, %v2001_v44  ;;  %v1878_v60 = vadd.f32 %v1877_v39, %v3103_v61  ;;  %v1810_v30 = vadd.f32 %v1809_v18, %v3117_v1 }
 0x19a   : > { %v2007_v61 = vmul.f32 %v3173_v17, %v3173_v17  ;;  %v2018_v44 = vmul.f32 %v3289_v57, %v3289_v57  ;;  %v2019_v16 = vmul.f32 %v3294_v41, %v3294_v41 }
 0x19b   : > { %v2144_v19 = vadd.f32 %v2143_v62, %v2002_v45  ;;  %v2076_v55 = vadd.f32 %v2075_v46, %v2003_v22  ;;  %v1879_v36 = vadd.f32 %v1878_v60, %v3131_v5  ;;  %v1811_v2 = vadd.f32 %v1810_v30, %v3145_v9 }
 0x19c   : > { %v2009_v5 = vmul.f32 %v3201_v25, %v3201_v25  ;;  %v2020_v22 = vmul.f32 %v3299_v43, %v3299_v43  ;;  %v2022_v30 = vmul.f32 %v3311_v35, %v3311_v35 }
 0x19d   : > { %v2145_v51 = vadd.f32 %v2144_v19, %v2004_v63  ;;  %v2077_v1 = vadd.f32 %v2076_v55, %v2005_v32  ;;  %v1880_v23 = vadd.f32 %v1879_v36, %v3159_v13  ;;  %v1812_v38 = vadd.f32 %v1811_v2, %v3173_v17 }
 0x19e   : > { %v2011_v13 = vmul.f32 %v3227_v33, %v3227_v33 }
 0x19f   : > { %v2146_v6 = vadd.f32 %v2145_v51, %v2006_v0  ;;  %v2078_v9 = vadd.f32 %v2077_v1, %v2007_v61  ;;  %v1881_v4 = vadd.f32 %v1880_v23, %v3187_v21  ;;  %v1813_v7 = vadd.f32 %v1812_v38, %v3201_v25 }
 0x1a0   : > { %v2013_v21 = vmul.f32 %v3609_v34, %v3609_v34 }
 0x1a1   : > { %v2147_v40 = vadd.f32 %v2146_v6, %v2008_v50  ;;  %v2079_v17 = vadd.f32 %v2078_v9, %v2009_v5  ;;  %v1882_v26 = vadd.f32 %v1881_v4, %v3215_v29  ;;  %v1814_v10 = vadd.f32 %v1813_v7, %v3227_v33 }
 0x1a2   : > { %v2015_v29 = vmul.f32 %v3611_v11, %v3611_v11 }
 0x1a3   : > { %v2148_v54 = vadd.f32 %v2147_v40, %v2010_v49  ;;  %v2080_v25 = vadd.f32 %v2079_v17, %v2011_v13  ;;  %v1883_v52 = vadd.f32 %v1882_v26, %v3608_v8  ;;  %v1815_v31 = vadd.f32 %v1814_v10, %v3609_v34 }
 0x1a5   : > { %v2149_v12 = vadd.f32 %v2148_v54, %v2012_v27  ;;  %v2081_v33 = vadd.f32 %v2080_v25, %v2013_v21  ;;  %v1884_v47 = vadd.f32 %v1883_v52, %v3610_v42  ;;  %v1816_v15 = vadd.f32 %v1815_v31, %v3611_v11 }
 0x1a7   : > { %v2150_v53 = vadd.f32 %v2149_v12, %v2014_v14  ;;  %v2082_v56 = vadd.f32 %v2081_v33, %v2015_v29  ;;  %v1885_v59 = vadd.f32 %v1884_v47, %v3278_v20  ;;  %v1817_v37 = vadd.f32 %v1816_v15, %v3284_v3 }
 0x1a8   : > { %v2021_v20 = vmul.f32 %v3304_v48, %v3304_v48 }
 0x1a9   : > { %v2151_v24 = vadd.f32 %v2150_v53, %v2016_v28  ;;  %v2083_v39 = vadd.f32 %v2082_v56, %v2017_v58  ;;  %v1886_v18 = vadd.f32 %v1885_v59, %v3289_v57  ;;  %v1818_v45 = vadd.f32 %v1817_v37, %v3294_v41 }
 0x1ab   : > { %v2152_v3 = vadd.f32 %v2151_v24, %v2018_v44  ;;  %v2084_v62 = vadd.f32 %v2083_v39, %v2019_v16  ;;  %v1887_v46 = vadd.f32 %v1886_v18, %v3299_v43  ;;  %v1819_v60 = vadd.f32 %v1818_v45, %v3304_v48 }
 0x1ad   : > { %v2153_v63 = vadd.f32 %v2152_v3, %v2020_v22  ;;  %v1820_v57 = vrot.slane %v1819_v60, 4  ;;  %v2085_v32 = vadd.f32 %v2084_v62, %v2021_v20  ;;  %v1888_v41 = vadd.f32 %v1887_v46, %v3311_v35 }
 0x1af   : > { %v1821_v19 = vadd.f32 %v1820_v57, %v1819_v60  ;;  %v2086_v55 = vrot.slane %v2085_v32, 4  ;;  %v1889_v36 = vrot.slane %v1888_v41, 4  ;;  %v2154_v2 = vadd.f32 %v2153_v63, %v2022_v30 }
 0x1b1   : > { %v1822_v0 = vrot.slane %v1821_v19, 2  ;;  %v2087_v61 = vadd.f32 %v2086_v55, %v2085_v32  ;;  %v1890_v51 = vadd.f32 %v1889_v36, %v1888_v41  ;;  %v2155_v43 = vrot.slane %v2154_v2, 4 }
 0x1b3   : > { %v1823_v1 = vadd.f32 %v1822_v0, %v1821_v19  ;;  %v2088_v48 = vrot.slane %v2087_v61, 2  ;;  %v1891_v23 = vrot.slane %v1890_v51, 2  ;;  %v2156_v38 = vadd.f32 %v2155_v43, %v2154_v2 }
 0x1b5   : > { %v1824_v50 = vrot.slane %v1823_v1, 1  ;;  %v2089_v5 = vadd.f32 %v2088_v48, %v2087_v61  ;;  %v1892_v6 = vadd.f32 %v1891_v23, %v1890_v51  ;;  %v2157_v9 = vrot.slane %v2156_v38, 2 }
 0x1b7   : > { %v1825_v4 = vadd.f32 %v1824_v50, %v1823_v1  ;;  %v2090_v35 = vrot.slane %v2089_v5, 1  ;;  %v1893_v7 = vrot.slane %v1892_v6, 1  ;;  %v2158_v49 = vadd.f32 %v2157_v9, %v2156_v38 }
 0x1b9   : > { %v2091_v13 = vadd.f32 %v2090_v35, %v2089_v5  ;;  %v2161_v40 = vmul.f32 0.125, %v1825_v4  ;;  %v1894_v17 = vadd.f32 %v1893_v7, %v1892_v6  ;;  %v2159_v26 = vrot.slane %v2158_v49, 1 }
 0x1bb   : > { %v2165_v10 = vmul.f32 0.125, %v2091_v13  ;;  %v2160_v8 = vadd.f32 %v2159_v26, %v2158_v49  ;;  %v2162_v27 = vmul.f32 0.125, %v1894_v17  ;;  %2163 = vst [vmem:[%s270_s19] sm:$0xff] %v2161_v40 }
 0x1bd   : > { %2164 = vst [vmem:[%s270_s19 + $0x8] sm:$0xff] %v2162_v27  ;;  %v2166_v34 = vmul.f32 0.125, %v2160_v8  ;;  %2167 = vst [vmem:[%s275_s23] sm:$0xff] %v2165_v10 }
 0x1bf   : > { %2168 = vst [vmem:[%s275_s23 + $0x8] sm:$0xff] %v2166_v34 }
 0x1c0 PF: > { %s15_s17 = sadd.s32 1, %s2507_s17   ;;  %s3612_s15 = smov %s2503_s16 }
 0x1c1   : > { %p12_p6 = scmp.ge.s32.totalorder %s15_s17, 4   ;;  %s3613_s16 = smov %s3615_s18 }
 0x1c3   :  { %14 = sbr.rel (!%p12_p6) target bundleno = 2 (0x2), region = 93 }

// kernel: residual_block_forward.6
= control target key start
LH: loop header
LB: loop body
LE: loop exit
PB: predicated region body
PF: predicated region fallthrough
CT: control target
= control target key end

     0   :  { %s2137_s15 = smov 0   ;;  %s2139_s16 = smov 0   ;;  %s2724_s0 = inlined_call_operand.vmem [shape: bf16[1024,256], index: 0, kind: input, shape index: {}]   ;;  %s2725_s1 = inlined_call_operand.vmem [shape: bf16[256,128], index: 1, kind: input, shape index: {}]   ;;  %s2726_s2 = inlined_call_operand.vmem [shape: f32[1024,128], index: 2, kind: output, shape index: {0}]   ;;  %s2727_s3 = inlined_call_operand.vmem [shape: f32[16,128], index: 3, kind: output, shape index: {1}]   ;;  %s2728_s4 = inlined_call_operand.vmem [shape: f32[16,128], index: 4, kind: output, shape index: {2}]  }
   0x1   :  { %s2141_s17 = smov 0  }
   0x2 LB: > { %s27_s18 = sadd.s32 1, %s2105_s16  ;;  %p1827_p0 = scmp.ge.s32.totalorder %s2109_s17, 1  ;;  %s2109_s17 = sphi %s2141_s17, %s15_s17   ;;  %s2105_s16 = sphi %s2139_s16, %s2730_s16   ;;  %s2101_s15 = sphi %s2137_s15, %s2729_s15  }
   0x3   : > { %p29_p1 = scmp.ge.s32.totalorder %s27_s18, 2  ;;  %p199_p2 = scmp.lt.s32.totalorder %s2109_s17, 3 }
   0x5   : > { %s2732_s18 = smov (%p29_p1, %s27_s18), 0  ;;  %p200_p3 = pnand %p1827_p0, %p199_p2 }
   0x6   : > { %s1828_s21 = sshll.u32 (!%p200_p3), %s2101_s15, 6  ;;  %p267_p5 = scmp.lt.s32.totalorder (!%p200_p3), %s2101_s15, 1 }
   0x7   : > { %203 = sbr.rel (%p200_p3) target bundleno = 477 (0x1dd), region = 28  ;;  %p245_p4 = scmp.lt.s32.totalorder (!%p200_p3), %s1828_s21, 127 }
   0xc   : > { %v1975_v0 = vld [vmem:[%s2725_s1 + $0x38] sm:$0xff]   ;;  %v2111_v1 = vmov 0   ;;  %v1976_v2 = vld [vmem:[%s2725_s1 + $0x30] sm:$0xff]   ;;  %v1977_v3 = vld [vmem:[%s2725_s1 + $0x28] sm:$0xff]   ;;  %s2734_s21 = smov (!%p245_p4, %s1828_s21), 127  ;;  %s2736_s15 = smov (!%p267_p5, %s2101_s15), 1 }
   0xd   : > { %920 = vmatprep.subr.bf16.mxu0 %v2111_v1  ;;  %1918 = vmatprep.subr.bf16.mxu1 %v2111_v1  ;;  %v1978_v4 = vld [vmem:[%s2725_s1 + $0x20] sm:$0xff]   ;;  %s1917_s28 = sshll.u32 %s2734_s21, 3  ;;  %v1979_v5 = vld [vmem:[%s2725_s1 + $0x18] sm:$0xff]   ;;  %v1980_v7 = vld [vmem:[%s2725_s1 + $0x10] sm:$0xff]   ;;  %s1833_s21 = sshll.u32 %s2736_s15, 3 }
   0xe   : > { %921 = vmatpush1.bf16.msra.mxu0 %v1975_v0  ;;  %1934 = vmatpush1.bf16.msra.mxu1 %v1975_v0  ;;  %s2189_s7 = scalar_lea.vmem %s2724_s0, %s1917_s28  ;;  %v1981_v8 = vld [vmem:[%s2725_s1 + $0x8] sm:$0xff]   ;;  %v1982_v9 = vld [vmem:[%s2725_s1] sm:$0xff]   ;;  %v1983_v11 = vld [vmem:[%s2725_s1 + $0x78] sm:$0xff]   ;;  %s2317_s13 = scalar_lea.vmem %s2726_s2, %s1917_s28 }
   0xf   : > { %922 = vmatprep.subr.bf16.mxu0 %v2111_v1  ;;  %1919 = vmatprep.subr.bf16.mxu1 %v2111_v1  ;;  %v1993_v6 = vld [vmem:[%s2189_s7 + $0x4] ss:$8 sps:$4 sm:$0xff]   ;;  %v1984_v12 = vld [vmem:[%s2725_s1 + $0x70] sm:$0xff]   ;;  %v1987_v15 = vld [vmem:[%s2725_s1 + $0x58] sm:$0xff]   ;;  %s270_s14 = scalar_lea.vmem %s2727_s3, %s1833_s21  ;;  %s274_s22 = scalar_lea.vmem %s2728_s4, %s1833_s21 }
  0x10   : > { %952 = vmatprep.mubr.bf16.mxu0 %v1993_v6  ;;  %v2017_v10 = vld [vmem:[%s2189_s7 + $0x104] ss:$8 sps:$4 sm:$0xff]   ;;  %v1988_v16 = vld [vmem:[%s2725_s1 + $0x50] sm:$0xff]   ;;  %v1991_v19 = vld [vmem:[%s2189_s7] ss:$8 sps:$4 sm:$0xff]  }
  0x11   : > { %1080 = vmatprep.mubr.bf16.mxu1 %v2017_v10  ;;  %v1985_v13 = vld [vmem:[%s2725_s1 + $0x68] sm:$0xff]   ;;  %v1986_v14 = vld [vmem:[%s2725_s1 + $0x60] sm:$0xff]   ;;  %v1994_v21 = vld [vmem:[%s2189_s7 + $0x14] ss:$8 sps:$4 sm:$0xff]  }
  0x12   : > { %923 = vmatpush1.bf16.msra.mxu0 %v1976_v2  ;;  %1935 = vmatpush1.bf16.msra.mxu1 %v1976_v2  ;;  %v1989_v17 = vld [vmem:[%s2725_s1 + $0x48] sm:$0xff]   ;;  %v1990_v18 = vld [vmem:[%s2725_s1 + $0x40] sm:$0xff]   ;;  %v2021_v22 = vld [vmem:[%s2189_s7 + $0x114] ss:$8 sps:$4 sm:$0xff]  }
  0x13   : > { %924 = vmatprep.subr.bf16.mxu0 %v2111_v1  ;;  %1920 = vmatprep.subr.bf16.mxu1 %v2111_v1  ;;  %v2015_v20 = vld [vmem:[%s2189_s7 + $0x100] ss:$8 sps:$4 sm:$0xff]   ;;  %v1996_v23 = vld [vmem:[%s2189_s7 + $0x10] ss:$8 sps:$4 sm:$0xff]   ;;  %v1997_v25 = vld [vmem:[%s2189_s7 + $0x24] ss:$8 sps:$4 sm:$0xff]  }
  0x14   : > { %v2023_v24 = vld [vmem:[%s2189_s7 + $0x110] ss:$8 sps:$4 sm:$0xff]   ;;  %v2027_v26 = vld [vmem:[%s2189_s7 + $0x124] ss:$8 sps:$4 sm:$0xff]   ;;  %v1999_v27 = vld [vmem:[%s2189_s7 + $0x20] ss:$8 sps:$4 sm:$0xff]  }
  0x15   : > { %v2029_v28 = vld [vmem:[%s2189_s7 + $0x120] ss:$8 sps:$4 sm:$0xff]   ;;  %v2000_v29 = vld [vmem:[%s2189_s7 + $0x34] ss:$8 sps:$4 sm:$0xff]   ;;  %v2002_v31 = vld [vmem:[%s2189_s7 + $0x30] ss:$8 sps:$4 sm:$0xff]  }
  0x16   : > { %925 = vmatpush1.bf16.msra.mxu0 %v1977_v3  ;;  %1936 = vmatpush1.bf16.msra.mxu1 %v1977_v3  ;;  %v2033_v30 = vld [vmem:[%s2189_s7 + $0x134] ss:$8 sps:$4 sm:$0xff]   ;;  %v2035_v32 = vld [vmem:[%s2189_s7 + $0x130] ss:$8 sps:$4 sm:$0xff]   ;;  %v2003_v33 = vld [vmem:[%s2189_s7 + $0x44] ss:$8 sps:$4 sm:$0xff]  }
  0x17   : > { %926 = vmatprep.subr.bf16.mxu0 %v2111_v1  ;;  %1921 = vmatprep.subr.bf16.mxu1 %v2111_v1  ;;  %v2039_v34 = vld [vmem:[%s2189_s7 + $0x144] ss:$8 sps:$4 sm:$0xff]   ;;  %v2005_v35 = vld [vmem:[%s2189_s7 + $0x40] ss:$8 sps:$4 sm:$0xff]   ;;  %v2006_v37 = vld [vmem:[%s2189_s7 + $0x54] ss:$8 sps:$4 sm:$0xff]  }
  0x18   : > { %v2041_v36 = vld [vmem:[%s2189_s7 + $0x140] ss:$8 sps:$4 sm:$0xff]   ;;  %v2045_v38 = vld [vmem:[%s2189_s7 + $0x154] ss:$8 sps:$4 sm:$0xff]   ;;  %v2008_v39 = vld [vmem:[%s2189_s7 + $0x50] ss:$8 sps:$4 sm:$0xff]  }
  0x19   : > { %v2047_v40 = vld [vmem:[%s2189_s7 + $0x150] ss:$8 sps:$4 sm:$0xff]   ;;  %v2009_v41 = vld [vmem:[%s2189_s7 + $0x64] ss:$8 sps:$4 sm:$0xff]   ;;  %v2011_v43 = vld [vmem:[%s2189_s7 + $0x60] ss:$8 sps:$4 sm:$0xff]  }
  0x1a   : > { %927 = vmatpush1.bf16.msra.mxu0 %v1978_v4  ;;  %1937 = vmatpush1.bf16.msra.mxu1 %v1978_v4  ;;  %v2051_v42 = vld [vmem:[%s2189_s7 + $0x164] ss:$8 sps:$4 sm:$0xff]   ;;  %v2053_v44 = vld [vmem:[%s2189_s7 + $0x160] ss:$8 sps:$4 sm:$0xff]   ;;  %v2012_v45 = vld [vmem:[%s2189_s7 + $0x74] ss:$8 sps:$4 sm:$0xff]  }
  0x1b   : > { %928 = vmatprep.subr.bf16.mxu0 %v2111_v1  ;;  %1922 = vmatprep.subr.bf16.mxu1 %v2111_v1  ;;  %v2057_v46 = vld [vmem:[%s2189_s7 + $0x174] ss:$8 sps:$4 sm:$0xff]   ;;  %v2014_v47 = vld [vmem:[%s2189_s7 + $0x70] ss:$8 sps:$4 sm:$0xff]   ;;  %v2018_v49 = vld [vmem:[%s2189_s7 + $0x84] ss:$8 sps:$4 sm:$0xff]  }
  0x1c   : > { %v2059_v48 = vld [vmem:[%s2189_s7 + $0x170] ss:$8 sps:$4 sm:$0xff]   ;;  %v2063_v50 = vld [vmem:[%s2189_s7 + $0x184] ss:$8 sps:$4 sm:$0xff]   ;;  %v2020_v51 = vld [vmem:[%s2189_s7 + $0x80] ss:$8 sps:$4 sm:$0xff]  }
  0x1d   : > { %v2065_v52 = vld [vmem:[%s2189_s7 + $0x180] ss:$8 sps:$4 sm:$0xff]   ;;  %v2024_v53 = vld [vmem:[%s2189_s7 + $0x94] ss:$8 sps:$4 sm:$0xff]   ;;  %v2026_v55 = vld [vmem:[%s2189_s7 + $0x90] ss:$8 sps:$4 sm:$0xff]  }
  0x1e   : > { %929 = vmatpush1.bf16.msra.mxu0 %v1979_v5  ;;  %1938 = vmatpush1.bf16.msra.mxu1 %v1979_v5  ;;  %v2066_v54 = vld [vmem:[%s2189_s7 + $0x194] ss:$8 sps:$4 sm:$0xff]   ;;  %v2068_v56 = vld [vmem:[%s2189_s7 + $0x190] ss:$8 sps:$4 sm:$0xff]   ;;  %v2030_v57 = vld [vmem:[%s2189_s7 + $0xa4] ss:$8 sps:$4 sm:$0xff]  }
  0x1f   : > { %930 = vmatprep.subr.bf16.mxu0 %v2111_v1  ;;  %1923 = vmatprep.subr.bf16.mxu1 %v2111_v1  ;;  %v2069_v58 = vld [vmem:[%s2189_s7 + $0x1a4] ss:$8 sps:$4 sm:$0xff]   ;;  %v2032_v59 = vld [vmem:[%s2189_s7 + $0xa0] ss:$8 sps:$4 sm:$0xff]   ;;  %v2036_v61 = vld [vmem:[%s2189_s7 + $0xb4] ss:$8 sps:$4 sm:$0xff]  }
  0x20   : > { %v2071_v60 = vld [vmem:[%s2189_s7 + $0x1a0] ss:$8 sps:$4 sm:$0xff]   ;;  %v2072_v62 = vld [vmem:[%s2189_s7 + $0x1b4] ss:$8 sps:$4 sm:$0xff]   ;;  %v2038_v63 = vld [vmem:[%s2189_s7 + $0xb0] ss:$8 sps:$4 sm:$0xff]  }
  0x21   : > { %v2074_v0 = vld [vmem:[%s2189_s7 + $0x1b0] ss:$8 sps:$4 sm:$0xff]   ;;  %v2075_v2 = vld [vmem:[%s2189_s7 + $0x1c4] ss:$8 sps:$4 sm:$0xff]   ;;  %v2044_v3 = vld [vmem:[%s2189_s7 + $0xc0] ss:$8 sps:$4 sm:$0xff]  }
  0x22   : > { %931 = vmatpush1.bf16.msra.mxu0 %v1980_v7  ;;  %1939 = vmatpush1.bf16.msra.mxu1 %v1980_v7  ;;  %v2077_v4 = vld [vmem:[%s2189_s7 + $0x1c0] ss:$8 sps:$4 sm:$0xff]   ;;  %v2048_v5 = vld [vmem:[%s2189_s7 + $0xd4] ss:$8 sps:$4 sm:$0xff]   ;;  %v2050_v7 = vld [vmem:[%s2189_s7 + $0xd0] ss:$8 sps:$4 sm:$0xff]  }
  0x23   : > { %932 = vmatprep.subr.bf16.mxu0 %v2111_v1  ;;  %1924 = vmatprep.subr.bf16.mxu1 %v2111_v1  ;;  %v2078_v6 = vld [vmem:[%s2189_s7 + $0x1d4] ss:$8 sps:$4 sm:$0xff]   ;;  %v2081_v10 = vld [vmem:[%s2189_s7 + $0x1e4] ss:$8 sps:$4 sm:$0xff]  }
  0x26   : > { %933 = vmatpush1.bf16.msra.mxu0 %v1981_v8  ;;  %1940 = vmatpush1.bf16.msra.mxu1 %v1981_v8  ;;  %v2080_v8 = vld [vmem:[%s2189_s7 + $0x1d0] ss:$8 sps:$4 sm:$0xff]  }
  0x27   : > { %934 = vmatprep.subr.bf16.mxu0 %v2111_v1  ;;  %1925 = vmatprep.subr.bf16.mxu1 %v2111_v1 }
  0x2a   : > { %935 = vmatpush1.bf16.msra.mxu0 %v1982_v9  ;;  %1941 = vmatpush1.bf16.msra.mxu1 %v1982_v9  ;;  %v2054_v9 = vld [vmem:[%s2189_s7 + $0xe4] ss:$8 sps:$4 sm:$0xff]  }
  0x2b   : > { %936 = vmatprep.subr.bf16.mxu0 %v2111_v1  ;;  %1926 = vmatprep.subr.bf16.mxu1 %v2111_v1 }
  0x2e   : > { %937 = vmatpush2.bf16.msra.mxu0 %v1983_v11  ;;  %1942 = vmatpush2.bf16.msra.mxu1 %v1983_v11  ;;  %v2056_v11 = vld [vmem:[%s2189_s7 + $0xe0] ss:$8 sps:$4 sm:$0xff]  }
  0x2f   : > { %938 = vmatprep.subr.bf16.mxu0 %v2111_v1  ;;  %1927 = vmatprep.subr.bf16.mxu1 %v2111_v1 }
  0x32   : > { %939 = vmatpush2.bf16.msra.mxu0 %v1984_v12  ;;  %1943 = vmatpush2.bf16.msra.mxu1 %v1984_v12  ;;  %v2083_v12 = vld [vmem:[%s2189_s7 + $0x1e0] ss:$8 sps:$4 sm:$0xff]  }
  0x33   : > { %940 = vmatprep.subr.bf16.mxu0 %v2111_v1  ;;  %1928 = vmatprep.subr.bf16.mxu1 %v2111_v1 }
  0x36   : > { %941 = vmatpush2.bf16.msra.mxu0 %v1985_v13  ;;  %1944 = vmatpush2.bf16.msra.mxu1 %v1985_v13  ;;  %v2060_v13 = vld [vmem:[%s2189_s7 + $0xf4] ss:$8 sps:$4 sm:$0xff]  }
  0x37   : > { %942 = vmatprep.subr.bf16.mxu0 %v2111_v1  ;;  %1929 = vmatprep.subr.bf16.mxu1 %v2111_v1 }
  0x3a   : > { %943 = vmatpush2.bf16.msra.mxu0 %v1986_v14  ;;  %1945 = vmatpush2.bf16.msra.mxu1 %v1986_v14  ;;  %v2084_v14 = vld [vmem:[%s2189_s7 + $0x1f4] ss:$8 sps:$4 sm:$0xff]  }
  0x3b   : > { %944 = vmatprep.subr.bf16.mxu0 %v2111_v1  ;;  %1930 = vmatprep.subr.bf16.mxu1 %v2111_v1 }
  0x3e   : > { %945 = vmatpush2.bf16.msra.mxu0 %v1987_v15  ;;  %1946 = vmatpush2.bf16.msra.mxu1 %v1987_v15  ;;  %v2062_v15 = vld [vmem:[%s2189_s7 + $0xf0] ss:$8 sps:$4 sm:$0xff]  }
  0x3f   : > { %946 = vmatprep.subr.bf16.mxu0 %v2111_v1  ;;  %1931 = vmatprep.subr.bf16.mxu1 %v2111_v1 }
  0x42   : > { %947 = vmatpush2.bf16.msra.mxu0 %v1988_v16  ;;  %1947 = vmatpush2.bf16.msra.mxu1 %v1988_v16  ;;  %v2086_v16 = vld [vmem:[%s2189_s7 + $0x1f0] ss:$8 sps:$4 sm:$0xff]  }
  0x43   : > { %948 = vmatprep.subr.bf16.mxu0 %v2111_v1  ;;  %1932 = vmatprep.subr.bf16.mxu1 %v2111_v1 }
  0x46   : > { %949 = vmatpush2.bf16.msra.mxu0 %v1989_v17  ;;  %1948 = vmatpush2.bf16.msra.mxu1 %v1989_v17 }
  0x47   : > { %950 = vmatprep.subr.bf16.mxu0 %v2111_v1  ;;  %1933 = vmatprep.subr.bf16.mxu1 %v2111_v1  ;;  %v2042_v1 = vld [vmem:[%s2189_s7 + $0xc4] ss:$8 sps:$4 sm:$0xff]  }
  0x4a   : > { %951 = vmatpush2.bf16.msra.mxu0 %v1990_v18  ;;  %1949 = vmatpush2.bf16.msra.mxu1 %v1990_v18 }
  0x4d   : > { %953 = vmatmul.mubr.bf16.vlgmr.msra.gmra.mxu0 %v1991_v19  ;;  %1081 = vmatmul.mubr.bf16.vlgmr.msra.gmra.mxu1 %v2015_v20 }
  0x4e   : > { %960 = vmatprep.mubr.bf16.mxu0 %v1994_v21  ;;  %1088 = vmatprep.mubr.bf16.mxu1 %v2021_v22 }
  0x55   : > { %961 = vmatmul.mubr.bf16.gmra.mxu0 %v1996_v23  ;;  %1089 = vmatmul.mubr.bf16.gmra.mxu1 %v2023_v24 }
  0x56   : > { %968 = vmatprep.mubr.bf16.mxu0 %v1997_v25  ;;  %1096 = vmatprep.mubr.bf16.mxu1 %v2027_v26 }
  0x5d   : > { %969 = vmatmul.mubr.bf16.gmra.mxu0 %v1999_v27  ;;  %1097 = vmatmul.mubr.bf16.gmra.mxu1 %v2029_v28 }
  0x5e   : > { %976 = vmatprep.mubr.bf16.mxu0 %v2000_v29  ;;  %1104 = vmatprep.mubr.bf16.mxu1 %v2033_v30 }
  0x65   : > { %977 = vmatmul.mubr.bf16.gmra.mxu0 %v2002_v31  ;;  %1105 = vmatmul.mubr.bf16.gmra.mxu1 %v2035_v32 }
  0x66   : > { %984 = vmatprep.mubr.bf16.mxu0 %v2003_v33  ;;  %1112 = vmatprep.mubr.bf16.mxu1 %v2039_v34 }
  0x6d   : > { %985 = vmatmul.mubr.bf16.gmra.mxu0 %v2005_v35  ;;  %1113 = vmatmul.mubr.bf16.gmra.mxu1 %v2041_v36 }
  0x6e   : > { %992 = vmatprep.mubr.bf16.mxu0 %v2006_v37  ;;  %1120 = vmatprep.mubr.bf16.mxu1 %v2045_v38 }
  0x75   : > { %993 = vmatmul.mubr.bf16.gmra.mxu0 %v2008_v39  ;;  %1121 = vmatmul.mubr.bf16.gmra.mxu1 %v2047_v40 }
  0x76   : > { %1000 = vmatprep.mubr.bf16.mxu0 %v2009_v41  ;;  %1128 = vmatprep.mubr.bf16.mxu1 %v2051_v42 }
  0x7d   : > { %1001 = vmatmul.mubr.bf16.gmra.mxu0 %v2011_v43  ;;  %1129 = vmatmul.mubr.bf16.gmra.mxu1 %v2053_v44 }
  0x7e   : > { %1008 = vmatprep.mubr.bf16.mxu0 %v2012_v45  ;;  %1136 = vmatprep.mubr.bf16.mxu1 %v2057_v46 }
  0x85   : > { %1009 = vmatmul.mubr.bf16.gmra.mxu0 %v2014_v47  ;;  %1137 = vmatmul.mubr.bf16.gmra.mxu1 %v2059_v48 }
  0x86   : > { %1016 = vmatprep.mubr.bf16.mxu0 %v2018_v49  ;;  %1144 = vmatprep.mubr.bf16.mxu1 %v2063_v50 }
  0x8d   : > { %1017 = vmatmul.mubr.bf16.gmra.mxu0 %v2020_v51  ;;  %1145 = vmatmul.mubr.bf16.gmra.mxu1 %v2065_v52 }
  0x8e   : > { %1024 = vmatprep.mubr.bf16.mxu0 %v2024_v53  ;;  %1152 = vmatprep.mubr.bf16.mxu1 %v2066_v54 }
  0x95   : > { %1025 = vmatmul.mubr.bf16.gmra.mxu0 %v2026_v55  ;;  %1153 = vmatmul.mubr.bf16.gmra.mxu1 %v2068_v56 }
  0x96   : > { %1032 = vmatprep.mubr.bf16.mxu0 %v2030_v57  ;;  %1160 = vmatprep.mubr.bf16.mxu1 %v2069_v58 }
  0x9d   : > { %1033 = vmatmul.mubr.bf16.gmra.mxu0 %v2032_v59  ;;  %1161 = vmatmul.mubr.bf16.gmra.mxu1 %v2071_v60 }
  0x9e   : > { %1040 = vmatprep.mubr.bf16.mxu0 %v2036_v61  ;;  %1168 = vmatprep.mubr.bf16.mxu1 %v2072_v62 }
  0xa5   : > { %1041 = vmatmul.mubr.bf16.gmra.mxu0 %v2038_v63  ;;  %1169 = vmatmul.mubr.bf16.gmra.mxu1 %v2074_v0 }
  0xa6   : > { %1048 = vmatprep.mubr.bf16.mxu0 %v2042_v1  ;;  %1176 = vmatprep.mubr.bf16.mxu1 %v2075_v2 }
  0xad   : > { %1049 = vmatmul.mubr.bf16.gmra.mxu0 %v2044_v3  ;;  %1177 = vmatmul.mubr.bf16.gmra.mxu1 %v2077_v4 }
  0xae   : > { %1056 = vmatprep.mubr.bf16.mxu0 %v2048_v5  ;;  %1184 = vmatprep.mubr.bf16.mxu1 %v2078_v6 }
  0xb5   : > { %1057 = vmatmul.mubr.bf16.gmra.mxu0 %v2050_v7  ;;  %1185 = vmatmul.mubr.bf16.gmra.mxu1 %v2080_v8 }
  0xb6   : > { %1064 = vmatprep.mubr.bf16.mxu0 %v2054_v9  ;;  %1192 = vmatprep.mubr.bf16.mxu1 %v2081_v10 }
  0xbd   : > { %1065 = vmatmul.mubr.bf16.gmra.mxu0 %v2056_v11  ;;  %1193 = vmatmul.mubr.bf16.gmra.mxu1 %v2083_v12 }
  0xbe   : > { %1072 = vmatprep.mubr.bf16.mxu0 %v2060_v13  ;;  %1200 = vmatprep.mubr.bf16.mxu1 %v2084_v14 }
  0xc5   : > { %1073 = vmatmul.mubr.bf16.gmra.mxu0 %v2062_v15  ;;  %1201 = vmatmul.mubr.bf16.gmra.mxu1 %v2086_v16 }
 0x10d   : > { %v2319_v17 = vpop.f32.mrf.mxu0  ;;  %v2321_v18 = vpop.f32.mrf.mxu1 }
 0x10e   : > { %1404 = vst [vmem:[%s2317_s13] sm:$0xff] %v2319_v17  ;;  %1436 = vst [vmem:[%s2317_s13 + $0x100] sm:$0xff] %v2321_v18 }
 0x10f   : > { %v956_v19 = vpop.f32.mrf.mxu0  ;;  %v1084_v20 = vpop.f32.mrf.mxu1 }
 0x111   : > { %v2327_v21 = vpop.f32.mrf.mxu0  ;;  %v2329_v22 = vpop.f32.mrf.mxu1 }
 0x112   : > { %1405 = vst [vmem:[%s2317_s13 + $0x8] sm:$0xff] %v2327_v21  ;;  %1437 = vst [vmem:[%s2317_s13 + $0x108] sm:$0xff] %v2329_v22  ;;  %v1538_v19 = vmul.f32 %v2327_v21, %v2327_v21 }
 0x113   : > { %v959_v23 = vpop.f32.mrf.mxu0  ;;  %v1087_v24 = vpop.f32.mrf.mxu1 }
 0x114   : > { %v1537_v24 = vmul.f32 %v2319_v17, %v2319_v17 }
 0x115   : > { %v2335_v25 = vpop.f32.mrf.mxu0  ;;  %v2337_v26 = vpop.f32.mrf.mxu1 }
 0x116   : > { %1406 = vst [vmem:[%s2317_s13 + $0x10] sm:$0xff] %v2335_v25  ;;  %1438 = vst [vmem:[%s2317_s13 + $0x110] sm:$0xff] %v2337_v26 }
 0x117   : > { %v964_v27 = vpop.f32.mrf.mxu0  ;;  %v1092_v28 = vpop.f32.mrf.mxu1 }
 0x118   : > { %v1468_v27 = vadd.f32 %v2327_v21, %v2319_v17  ;;  %v1539_v28 = vmul.f32 %v2335_v25, %v2335_v25 }
 0x119   : > { %v2343_v29 = vpop.f32.mrf.mxu0  ;;  %v2345_v30 = vpop.f32.mrf.mxu1 }
 0x11a   : > { %1407 = vst [vmem:[%s2317_s13 + $0x18] sm:$0xff] %v2343_v29  ;;  %1439 = vst [vmem:[%s2317_s13 + $0x118] sm:$0xff] %v2345_v30 }
 0x11b   : > { %v967_v31 = vpop.f32.mrf.mxu0  ;;  %v1095_v32 = vpop.f32.mrf.mxu1 }
 0x11d   : > { %v2351_v33 = vpop.f32.mrf.mxu0  ;;  %v2353_v34 = vpop.f32.mrf.mxu1 }
 0x11e   : > { %1408 = vst [vmem:[%s2317_s13 + $0x20] sm:$0xff] %v2351_v33  ;;  %1440 = vst [vmem:[%s2317_s13 + $0x120] sm:$0xff] %v2353_v34 }
 0x11f   : > { %v972_v35 = vpop.f32.mrf.mxu0  ;;  %v1100_v36 = vpop.f32.mrf.mxu1 }
 0x120   : > { %v1601_v35 = vadd.f32 %v1538_v19, %v1537_v24  ;;  %v1469_v36 = vadd.f32 %v1468_v27, %v2335_v25 }
 0x121   : > { %v2359_v37 = vpop.f32.mrf.mxu0  ;;  %v2361_v38 = vpop.f32.mrf.mxu1 }
 0x122   : > { %1409 = vst [vmem:[%s2317_s13 + $0x28] sm:$0xff] %v2359_v37  ;;  %1441 = vst [vmem:[%s2317_s13 + $0x128] sm:$0xff] %v2361_v38  ;;  %v1602_v17 = vadd.f32 %v1601_v35, %v1539_v28  ;;  %v1470_v21 = vadd.f32 %v1469_v36, %v2343_v29 }
 0x123   : > { %v975_v39 = vpop.f32.mrf.mxu0  ;;  %v1103_v40 = vpop.f32.mrf.mxu1 }
 0x124   : > { %v1540_v39 = vmul.f32 %v2343_v29, %v2343_v29 }
 0x125   : > { %v2367_v41 = vpop.f32.mrf.mxu0  ;;  %v2369_v42 = vpop.f32.mrf.mxu1 }
 0x126   : > { %1410 = vst [vmem:[%s2317_s13 + $0x30] sm:$0xff] %v2367_v41  ;;  %1442 = vst [vmem:[%s2317_s13 + $0x130] sm:$0xff] %v2369_v42 }
 0x127   : > { %v980_v43 = vpop.f32.mrf.mxu0  ;;  %v1108_v44 = vpop.f32.mrf.mxu1 }
 0x128   : > { %v1541_v44 = vmul.f32 %v2351_v33, %v2351_v33 }
 0x129   : > { %v2375_v45 = vpop.f32.mrf.mxu0  ;;  %v2377_v46 = vpop.f32.mrf.mxu1 }
 0x12a   : > { %1411 = vst [vmem:[%s2317_s13 + $0x38] sm:$0xff] %v2375_v45  ;;  %1443 = vst [vmem:[%s2317_s13 + $0x138] sm:$0xff] %v2377_v46 }
 0x12b   : > { %v983_v47 = vpop.f32.mrf.mxu0  ;;  %v1111_v48 = vpop.f32.mrf.mxu1 }
 0x12c   : > { %v1603_v48 = vadd.f32 %v1602_v17, %v1540_v39 }
 0x12d   : > { %v2383_v49 = vpop.f32.mrf.mxu0  ;;  %v2385_v50 = vpop.f32.mrf.mxu1 }
 0x12e   : > { %1412 = vst [vmem:[%s2317_s13 + $0x40] sm:$0xff] %v2383_v49  ;;  %1444 = vst [vmem:[%s2317_s13 + $0x140] sm:$0xff] %v2385_v50  ;;  %v1604_v29 = vadd.f32 %v1603_v48, %v1541_v44 }
 0x12f   : > { %v988_v51 = vpop.f32.mrf.mxu0  ;;  %v1116_v52 = vpop.f32.mrf.mxu1 }
 0x130   : > { %v1471_v51 = vadd.f32 %v1470_v21, %v2351_v33  ;;  %v1542_v52 = vmul.f32 %v2359_v37, %v2359_v37 }
 0x131   : > { %v2391_v53 = vpop.f32.mrf.mxu0  ;;  %v2393_v54 = vpop.f32.mrf.mxu1 }
 0x132   : > { %1413 = vst [vmem:[%s2317_s13 + $0x48] sm:$0xff] %v2391_v53  ;;  %1445 = vst [vmem:[%s2317_s13 + $0x148] sm:$0xff] %v2393_v54  ;;  %v1546_v24 = vmul.f32 %v2391_v53, %v2391_v53 }
 0x133   : > { %v991_v55 = vpop.f32.mrf.mxu0  ;;  %v1119_v56 = vpop.f32.mrf.mxu1 }
 0x135   : > { %v2399_v57 = vpop.f32.mrf.mxu0  ;;  %v2401_v58 = vpop.f32.mrf.mxu1 }
 0x136   : > { %1414 = vst [vmem:[%s2317_s13 + $0x50] sm:$0xff] %v2399_v57  ;;  %1446 = vst [vmem:[%s2317_s13 + $0x150] sm:$0xff] %v2401_v58 }
 0x137   : > { %v996_v59 = vpop.f32.mrf.mxu0  ;;  %v1124_v60 = vpop.f32.mrf.mxu1 }
 0x138   : > { %v1472_v59 = vadd.f32 %v1471_v51, %v2359_v37  ;;  %v1543_v60 = vmul.f32 %v2367_v41, %v2367_v41 }
 0x139   : > { %v2407_v61 = vpop.f32.mrf.mxu0  ;;  %v2409_v62 = vpop.f32.mrf.mxu1 }
 0x13a   : > { %1415 = vst [vmem:[%s2317_s13 + $0x58] sm:$0xff] %v2407_v61  ;;  %1447 = vst [vmem:[%s2317_s13 + $0x158] sm:$0xff] %v2409_v62  ;;  %v1548_v17 = vmul.f32 %v2407_v61, %v2407_v61 }
 0x13b   : > { %v999_v63 = vpop.f32.mrf.mxu0  ;;  %v1127_v0 = vpop.f32.mrf.mxu1 }
 0x13c   : > { %v1605_v0 = vadd.f32 %v1604_v29, %v1542_v52 }
 0x13d   : > { %v2415_v1 = vpop.f32.mrf.mxu0  ;;  %v2417_v2 = vpop.f32.mrf.mxu1 }
 0x13e   : > { %1416 = vst [vmem:[%s2317_s13 + $0x60] sm:$0xff] %v2415_v1  ;;  %1448 = vst [vmem:[%s2317_s13 + $0x160] sm:$0xff] %v2417_v2  ;;  %v1606_v37 = vadd.f32 %v1605_v0, %v1543_v60 }
 0x13f   : > { %v1004_v3 = vpop.f32.mrf.mxu0  ;;  %v1132_v4 = vpop.f32.mrf.mxu1 }
 0x140   : > { %v1473_v3 = vadd.f32 %v1472_v59, %v2367_v41  ;;  %v1544_v4 = vmul.f32 %v2375_v45, %v2375_v45 }
 0x141   : > { %v2423_v5 = vpop.f32.mrf.mxu0  ;;  %v2425_v6 = vpop.f32.mrf.mxu1 }
 0x142   : > { %1417 = vst [vmem:[%s2317_s13 + $0x68] sm:$0xff] %v2423_v5  ;;  %1449 = vst [vmem:[%s2317_s13 + $0x168] sm:$0xff] %v2425_v6  ;;  %v1550_v29 = vmul.f32 %v2423_v5, %v2423_v5 }
 0x143   : > { %v1007_v7 = vpop.f32.mrf.mxu0  ;;  %v1135_v8 = vpop.f32.mrf.mxu1 }
 0x145   : > { %v2431_v9 = vpop.f32.mrf.mxu0  ;;  %v2433_v10 = vpop.f32.mrf.mxu1 }
 0x146   : > { %1418 = vst [vmem:[%s2317_s13 + $0x70] sm:$0xff] %v2431_v9  ;;  %1450 = vst [vmem:[%s2317_s13 + $0x170] sm:$0xff] %v2433_v10 }
 0x147   : > { %v1012_v11 = vpop.f32.mrf.mxu0  ;;  %v1140_v12 = vpop.f32.mrf.mxu1 }
 0x148   : > { %v1474_v11 = vadd.f32 %v1473_v3, %v2375_v45  ;;  %v1545_v12 = vmul.f32 %v2383_v49, %v2383_v49 }
 0x149   : > { %v2439_v13 = vpop.f32.mrf.mxu0  ;;  %v2441_v14 = vpop.f32.mrf.mxu1 }
 0x14a   : > { %1419 = vst [vmem:[%s2317_s13 + $0x78] sm:$0xff] %v2439_v13  ;;  %1451 = vst [vmem:[%s2317_s13 + $0x178] sm:$0xff] %v2441_v14  ;;  %v1475_v19 = vadd.f32 %v1474_v11, %v2383_v49 }
 0x14b   : > { %v1015_v15 = vpop.f32.mrf.mxu0  ;;  %v1143_v16 = vpop.f32.mrf.mxu1 }
 0x14c   : > { %v1607_v16 = vadd.f32 %v1606_v37, %v1544_v4  ;;  %v1552_v37 = vmul.f32 %v2439_v13, %v2439_v13 }
 0x14d   : > { %v2449_v20 = vpop.f32.mrf.mxu0  ;;  %v2451_v23 = vpop.f32.mrf.mxu1 }
 0x14e   : > { %1420 = vst [vmem:[%s2317_s13 + $0x80] sm:$0xff] %v2449_v20  ;;  %1452 = vst [vmem:[%s2317_s13 + $0x180] sm:$0xff] %v2451_v23  ;;  %v1608_v45 = vadd.f32 %v1607_v16, %v1545_v12 }
 0x14f   : > { %v1020_v31 = vpop.f32.mrf.mxu0  ;;  %v1148_v32 = vpop.f32.mrf.mxu1 }
 0x150   : > { %v1476_v31 = vadd.f32 %v1475_v19, %v2391_v53  ;;  %v1547_v32 = vmul.f32 %v2399_v57, %v2399_v57  ;;  %v1609_v36 = vadd.f32 %v1608_v45, %v1546_v24 }
 0x151   : > { %v2466_v40 = vpop.f32.mrf.mxu0  ;;  %v2468_v43 = vpop.f32.mrf.mxu1 }
 0x152   : > { %1421 = vst [vmem:[%s2317_s13 + $0x88] sm:$0xff] %v2466_v40  ;;  %1453 = vst [vmem:[%s2317_s13 + $0x188] sm:$0xff] %v2468_v43  ;;  %v1477_v39 = vadd.f32 %v1476_v31, %v2399_v57  ;;  %v1610_v53 = vadd.f32 %v1609_v36, %v1547_v32  ;;  %v1554_v45 = vmul.f32 %v2466_v40, %v2466_v40 }
 0x153   : > { %v1023_v25 = vpop.f32.mrf.mxu0  ;;  %v1151_v47 = vpop.f32.mrf.mxu1 }
 0x154   : > { %v1478_v25 = vadd.f32 %v1477_v39, %v2407_v61  ;;  %v1549_v47 = vmul.f32 %v2415_v1, %v2415_v1  ;;  %v1611_v51 = vadd.f32 %v1610_v53, %v1548_v17 }
 0x155   : > { %v2480_v55 = vpop.f32.mrf.mxu0  ;;  %v2482_v56 = vpop.f32.mrf.mxu1 }
 0x156   : > { %1422 = vst [vmem:[%s2317_s13 + $0x90] sm:$0xff] %v2480_v55  ;;  %1454 = vst [vmem:[%s2317_s13 + $0x190] sm:$0xff] %v2482_v56  ;;  %v1479_v52 = vadd.f32 %v1478_v25, %v2415_v1  ;;  %v1612_v61 = vadd.f32 %v1611_v51, %v1549_v47 }
 0x157   : > { %v1028_v33 = vpop.f32.mrf.mxu0  ;;  %v1156_v63 = vpop.f32.mrf.mxu1 }
 0x158   : > { %v1480_v33 = vadd.f32 %v1479_v52, %v2423_v5  ;;  %v1551_v63 = vmul.f32 %v2431_v9, %v2431_v9  ;;  %v1613_v1 = vadd.f32 %v1612_v61, %v1550_v29 }
 0x159   : > { %v2494_v7 = vpop.f32.mrf.mxu0  ;;  %v2496_v8 = vpop.f32.mrf.mxu1 }
 0x15a   : > { %1423 = vst [vmem:[%s2317_s13 + $0x98] sm:$0xff] %v2494_v7  ;;  %1455 = vst [vmem:[%s2317_s13 + $0x198] sm:$0xff] %v2496_v8  ;;  %v1481_v4 = vadd.f32 %v1480_v33, %v2431_v9  ;;  %v1556_v53 = vmul.f32 %v2494_v7, %v2494_v7 }
 0x15b   : > { %v1031_v41 = vpop.f32.mrf.mxu0  ;;  %v1159_v15 = vpop.f32.mrf.mxu1 }
 0x15c   : > { %v1614_v41 = vadd.f32 %v1613_v1, %v1551_v63  ;;  %v1482_v5 = vadd.f32 %v1481_v4, %v2439_v13  ;;  %v1553_v15 = vmul.f32 %v2449_v20, %v2449_v20 }
 0x15d   : > { %v2508_v27 = vpop.f32.mrf.mxu0  ;;  %v2510_v28 = vpop.f32.mrf.mxu1 }
 0x15e   : > { %1424 = vst [vmem:[%s2317_s13 + $0xa0] sm:$0xff] %v2508_v27  ;;  %1456 = vst [vmem:[%s2317_s13 + $0x1a0] sm:$0xff] %v2510_v28  ;;  %v1615_v9 = vadd.f32 %v1614_v41, %v1552_v37  ;;  %v1483_v24 = vadd.f32 %v1482_v5, %v2449_v20 }
 0x15f   : > { %v1036_v49 = vpop.f32.mrf.mxu0  ;;  %v1164_v35 = vpop.f32.mrf.mxu1 }
 0x160   : > { %v1616_v49 = vadd.f32 %v1615_v9, %v1553_v15  ;;  %v1484_v13 = vadd.f32 %v1483_v24, %v2466_v40  ;;  %v1555_v35 = vmul.f32 %v2480_v55, %v2480_v55 }
 0x161   : > { %v2522_v21 = vpop.f32.mrf.mxu0  ;;  %v2524_v44 = vpop.f32.mrf.mxu1 }
 0x162   : > { %1425 = vst [vmem:[%s2317_s13 + $0xa8] sm:$0xff] %v2522_v21  ;;  %1457 = vst [vmem:[%s2317_s13 + $0x1a8] sm:$0xff] %v2524_v44  ;;  %v1617_v20 = vadd.f32 %v1616_v49, %v1554_v45  ;;  %v1485_v17 = vadd.f32 %v1484_v13, %v2480_v55  ;;  %v1558_v61 = vmul.f32 %v2522_v21, %v2522_v21 }
 0x163   : > { %v1039_v57 = vpop.f32.mrf.mxu0  ;;  %v1167_v48 = vpop.f32.mrf.mxu1 }
 0x164   : > { %v1618_v57 = vadd.f32 %v1617_v20, %v1555_v35  ;;  %v1486_v40 = vadd.f32 %v1485_v17, %v2494_v7  ;;  %v1557_v48 = vmul.f32 %v2508_v27, %v2508_v27 }
 0x165   : > { %v1042_v59 = vpop.f32.mrf.mxu0  ;;  %v2536_v60 = vpop.f32.mrf.mxu1 }
 0x166   : > { %1426 = vst [vmem:[%s2317_s13 + $0xb0] sm:$0xff] %v1042_v59  ;;  %1458 = vst [vmem:[%s2317_s13 + $0x1b0] sm:$0xff] %v2536_v60  ;;  %v1619_v55 = vadd.f32 %v1618_v57, %v1556_v53  ;;  %v1487_v29 = vadd.f32 %v1486_v40, %v2508_v27 }
 0x167   : > { %v1044_v0 = vpop.f32.mrf.mxu0  ;;  %v1172_v3 = vpop.f32.mrf.mxu1 }
 0x168   : > { %v1620_v0 = vadd.f32 %v1619_v55, %v1557_v48  ;;  %v1488_v7 = vadd.f32 %v1487_v29, %v2522_v21  ;;  %v1559_v3 = vmul.f32 %v1042_v59, %v1042_v59 }
 0x169   : > { %v1045_v11 = vpop.f32.mrf.mxu0  ;;  %v2547_v12 = vpop.f32.mrf.mxu1 }
 0x16a   : > { %1427 = vst [vmem:[%s2317_s13 + $0xb8] sm:$0xff] %v1045_v11  ;;  %1459 = vst [vmem:[%s2317_s13 + $0x1b8] sm:$0xff] %v2547_v12  ;;  %v1621_v37 = vadd.f32 %v1620_v0, %v1558_v61  ;;  %v1489_v41 = vadd.f32 %v1488_v7, %v1042_v59  ;;  %v1560_v27 = vmul.f32 %v1045_v11, %v1045_v11 }
 0x16b   : > { %v1047_v16 = vpop.f32.mrf.mxu0  ;;  %v1175_v19 = vpop.f32.mrf.mxu1 }
 0x16c   : > { %v1622_v16 = vadd.f32 %v1621_v37, %v1559_v3  ;;  %v1490_v19 = vadd.f32 %v1489_v41, %v1045_v11 }
 0x16d   : > { %v1050_v31 = vpop.f32.mrf.mxu0  ;;  %v2558_v32 = vpop.f32.mrf.mxu1 }
 0x16e   : > { %1428 = vst [vmem:[%s2317_s13 + $0xc0] sm:$0xff] %v1050_v31  ;;  %1460 = vst [vmem:[%s2317_s13 + $0x1c0] sm:$0xff] %v2558_v32  ;;  %v1561_v9 = vmul.f32 %v1050_v31, %v1050_v31  ;;  %v1623_v45 = vadd.f32 %v1622_v16, %v1560_v27  ;;  %v1491_v49 = vadd.f32 %v1490_v19, %v1050_v31 }
 0x16f   : > { %v1052_v36 = vpop.f32.mrf.mxu0  ;;  %v1180_v39 = vpop.f32.mrf.mxu1 }
 0x170   : > { %v1624_v59 = vadd.f32 %v1623_v45, %v1561_v9 }
 0x171   : > { %v1053_v25 = vpop.f32.mrf.mxu0  ;;  %v2569_v47 = vpop.f32.mrf.mxu1 }
 0x172   : > { %1429 = vst [vmem:[%s2317_s13 + $0xc8] sm:$0xff] %v1053_v25  ;;  %1461 = vst [vmem:[%s2317_s13 + $0x1c8] sm:$0xff] %v2569_v47  ;;  %v1562_v13 = vmul.f32 %v1053_v25, %v1053_v25  ;;  %v1492_v39 = vadd.f32 %v1491_v49, %v1053_v25 }
 0x173   : > { %v1055_v51 = vpop.f32.mrf.mxu0  ;;  %v1183_v52 = vpop.f32.mrf.mxu1 }
 0x174   : > { %v1625_v53 = vadd.f32 %v1624_v59, %v1562_v13 }
 0x175   : > { %v1058_v33 = vpop.f32.mrf.mxu0  ;;  %v2580_v63 = vpop.f32.mrf.mxu1 }
 0x176   : > { %1430 = vst [vmem:[%s2317_s13 + $0xd0] sm:$0xff] %v1058_v33  ;;  %1462 = vst [vmem:[%s2317_s13 + $0x1d0] sm:$0xff] %v2580_v63  ;;  %v1563_v20 = vmul.f32 %v1058_v33, %v1058_v33  ;;  %v1493_v57 = vadd.f32 %v1492_v39, %v1058_v33 }
 0x177   : > { %v1060_v1 = vpop.f32.mrf.mxu0  ;;  %v1188_v4 = vpop.f32.mrf.mxu1 }
 0x178   : > { %v1626_v51 = vadd.f32 %v1625_v53, %v1563_v20  ;;  %v1570_v20 = vmul.f32 %v2329_v22, %v2329_v22  ;;  %v1571_v53 = vmul.f32 %v2337_v26, %v2337_v26 }
 0x179   : > { %v1061_v5 = vpop.f32.mrf.mxu0  ;;  %v2586_v15 = vpop.f32.mrf.mxu1 }
 0x17a   : > { %1431 = vst [vmem:[%s2317_s13 + $0xd8] sm:$0xff] %v1061_v5  ;;  %1463 = vst [vmem:[%s2317_s13 + $0x1d8] sm:$0xff] %v2586_v15  ;;  %v1564_v40 = vmul.f32 %v1061_v5, %v1061_v5  ;;  %v1494_v52 = vadd.f32 %v1493_v57, %v1061_v5 }
 0x17b   : > { %v1063_v21 = vpop.f32.mrf.mxu0  ;;  %v1191_v24 = vpop.f32.mrf.mxu1 }
 0x17c   : > { %v1627_v61 = vadd.f32 %v1626_v51, %v1564_v40 }
 0x17d   : > { %v1066_v35 = vpop.f32.mrf.mxu0  ;;  %v2591_v36 = vpop.f32.mrf.mxu1 }
 0x17e   : > { %1432 = vst [vmem:[%s2317_s13 + $0xe0] sm:$0xff] %v1066_v35  ;;  %1464 = vst [vmem:[%s2317_s13 + $0x1e0] sm:$0xff] %v2591_v36  ;;  %v1565_v55 = vmul.f32 %v1066_v35, %v1066_v35  ;;  %v1495_v0 = vadd.f32 %v1494_v52, %v1066_v35  ;;  %v1569_v35 = vmul.f32 %v2321_v18, %v2321_v18 }
 0x17f   : > { %v1068_v11 = vpop.f32.mrf.mxu0  ;;  %v1196_v17 = vpop.f32.mrf.mxu1 }
 0x180   : > { %v1628_v1 = vadd.f32 %v1627_v61, %v1565_v55 }
 0x181   : > { %v1069_v48 = vpop.f32.mrf.mxu0  ;;  %v2596_v31 = vpop.f32.mrf.mxu1 }
 0x182   : > { %1433 = vst [vmem:[%s2317_s13 + $0xe8] sm:$0xff] %v1069_v48  ;;  %1465 = vst [vmem:[%s2317_s13 + $0x1e8] sm:$0xff] %v2596_v31  ;;  %v1566_v7 = vmul.f32 %v1069_v48, %v1069_v48  ;;  %v1496_v4 = vadd.f32 %v1495_v0, %v1069_v48  ;;  %v1572_v48 = vmul.f32 %v2345_v30, %v2345_v30 }
 0x183   : > { %v1071_v25 = vpop.f32.mrf.mxu0  ;;  %v1199_v29 = vpop.f32.mrf.mxu1 }
 0x184   : > { %v1629_v5 = vadd.f32 %v1628_v1, %v1566_v7 }
 0x185   : > { %v1074_v3 = vpop.f32.mrf.mxu0  ;;  %v2601_v33 = vpop.f32.mrf.mxu1 }
 0x186   : > { %1434 = vst [vmem:[%s2317_s13 + $0xf0] sm:$0xff] %v1074_v3  ;;  %v1567_v37 = vmul.f32 %v1074_v3, %v1074_v3  ;;  %1466 = vst [vmem:[%s2317_s13 + $0x1f0] sm:$0xff] %v2601_v33  ;;  %v1497_v16 = vadd.f32 %v1496_v4, %v1074_v3 }
 0x187   : > { %v1076_v41 = vpop.f32.mrf.mxu0  ;;  %v1204_v27 = vpop.f32.mrf.mxu1 }
 0x188   : > { %v1630_v21 = vadd.f32 %v1629_v5, %v1567_v37 }
 0x189   : > { %v1077_v19 = vpop.f32.mrf.mxu0  ;;  %v2606_v9 = vpop.f32.mrf.mxu1 }
 0x18a   : > { %1435 = vst [vmem:[%s2317_s13 + $0xf8] sm:$0xff] %v1077_v19  ;;  %v1498_v24 = vadd.f32 %v1497_v16, %v1077_v19  ;;  %v1568_v45 = vmul.f32 %v1077_v19, %v1077_v19  ;;  %1467 = vst [vmem:[%s2317_s13 + $0x1f8] sm:$0xff] %v2606_v9 }
 0x18b   : > { %v1079_v49 = vpop.f32.mrf.mxu0  ;;  %v1207_v13 = vpop.f32.mrf.mxu1 }
 0x18c   : > { %v1499_v59 = vadd.f32 %v1498_v24, %v2321_v18  ;;  %v1631_v39 = vadd.f32 %v1630_v21, %v1568_v45  ;;  %v1573_v18 = vmul.f32 %v2353_v34, %v2353_v34 }
 0x18e   : > { %v1500_v11 = vadd.f32 %v1499_v59, %v2329_v22  ;;  %v1632_v17 = vadd.f32 %v1631_v39, %v1569_v35  ;;  %v1574_v22 = vmul.f32 %v2361_v38, %v2361_v38 }
 0x190   : > { %v1501_v57 = vadd.f32 %v1500_v11, %v2337_v26  ;;  %v1633_v40 = vadd.f32 %v1632_v17, %v1570_v20  ;;  %v1575_v26 = vmul.f32 %v2369_v42, %v2369_v42 }
 0x192   : > { %v1502_v51 = vadd.f32 %v1501_v57, %v2345_v30  ;;  %v1634_v52 = vadd.f32 %v1633_v40, %v1571_v53  ;;  %v1576_v30 = vmul.f32 %v2377_v46, %v2377_v46  ;;  %v1586_v53 = vmul.f32 %v2468_v43, %v2468_v43 }
 0x194   : > { %v1503_v55 = vadd.f32 %v1502_v51, %v2353_v34  ;;  %v1635_v25 = vadd.f32 %v1634_v52, %v1572_v48  ;;  %v1577_v34 = vmul.f32 %v2385_v50, %v2385_v50  ;;  %v1587_v48 = vmul.f32 %v2482_v56, %v2482_v56 }
 0x195   : > { %v1588_v52 = vmul.f32 %v2496_v8, %v2496_v8 }
 0x196   : > { %v1504_v29 = vadd.f32 %v1503_v55, %v2361_v38  ;;  %v1636_v61 = vadd.f32 %v1635_v25, %v1573_v18  ;;  %v1578_v38 = vmul.f32 %v2393_v54, %v2393_v54  ;;  %v1589_v55 = vmul.f32 %v2510_v28, %v2510_v28 }
 0x198   : > { %v1505_v0 = vadd.f32 %v1504_v29, %v2369_v42  ;;  %v1637_v7 = vadd.f32 %v1636_v61, %v1574_v22  ;;  %v1579_v42 = vmul.f32 %v2401_v58, %v2401_v58  ;;  %v1590_v22 = vmul.f32 %v2524_v44, %v2524_v44 }
 0x199   : > { %v1591_v61 = vmul.f32 %v2536_v60, %v2536_v60 }
 0x19a   : > { %v1506_v3 = vadd.f32 %v1505_v0, %v2377_v46  ;;  %v1638_v1 = vadd.f32 %v1637_v7, %v1575_v26  ;;  %v1580_v46 = vmul.f32 %v2409_v62, %v2409_v62  ;;  %v1592_v0 = vmul.f32 %v2547_v12, %v2547_v12 }
 0x19c   : > { %v1639_v4 = vadd.f32 %v1638_v1, %v1576_v30  ;;  %v1507_v37 = vadd.f32 %v1506_v3, %v2385_v50  ;;  %v1581_v50 = vmul.f32 %v2417_v2, %v2417_v2  ;;  %v1593_v30 = vmul.f32 %v2558_v32, %v2558_v32 }
 0x19d   : > { %v1594_v1 = vmul.f32 %v2569_v47, %v2569_v47 }
 0x19e   : > { %v1508_v41 = vadd.f32 %v1507_v37, %v2393_v54  ;;  %v1640_v27 = vadd.f32 %v1639_v4, %v1577_v34  ;;  %v1582_v54 = vmul.f32 %v2425_v6, %v2425_v6  ;;  %v1595_v4 = vmul.f32 %v2580_v63, %v2580_v63 }
 0x1a0   : > { %v1509_v5 = vadd.f32 %v1508_v41, %v2401_v58  ;;  %v1641_v16 = vadd.f32 %v1640_v27, %v1578_v38  ;;  %v1583_v58 = vmul.f32 %v2433_v10, %v2433_v10  ;;  %v1596_v38 = vmul.f32 %v2586_v15, %v2586_v15 }
 0x1a2   : > { %v1510_v19 = vadd.f32 %v1509_v5, %v2409_v62  ;;  %v1642_v21 = vadd.f32 %v1641_v16, %v1579_v42  ;;  %v1584_v62 = vmul.f32 %v2441_v14, %v2441_v14 }
 0x1a4   : > { %v1511_v24 = vadd.f32 %v1510_v19, %v2417_v2  ;;  %v1643_v45 = vadd.f32 %v1642_v21, %v1580_v46  ;;  %v1585_v2 = vmul.f32 %v2451_v23, %v2451_v23  ;;  %v1599_v46 = vmul.f32 %v2601_v33, %v2601_v33 }
 0x1a5   : > { %v1600_v21 = vmul.f32 %v2606_v9, %v2606_v9 }
 0x1a6   : > { %v1512_v49 = vadd.f32 %v1511_v24, %v2425_v6  ;;  %v1644_v13 = vadd.f32 %v1643_v45, %v1581_v50 }
 0x1a8   : > { %v1513_v35 = vadd.f32 %v1512_v49, %v2433_v10  ;;  %v1645_v59 = vadd.f32 %v1644_v13, %v1582_v54 }
 0x1aa   : > { %v1514_v39 = vadd.f32 %v1513_v35, %v2441_v14  ;;  %v1646_v20 = vadd.f32 %v1645_v59, %v1583_v58 }
 0x1ac   : > { %v1515_v11 = vadd.f32 %v1514_v39, %v2451_v23  ;;  %v1647_v17 = vadd.f32 %v1646_v20, %v1584_v62 }
 0x1ae   : > { %v1516_v6 = vadd.f32 %v1515_v11, %v2468_v43  ;;  %v1648_v57 = vadd.f32 %v1647_v17, %v1585_v2 }
 0x1b0   : > { %v1649_v10 = vadd.f32 %v1648_v57, %v1586_v53  ;;  %v1517_v40 = vadd.f32 %v1516_v6, %v2482_v56 }
 0x1b2   : > { %v1650_v14 = vadd.f32 %v1649_v10, %v1587_v48  ;;  %v1518_v51 = vadd.f32 %v1517_v40, %v2496_v8 }
 0x1b4   : > { %v1651_v23 = vadd.f32 %v1650_v14, %v1588_v52  ;;  %v1519_v18 = vadd.f32 %v1518_v51, %v2510_v28 }
 0x1b6   : > { %v1652_v43 = vadd.f32 %v1651_v23, %v1589_v55  ;;  %v1520_v25 = vadd.f32 %v1519_v18, %v2524_v44 }
 0x1b8   : > { %v1653_v29 = vadd.f32 %v1652_v43, %v1590_v22  ;;  %v1521_v56 = vadd.f32 %v1520_v25, %v2536_v60 }
 0x1ba   : > { %v1654_v26 = vadd.f32 %v1653_v29, %v1591_v61  ;;  %v1522_v8 = vadd.f32 %v1521_v56, %v2547_v12 }
 0x1bc   : > { %v1655_v7 = vadd.f32 %v1654_v26, %v1592_v0  ;;  %v1523_v28 = vadd.f32 %v1522_v8, %v2558_v32 }
 0x1be   : > { %v1656_v3 = vadd.f32 %v1655_v7, %v1593_v30  ;;  %v1524_v44 = vadd.f32 %v1523_v28, %v2569_v47  ;;  %v1597_v47 = vmul.f32 %v2591_v36, %v2591_v36 }
 0x1c0   : > { %v1657_v34 = vadd.f32 %v1656_v3, %v1594_v1  ;;  %v1525_v60 = vadd.f32 %v1524_v44, %v2580_v63  ;;  %v1598_v63 = vmul.f32 %v2596_v31, %v2596_v31 }
 0x1c2   : > { %v1658_v12 = vadd.f32 %v1657_v34, %v1595_v4  ;;  %v1526_v37 = vadd.f32 %v1525_v60, %v2586_v15 }
 0x1c4   : > { %v1659_v32 = vadd.f32 %v1658_v12, %v1596_v38  ;;  %v1527_v41 = vadd.f32 %v1526_v37, %v2591_v36 }
 0x1c6   : > { %v1660_v27 = vadd.f32 %v1659_v32, %v1597_v47  ;;  %v1528_v42 = vadd.f32 %v1527_v41, %v2596_v31 }
 0x1c8   : > { %v1661_v5 = vadd.f32 %v1660_v27, %v1598_v63  ;;  %v1529_v16 = vadd.f32 %v1528_v42, %v2601_v33 }
 0x1ca   : > { %v1662_v15 = vadd.f32 %v1661_v5, %v1599_v46  ;;  %v1530_v19 = vadd.f32 %v1529_v16, %v2606_v9 }
 0x1cc   : > { %v1531_v36 = vrot.slane %v1530_v19, 4  ;;  %v1663_v50 = vadd.f32 %v1662_v15, %v1600_v21 }
 0x1ce   : > { %v1532_v24 = vadd.f32 %v1531_v36, %v1530_v19  ;;  %v1664_v45 = vrot.slane %v1663_v50, 4 }
 0x1d0   : > { %v1533_v54 = vrot.slane %v1532_v24, 2  ;;  %v1665_v31 = vadd.f32 %v1664_v45, %v1663_v50 }
 0x1d2   : > { %v1534_v49 = vadd.f32 %v1533_v54, %v1532_v24  ;;  %v1666_v13 = vrot.slane %v1665_v31, 2 }
 0x1d4   : > { %v1535_v58 = vrot.slane %v1534_v49, 1  ;;  %v1667_v35 = vadd.f32 %v1666_v13, %v1665_v31 }
 0x1d6   : > { %v1536_v33 = vadd.f32 %v1535_v58, %v1534_v49  ;;  %v1668_v59 = vrot.slane %v1667_v35, 1 }
 0x1d8   : > { %v1669_v9 = vadd.f32 %v1668_v59, %v1667_v35  ;;  %v1670_v62 = vmul.f32 0.125, %v1536_v33 }
 0x1da   : > { %1671 = vst [vmem:[%s270_s14] sm:$0xff] %v1670_v62  ;;  %v1672_v39 = vmul.f32 0.125, %v1669_v9 }
 0x1dc   : > { %1673 = vst [vmem:[%s274_s22] sm:$0xff] %v1672_v39 }
 0x1dd PF: > { %s15_s17 = sadd.s32 1, %s2109_s17   ;;  %s2729_s15 = smov %s2105_s16 }
 0x1de   : > { %p12_p6 = scmp.ge.s32.totalorder %s15_s17, 4   ;;  %s2730_s16 = smov %s2732_s18 }
 0x1e0   :  { %14 = sbr.rel (!%p12_p6) target bundleno = 2 (0x2), region = 93 }

// kernel: residual_block_forward.7
= control target key start
LH: loop header
LB: loop body
LE: loop exit
PB: predicated region body
PF: predicated region fallthrough
CT: control target
= control target key end

     0   :  { %s2978_s0 = inlined_call_operand.vmem [shape: f32[1024,128], index: 0, kind: input, shape index: {}]   ;;  %s2979_s1 = inlined_call_operand.vmem [shape: f32[1,128], index: 1, kind: input, shape index: {}]   ;;  %s2980_s2 = inlined_call_operand.vmem [shape: f32[1,128], index: 2, kind: input, shape index: {}]   ;;  %s2981_s3 = inlined_call_operand.vmem [shape: f32[1024,128], index: 3, kind: input, shape index: {}]   ;;  %s2982_s4 = inlined_call_operand.vmem [shape: f32[1,128], index: 4, kind: input, shape index: {}]   ;;  %s2983_s5 = inlined_call_operand.vmem [shape: f32[1,128], index: 5, kind: input, shape index: {}]   ;;  %s2984_s6 = inlined_call_operand.vmem [shape: f32[1024,128], index: 6, kind: output, shape index: {}]  }
   0x1   :  { %v23_v0 = vld [vmem:[%s2978_s0] sm:$0xff]  ;;  %v24_v8 = vld [vmem:[%s2978_s0 + $0x8] sm:$0xff]  ;;  %v25_v10 = vld [vmem:[%s2978_s0 + $0x10] sm:$0xff] }
   0x2   :  { %v151_v1 = vld [vmem:[%s2981_s3] sm:$0xff]  ;;  %v152_v9 = vld [vmem:[%s2981_s3 + $0x8] sm:$0xff]  ;;  %v153_v14 = vld [vmem:[%s2981_s3 + $0x10] sm:$0xff] }
   0x3   :  { %v1263_v2 = vld [vmem:[%s2979_s1] ss:$0 sm:$0xff]  ;;  %v26_v16 = vld [vmem:[%s2978_s0 + $0x18] sm:$0xff]  ;;  %v28_v23 = vld [vmem:[%s2978_s0 + $0x28] sm:$0xff] }
   0x4   :  { %v286_v3 = vmul.f32 %v1263_v2, %v23_v0  ;;  %v1269_v4 = vld [vmem:[%s2980_s2] ss:$0 sm:$0xff]  ;;  %v287_v12 = vmul.f32 %v1263_v2, %v24_v8  ;;  %v288_v15 = vmul.f32 %v1263_v2, %v25_v10  ;;  %v154_v17 = vld [vmem:[%s2981_s3 + $0x18] sm:$0xff]  ;;  %v289_v19 = vmul.f32 %v1263_v2, %v26_v16  ;;  %v156_v28 = vld [vmem:[%s2981_s3 + $0x28] sm:$0xff] }
   0x5   :  { %v1274_v5 = vld [vmem:[%s2982_s4] ss:$0 sm:$0xff]  ;;  %v29_v29 = vld [vmem:[%s2978_s0 + $0x30] sm:$0xff]  ;;  %v291_v33 = vmul.f32 %v1263_v2, %v28_v23  ;;  %v30_v39 = vld [vmem:[%s2978_s0 + $0x38] sm:$0xff] }
   0x6   :  { %v556_v6 = vmul.f32 %v1274_v5, %v151_v1  ;;  %v1280_v7 = vld [vmem:[%s2983_s5] ss:$0 sm:$0xff]  ;;  %v421_v11 = vadd.f32 %v1269_v4, %v286_v3  ;;  %v557_v13 = vmul.f32 %v1274_v5, %v152_v9  ;;  %v558_v18 = vmul.f32 %v1274_v5, %v153_v14  ;;  %v157_v30 = vld [vmem:[%s2981_s3 + $0x30] sm:$0xff]  ;;  %v158_v44 = vld [vmem:[%s2981_s3 + $0x38] sm:$0xff] }
   0x7   :  { %v559_v20 = vmul.f32 %v1274_v5, %v154_v17  ;;  %v27_v21 = vld [vmem:[%s2978_s0 + $0x20] sm:$0xff]  ;;  %v422_v25 = vadd.f32 %v1269_v4, %v287_v12  ;;  %v423_v26 = vadd.f32 %v1269_v4, %v288_v15  ;;  %v424_v31 = vadd.f32 %v1269_v4, %v289_v19  ;;  %v32_v55 = vld [vmem:[%s2978_s0 + $0x48] sm:$0xff]  ;;  %v33_v1 = vld [vmem:[%s2978_s0 + $0x50] sm:$0xff] }
   0x8   :  { %v155_v22 = vld [vmem:[%s2981_s3 + $0x20] sm:$0xff]  ;;  %v684_v24 = vadd.f32 %v556_v6, %v421_v11  ;;  %v290_v27 = vmul.f32 %v1263_v2, %v27_v21  ;;  %v561_v34 = vmul.f32 %v1274_v5, %v156_v28  ;;  %v426_v41 = vadd.f32 %v1269_v4, %v291_v33  ;;  %v160_v60 = vld [vmem:[%s2981_s3 + $0x48] sm:$0xff]  ;;  %v161_v3 = vld [vmem:[%s2981_s3 + $0x50] sm:$0xff] }
   0x9   :  { %v560_v32 = vmul.f32 %v1274_v5, %v155_v22  ;;  %v685_v36 = vadd.f32 %v557_v13, %v422_v25  ;;  %v686_v37 = vadd.f32 %v558_v18, %v423_v26  ;;  %v687_v40 = vadd.f32 %v559_v20, %v424_v31  ;;  %v31_v53 = vld [vmem:[%s2978_s0 + $0x40] sm:$0xff]  ;;  %v34_v11 = vld [vmem:[%s2978_s0 + $0x58] sm:$0xff]  ;;  %v36_v23 = vld [vmem:[%s2978_s0 + $0x68] sm:$0xff] }
   0xa   :  { %v819_v35 = vadd.f32 %v1280_v7, %v684_v24  ;;  %v425_v38 = vadd.f32 %v1269_v4, %v290_v27  ;;  %v292_v42 = vmul.f32 %v1263_v2, %v29_v29  ;;  %v562_v43 = vmul.f32 %v1274_v5, %v157_v30  ;;  %v159_v54 = vld [vmem:[%s2981_s3 + $0x40] sm:$0xff]  ;;  %v162_v12 = vld [vmem:[%s2981_s3 + $0x58] sm:$0xff]  ;;  %v37_v33 = vld [vmem:[%s2978_s0 + $0x70] sm:$0xff] }
   0xb   :  { %v820_v46 = vadd.f32 %v1280_v7, %v685_v36  ;;  %v821_v47 = vadd.f32 %v1280_v7, %v686_v37  ;;  %v822_v49 = vadd.f32 %v1280_v7, %v687_v40  ;;  %v689_v50 = vadd.f32 %v561_v34, %v426_v41  ;;  %v35_v17 = vld [vmem:[%s2978_s0 + $0x60] sm:$0xff] }
   0xc   :  { %v947_v45 = vmax.f32 %v819_v35, 0.0  ;;  %v688_v48 = vadd.f32 %v560_v32, %v425_v38  ;;  %v427_v51 = vadd.f32 %v1269_v4, %v292_v42  ;;  %v293_v52 = vmul.f32 %v1263_v2, %v30_v39  ;;  %v163_v22 = vld [vmem:[%s2981_s3 + $0x60] sm:$0xff]  ;;  %v164_v32 = vld [vmem:[%s2981_s3 + $0x68] sm:$0xff]  ;;  %v165_v42 = vld [vmem:[%s2981_s3 + $0x70] sm:$0xff] }
   0xd   :  { %v948_v56 = vmax.f32 %v820_v46, 0.0  ;;  %v949_v57 = vmax.f32 %v821_v47, 0.0  ;;  %v563_v59 = vmul.f32 %v1274_v5, %v158_v44  ;;  %v950_v61 = vmax.f32 %v822_v49, 0.0  ;;  %v38_v47 = vld [vmem:[%s2978_s0 + $0x78] sm:$0xff] }
   0xe   :  { %1075 = vst [vmem:[%s2984_s6] sm:$0xff] %v947_v45  ;;  %v823_v58 = vadd.f32 %v1280_v7, %v688_v48  ;;  %v824_v62 = vadd.f32 %v1280_v7, %v689_v50  ;;  %v690_v63 = vadd.f32 %v562_v43, %v427_v51  ;;  %v428_v0 = vadd.f32 %v1269_v4, %v293_v52  ;;  %v166_v48 = vld [vmem:[%s2981_s3 + $0x78] sm:$0xff] }
   0xf   :  { %1076 = vst [vmem:[%s2984_s6 + $0x8] sm:$0xff] %v948_v56  ;;  %1077 = vst [vmem:[%s2984_s6 + $0x10] sm:$0xff] %v949_v57  ;;  %v294_v8 = vmul.f32 %v1263_v2, %v31_v53  ;;  %v564_v9 = vmul.f32 %v1274_v5, %v159_v54  ;;  %v295_v10 = vmul.f32 %v1263_v2, %v32_v55  ;;  %v39_v53 = vld [vmem:[%s2978_s0 + $0x80] sm:$0xff] }
  0x10   :  { %v951_v6 = vmax.f32 %v823_v58, 0.0  ;;  %1078 = vst [vmem:[%s2984_s6 + $0x18] sm:$0xff] %v950_v61  ;;  %v952_v13 = vmax.f32 %v824_v62, 0.0  ;;  %v825_v14 = vadd.f32 %v1280_v7, %v690_v63  ;;  %v691_v15 = vadd.f32 %v563_v59, %v428_v0  ;;  %v167_v58 = vld [vmem:[%s2981_s3 + $0x80] sm:$0xff]  ;;  %v40_v59 = vld [vmem:[%s2978_s0 + $0x88] sm:$0xff] }
  0x11   :  { %v565_v16 = vmul.f32 %v1274_v5, %v160_v60  ;;  %v429_v18 = vadd.f32 %v1269_v4, %v294_v8  ;;  %v430_v19 = vadd.f32 %v1269_v4, %v295_v10  ;;  %v296_v20 = vmul.f32 %v1263_v2, %v33_v1  ;;  %v168_v0 = vld [vmem:[%s2981_s3 + $0x88] sm:$0xff]  ;;  %v169_v10 = vld [vmem:[%s2981_s3 + $0x90] sm:$0xff] }
  0x12   :  { %1079 = vst [vmem:[%s2984_s6 + $0x20] sm:$0xff] %v951_v6  ;;  %v566_v21 = vmul.f32 %v1274_v5, %v161_v3  ;;  %1080 = vst [vmem:[%s2984_s6 + $0x28] sm:$0xff] %v952_v13  ;;  %v953_v24 = vmax.f32 %v825_v14, 0.0  ;;  %v826_v25 = vadd.f32 %v1280_v7, %v691_v15  ;;  %v297_v26 = vmul.f32 %v1263_v2, %v34_v11  ;;  %v42_v15 = vld [vmem:[%s2978_s0 + $0x98] sm:$0xff] }
  0x13   :  { %v567_v27 = vmul.f32 %v1274_v5, %v162_v12  ;;  %v692_v28 = vadd.f32 %v564_v9, %v429_v18  ;;  %v693_v29 = vadd.f32 %v565_v16, %v430_v19  ;;  %v431_v30 = vadd.f32 %v1269_v4, %v296_v20  ;;  %v41_v9 = vld [vmem:[%s2978_s0 + $0x90] sm:$0xff]  ;;  %v170_v16 = vld [vmem:[%s2981_s3 + $0x98] sm:$0xff] }
  0x14   :  { %v298_v31 = vmul.f32 %v1263_v2, %v35_v17  ;;  %1081 = vst [vmem:[%s2984_s6 + $0x30] sm:$0xff] %v953_v24  ;;  %v954_v34 = vmax.f32 %v826_v25, 0.0  ;;  %v432_v35 = vadd.f32 %v1269_v4, %v297_v26  ;;  %v568_v36 = vmul.f32 %v1274_v5, %v163_v22  ;;  %v171_v26 = vld [vmem:[%s2981_s3 + $0xa0] sm:$0xff] }
  0x15   :  { %v299_v37 = vmul.f32 %v1263_v2, %v36_v23  ;;  %v827_v38 = vadd.f32 %v1280_v7, %v692_v28  ;;  %v828_v39 = vadd.f32 %v1280_v7, %v693_v29  ;;  %v694_v40 = vadd.f32 %v566_v21, %v431_v30  ;;  %v43_v21 = vld [vmem:[%s2978_s0 + $0xa0] sm:$0xff] }
  0x16   :  { %v433_v41 = vadd.f32 %v1269_v4, %v298_v31  ;;  %1082 = vst [vmem:[%s2984_s6 + $0x38] sm:$0xff] %v954_v34  ;;  %v695_v43 = vadd.f32 %v567_v27, %v432_v35  ;;  %v569_v45 = vmul.f32 %v1274_v5, %v164_v32  ;;  %v300_v46 = vmul.f32 %v1263_v2, %v37_v33  ;;  %v44_v27 = vld [vmem:[%s2978_s0 + $0xa8] sm:$0xff] }
  0x17   :  { %v434_v44 = vadd.f32 %v1269_v4, %v299_v37  ;;  %v955_v49 = vmax.f32 %v827_v38, 0.0  ;;  %v956_v50 = vmax.f32 %v828_v39, 0.0  ;;  %v829_v51 = vadd.f32 %v1280_v7, %v694_v40 }
  0x18   :  { %v696_v52 = vadd.f32 %v568_v36, %v433_v41  ;;  %v830_v54 = vadd.f32 %v1280_v7, %v695_v43  ;;  %v435_v56 = vadd.f32 %v1269_v4, %v300_v46  ;;  %v570_v57 = vmul.f32 %v1274_v5, %v165_v42  ;;  %v172_v36 = vld [vmem:[%s2981_s3 + $0xa8] sm:$0xff]  ;;  %v45_v41 = vld [vmem:[%s2978_s0 + $0xb0] sm:$0xff] }
  0x19   :  { %v697_v55 = vadd.f32 %v569_v45, %v434_v44  ;;  %1083 = vst [vmem:[%s2984_s6 + $0x40] sm:$0xff] %v955_v49  ;;  %1084 = vst [vmem:[%s2984_s6 + $0x48] sm:$0xff] %v956_v50  ;;  %v957_v60 = vmax.f32 %v829_v51, 0.0  ;;  %v301_v62 = vmul.f32 %v1263_v2, %v38_v47  ;;  %v571_v63 = vmul.f32 %v1274_v5, %v166_v48  ;;  %v173_v46 = vld [vmem:[%s2981_s3 + $0xb0] sm:$0xff]  ;;  %v46_v47 = vld [vmem:[%s2978_s0 + $0xb8] sm:$0xff] }
  0x1a   :  { %v831_v61 = vadd.f32 %v1280_v7, %v696_v52  ;;  %v958_v1 = vmax.f32 %v830_v54, 0.0  ;;  %v698_v6 = vadd.f32 %v570_v57, %v435_v56  ;;  %v302_v8 = vmul.f32 %v1263_v2, %v39_v53  ;;  %v174_v52 = vld [vmem:[%s2981_s3 + $0xb8] sm:$0xff]  ;;  %v47_v57 = vld [vmem:[%s2978_s0 + $0xc0] sm:$0xff] }
  0x1b   :  { %v832_v3 = vadd.f32 %v1280_v7, %v697_v55  ;;  %1085 = vst [vmem:[%s2984_s6 + $0x50] sm:$0xff] %v957_v60  ;;  %v436_v12 = vadd.f32 %v1269_v4, %v301_v62  ;;  %v572_v13 = vmul.f32 %v1274_v5, %v167_v58  ;;  %v303_v14 = vmul.f32 %v1263_v2, %v40_v59  ;;  %v175_v62 = vld [vmem:[%s2981_s3 + $0xc0] sm:$0xff] }
  0x1c   :  { %v959_v11 = vmax.f32 %v831_v61, 0.0  ;;  %1086 = vst [vmem:[%s2984_s6 + $0x58] sm:$0xff] %v958_v1  ;;  %v833_v18 = vadd.f32 %v1280_v7, %v698_v6  ;;  %v437_v19 = vadd.f32 %v1269_v4, %v302_v8  ;;  %v573_v20 = vmul.f32 %v1274_v5, %v168_v0  ;;  %v176_v8 = vld [vmem:[%s2981_s3 + $0xc8] sm:$0xff] }
  0x1d   :  { %v960_v17 = vmax.f32 %v832_v3, 0.0  ;;  %v699_v22 = vadd.f32 %v571_v63, %v436_v12  ;;  %v438_v23 = vadd.f32 %v1269_v4, %v303_v14  ;;  %v304_v24 = vmul.f32 %v1263_v2, %v41_v9  ;;  %v48_v63 = vld [vmem:[%s2978_s0 + $0xc8] sm:$0xff]  ;;  %v177_v14 = vld [vmem:[%s2981_s3 + $0xd0] sm:$0xff] }
  0x1e   :  { %1087 = vst [vmem:[%s2984_s6 + $0x60] sm:$0xff] %v959_v11  ;;  %v574_v25 = vmul.f32 %v1274_v5, %v169_v10  ;;  %v961_v28 = vmax.f32 %v833_v18, 0.0  ;;  %v700_v29 = vadd.f32 %v572_v13, %v437_v19  ;;  %v305_v30 = vmul.f32 %v1263_v2, %v42_v15  ;;  %v49_v13 = vld [vmem:[%s2978_s0 + $0xd0] sm:$0xff]  ;;  %v50_v19 = vld [vmem:[%s2978_s0 + $0xd8] sm:$0xff] }
  0x1f   :  { %1088 = vst [vmem:[%s2984_s6 + $0x68] sm:$0xff] %v960_v17  ;;  %v575_v31 = vmul.f32 %v1274_v5, %v170_v16  ;;  %v834_v32 = vadd.f32 %v1280_v7, %v699_v22  ;;  %v701_v33 = vadd.f32 %v573_v20, %v438_v23  ;;  %v439_v34 = vadd.f32 %v1269_v4, %v304_v24  ;;  %v178_v20 = vld [vmem:[%s2981_s3 + $0xd8] sm:$0xff] }
  0x20   :  { %v306_v35 = vmul.f32 %v1263_v2, %v43_v21  ;;  %1089 = vst [vmem:[%s2984_s6 + $0x70] sm:$0xff] %v961_v28  ;;  %v835_v37 = vadd.f32 %v1280_v7, %v700_v29  ;;  %v440_v38 = vadd.f32 %v1269_v4, %v305_v30  ;;  %v576_v39 = vmul.f32 %v1274_v5, %v171_v26  ;;  %v179_v30 = vld [vmem:[%s2981_s3 + $0xe0] sm:$0xff] }
  0x21   :  { %v307_v40 = vmul.f32 %v1263_v2, %v44_v27  ;;  %v962_v42 = vmax.f32 %v834_v32, 0.0  ;;  %v836_v43 = vadd.f32 %v1280_v7, %v701_v33  ;;  %v702_v44 = vadd.f32 %v574_v25, %v439_v34  ;;  %v51_v25 = vld [vmem:[%s2978_s0 + $0xe0] sm:$0xff] }
  0x22   :  { %v441_v45 = vadd.f32 %v1269_v4, %v306_v35  ;;  %v963_v48 = vmax.f32 %v835_v37, 0.0  ;;  %v703_v49 = vadd.f32 %v575_v31, %v440_v38  ;;  %v577_v51 = vmul.f32 %v1274_v5, %v172_v36  ;;  %v52_v35 = vld [vmem:[%s2978_s0 + $0xe8] sm:$0xff] }
  0x23   :  { %v442_v50 = vadd.f32 %v1269_v4, %v307_v40  ;;  %1090 = vst [vmem:[%s2984_s6 + $0x78] sm:$0xff] %v962_v42  ;;  %v964_v53 = vmax.f32 %v836_v43, 0.0  ;;  %v837_v54 = vadd.f32 %v1280_v7, %v702_v44  ;;  %v308_v56 = vmul.f32 %v1263_v2, %v45_v41  ;;  %v180_v40 = vld [vmem:[%s2981_s3 + $0xe8] sm:$0xff]  ;;  %v53_v41 = vld [vmem:[%s2978_s0 + $0xf0] sm:$0xff] }
  0x24   :  { %v704_v55 = vadd.f32 %v576_v39, %v441_v45  ;;  %1091 = vst [vmem:[%s2984_s6 + $0x80] sm:$0xff] %v963_v48  ;;  %v838_v58 = vadd.f32 %v1280_v7, %v703_v49  ;;  %v578_v60 = vmul.f32 %v1274_v5, %v173_v46  ;;  %v309_v61 = vmul.f32 %v1263_v2, %v46_v47 }
  0x25   :  { %v705_v59 = vadd.f32 %v577_v51, %v442_v50  ;;  %1092 = vst [vmem:[%s2984_s6 + $0x88] sm:$0xff] %v964_v53  ;;  %v965_v0 = vmax.f32 %v837_v54, 0.0  ;;  %v443_v3 = vadd.f32 %v1269_v4, %v308_v56  ;;  %v579_v6 = vmul.f32 %v1274_v5, %v174_v52  ;;  %v181_v50 = vld [vmem:[%s2981_s3 + $0xf0] sm:$0xff]  ;;  %v54_v51 = vld [vmem:[%s2978_s0 + $0xf8] sm:$0xff] }
  0x26   :  { %v839_v1 = vadd.f32 %v1280_v7, %v704_v55  ;;  %v966_v9 = vmax.f32 %v838_v58, 0.0  ;;  %v444_v11 = vadd.f32 %v1269_v4, %v309_v61  ;;  %v310_v12 = vmul.f32 %v1263_v2, %v47_v57  ;;  %v182_v56 = vld [vmem:[%s2981_s3 + $0xf8] sm:$0xff]  ;;  %v55_v61 = vld [vmem:[%s2978_s0 + $0x100] sm:$0xff] }
  0x27   :  { %v840_v10 = vadd.f32 %v1280_v7, %v705_v59  ;;  %1093 = vst [vmem:[%s2984_s6 + $0x90] sm:$0xff] %v965_v0  ;;  %v706_v16 = vadd.f32 %v578_v60, %v443_v3  ;;  %v580_v17 = vmul.f32 %v1274_v5, %v175_v62  ;;  %v311_v18 = vmul.f32 %v1263_v2, %v48_v63  ;;  %v183_v3 = vld [vmem:[%s2981_s3 + $0x100] sm:$0xff] }
  0x28   :  { %v967_v15 = vmax.f32 %v839_v1, 0.0  ;;  %1094 = vst [vmem:[%s2984_s6 + $0x98] sm:$0xff] %v966_v9  ;;  %v707_v22 = vadd.f32 %v579_v6, %v444_v11  ;;  %v445_v23 = vadd.f32 %v1269_v4, %v310_v12  ;;  %v581_v24 = vmul.f32 %v1274_v5, %v176_v8  ;;  %v56_v6 = vld [vmem:[%s2978_s0 + $0x108] sm:$0xff] }
  0x29   :  { %v968_v21 = vmax.f32 %v840_v10, 0.0  ;;  %v841_v26 = vadd.f32 %v1280_v7, %v706_v16  ;;  %v446_v27 = vadd.f32 %v1269_v4, %v311_v18  ;;  %v312_v28 = vmul.f32 %v1263_v2, %v49_v13  ;;  %v184_v12 = vld [vmem:[%s2981_s3 + $0x108] sm:$0xff]  ;;  %v185_v18 = vld [vmem:[%s2981_s3 + $0x110] sm:$0xff] }
  0x2a   :  { %1095 = vst [vmem:[%s2984_s6 + $0xa0] sm:$0xff] %v967_v15  ;;  %v582_v29 = vmul.f32 %v1274_v5, %v177_v14  ;;  %v842_v31 = vadd.f32 %v1280_v7, %v707_v22  ;;  %v708_v32 = vadd.f32 %v580_v17, %v445_v23  ;;  %v313_v33 = vmul.f32 %v1263_v2, %v50_v19  ;;  %v57_v17 = vld [vmem:[%s2978_s0 + $0x110] sm:$0xff]  ;;  %v58_v23 = vld [vmem:[%s2978_s0 + $0x118] sm:$0xff] }
  0x2b   :  { %1096 = vst [vmem:[%s2984_s6 + $0xa8] sm:$0xff] %v968_v21  ;;  %v583_v34 = vmul.f32 %v1274_v5, %v178_v20  ;;  %v969_v36 = vmax.f32 %v841_v26, 0.0  ;;  %v709_v37 = vadd.f32 %v581_v24, %v446_v27  ;;  %v447_v38 = vadd.f32 %v1269_v4, %v312_v28  ;;  %v186_v28 = vld [vmem:[%s2981_s3 + $0x118] sm:$0xff] }
  0x2c   :  { %v314_v39 = vmul.f32 %v1263_v2, %v51_v25  ;;  %v970_v42 = vmax.f32 %v842_v31, 0.0  ;;  %v843_v43 = vadd.f32 %v1280_v7, %v708_v32  ;;  %v448_v44 = vadd.f32 %v1269_v4, %v313_v33 }
  0x2d   :  { %v584_v45 = vmul.f32 %v1274_v5, %v179_v30  ;;  %1097 = vst [vmem:[%s2984_s6 + $0xb0] sm:$0xff] %v969_v36  ;;  %v844_v46 = vadd.f32 %v1280_v7, %v709_v37  ;;  %v710_v47 = vadd.f32 %v582_v29, %v447_v38  ;;  %v315_v49 = vmul.f32 %v1263_v2, %v52_v35  ;;  %v59_v29 = vld [vmem:[%s2978_s0 + $0x120] sm:$0xff] }
  0x2e   :  { %v449_v48 = vadd.f32 %v1269_v4, %v314_v39  ;;  %1098 = vst [vmem:[%s2984_s6 + $0xb8] sm:$0xff] %v970_v42  ;;  %v971_v52 = vmax.f32 %v843_v43, 0.0  ;;  %v711_v53 = vadd.f32 %v583_v34, %v448_v44  ;;  %v585_v54 = vmul.f32 %v1274_v5, %v180_v40  ;;  %v187_v34 = vld [vmem:[%s2981_s3 + $0x120] sm:$0xff]  ;;  %v60_v39 = vld [vmem:[%s2978_s0 + $0x128] sm:$0xff] }
  0x2f   :  { %v316_v55 = vmul.f32 %v1263_v2, %v53_v41  ;;  %v972_v57 = vmax.f32 %v844_v46, 0.0  ;;  %v845_v58 = vadd.f32 %v1280_v7, %v710_v47  ;;  %v450_v60 = vadd.f32 %v1269_v4, %v315_v49  ;;  %v188_v44 = vld [vmem:[%s2981_s3 + $0x128] sm:$0xff] }
  0x30   :  { %v712_v59 = vadd.f32 %v584_v45, %v449_v48  ;;  %1099 = vst [vmem:[%s2984_s6 + $0xc0] sm:$0xff] %v971_v52  ;;  %v846_v62 = vadd.f32 %v1280_v7, %v711_v53  ;;  %v586_v0 = vmul.f32 %v1274_v5, %v181_v50  ;;  %v317_v1 = vmul.f32 %v1263_v2, %v54_v51  ;;  %v61_v45 = vld [vmem:[%s2978_s0 + $0x130] sm:$0xff] }
  0x31   :  { %v451_v63 = vadd.f32 %v1269_v4, %v316_v55  ;;  %1100 = vst [vmem:[%s2984_s6 + $0xc8] sm:$0xff] %v972_v57  ;;  %v973_v8 = vmax.f32 %v845_v58, 0.0  ;;  %v713_v10 = vadd.f32 %v585_v54, %v450_v60  ;;  %v587_v11 = vmul.f32 %v1274_v5, %v182_v56  ;;  %v189_v54 = vld [vmem:[%s2981_s3 + $0x130] sm:$0xff]  ;;  %v62_v55 = vld [vmem:[%s2978_s0 + $0x138] sm:$0xff] }
  0x32   :  { %v847_v9 = vadd.f32 %v1280_v7, %v712_v59  ;;  %v974_v13 = vmax.f32 %v846_v62, 0.0  ;;  %v452_v15 = vadd.f32 %v1269_v4, %v317_v1  ;;  %v318_v16 = vmul.f32 %v1263_v2, %v55_v61  ;;  %v190_v60 = vld [vmem:[%s2981_s3 + $0x138] sm:$0xff]  ;;  %v63_v1 = vld [vmem:[%s2978_s0 + $0x140] sm:$0xff] }
  0x33   :  { %v714_v14 = vadd.f32 %v586_v0, %v451_v63  ;;  %1101 = vst [vmem:[%s2984_s6 + $0xd0] sm:$0xff] %v973_v8  ;;  %v848_v20 = vadd.f32 %v1280_v7, %v713_v10  ;;  %v588_v21 = vmul.f32 %v1274_v5, %v183_v3  ;;  %v319_v22 = vmul.f32 %v1263_v2, %v56_v6  ;;  %v191_v10 = vld [vmem:[%s2981_s3 + $0x140] sm:$0xff] }
  0x34   :  { %v975_v19 = vmax.f32 %v847_v9, 0.0  ;;  %1102 = vst [vmem:[%s2984_s6 + $0xd8] sm:$0xff] %v974_v13  ;;  %v715_v25 = vadd.f32 %v587_v11, %v452_v15  ;;  %v453_v26 = vadd.f32 %v1269_v4, %v318_v16  ;;  %v589_v27 = vmul.f32 %v1274_v5, %v184_v12  ;;  %v64_v11 = vld [vmem:[%s2978_s0 + $0x148] sm:$0xff] }
  0x35   :  { %v849_v24 = vadd.f32 %v1280_v7, %v714_v14  ;;  %v976_v30 = vmax.f32 %v848_v20, 0.0  ;;  %v454_v31 = vadd.f32 %v1269_v4, %v319_v22  ;;  %v320_v32 = vmul.f32 %v1263_v2, %v57_v17  ;;  %v192_v16 = vld [vmem:[%s2981_s3 + $0x148] sm:$0xff]  ;;  %v193_v22 = vld [vmem:[%s2981_s3 + $0x150] sm:$0xff] }
  0x36   :  { %1103 = vst [vmem:[%s2984_s6 + $0xe0] sm:$0xff] %v975_v19  ;;  %v590_v33 = vmul.f32 %v1274_v5, %v185_v18  ;;  %v850_v36 = vadd.f32 %v1280_v7, %v715_v25  ;;  %v716_v37 = vadd.f32 %v588_v21, %v453_v26  ;;  %v321_v38 = vmul.f32 %v1263_v2, %v58_v23  ;;  %v65_v21 = vld [vmem:[%s2978_s0 + $0x150] sm:$0xff] }
  0x37   :  { %v977_v35 = vmax.f32 %v849_v24, 0.0  ;;  %1104 = vst [vmem:[%s2984_s6 + $0xe8] sm:$0xff] %v976_v30  ;;  %v717_v40 = vadd.f32 %v589_v27, %v454_v31  ;;  %v455_v41 = vadd.f32 %v1269_v4, %v320_v32  ;;  %v591_v42 = vmul.f32 %v1274_v5, %v186_v28  ;;  %v66_v27 = vld [vmem:[%s2978_s0 + $0x158] sm:$0xff] }
  0x38   :  { %v322_v43 = vmul.f32 %v1263_v2, %v59_v29  ;;  %v978_v46 = vmax.f32 %v850_v36, 0.0  ;;  %v851_v47 = vadd.f32 %v1280_v7, %v716_v37  ;;  %v456_v48 = vadd.f32 %v1269_v4, %v321_v38  ;;  %v194_v32 = vld [vmem:[%s2981_s3 + $0x158] sm:$0xff]  ;;  %v195_v38 = vld [vmem:[%s2981_s3 + $0x160] sm:$0xff] }
  0x39   :  { %1105 = vst [vmem:[%s2984_s6 + $0xf0] sm:$0xff] %v977_v35  ;;  %v592_v49 = vmul.f32 %v1274_v5, %v187_v34  ;;  %v852_v50 = vadd.f32 %v1280_v7, %v717_v40  ;;  %v718_v51 = vadd.f32 %v590_v33, %v455_v41  ;;  %v323_v53 = vmul.f32 %v1263_v2, %v60_v39  ;;  %v67_v33 = vld [vmem:[%s2978_s0 + $0x160] sm:$0xff] }
  0x3a   :  { %v457_v52 = vadd.f32 %v1269_v4, %v322_v43  ;;  %1106 = vst [vmem:[%s2984_s6 + $0xf8] sm:$0xff] %v978_v46  ;;  %v979_v56 = vmax.f32 %v851_v47, 0.0  ;;  %v719_v57 = vadd.f32 %v591_v42, %v456_v48  ;;  %v593_v58 = vmul.f32 %v1274_v5, %v188_v44  ;;  %v68_v43 = vld [vmem:[%s2978_s0 + $0x168] sm:$0xff] }
  0x3b   :  { %v324_v59 = vmul.f32 %v1263_v2, %v61_v45  ;;  %v980_v61 = vmax.f32 %v852_v50, 0.0  ;;  %v853_v62 = vadd.f32 %v1280_v7, %v718_v51  ;;  %v458_v0 = vadd.f32 %v1269_v4, %v323_v53  ;;  %v196_v48 = vld [vmem:[%s2981_s3 + $0x168] sm:$0xff] }
  0x3c   :  { %v720_v63 = vadd.f32 %v592_v49, %v457_v52  ;;  %1107 = vst [vmem:[%s2984_s6 + $0x100] sm:$0xff] %v979_v56  ;;  %v854_v3 = vadd.f32 %v1280_v7, %v719_v57  ;;  %v594_v8 = vmul.f32 %v1274_v5, %v189_v54  ;;  %v325_v9 = vmul.f32 %v1263_v2, %v62_v55  ;;  %v69_v49 = vld [vmem:[%s2978_s0 + $0x170] sm:$0xff] }
  0x3d   :  { %v459_v6 = vadd.f32 %v1269_v4, %v324_v59  ;;  %1108 = vst [vmem:[%s2984_s6 + $0x108] sm:$0xff] %v980_v61  ;;  %v981_v12 = vmax.f32 %v853_v62, 0.0  ;;  %v721_v14 = vadd.f32 %v593_v58, %v458_v0  ;;  %v595_v15 = vmul.f32 %v1274_v5, %v190_v60  ;;  %v197_v58 = vld [vmem:[%s2981_s3 + $0x170] sm:$0xff]  ;;  %v70_v59 = vld [vmem:[%s2978_s0 + $0x178] sm:$0xff] }
  0x3e   :  { %v855_v13 = vadd.f32 %v1280_v7, %v720_v63  ;;  %v982_v17 = vmax.f32 %v854_v3, 0.0  ;;  %v460_v19 = vadd.f32 %v1269_v4, %v325_v9  ;;  %v326_v20 = vmul.f32 %v1263_v2, %v63_v1  ;;  %v198_v0 = vld [vmem:[%s2981_s3 + $0x178] sm:$0xff]  ;;  %v71_v9 = vld [vmem:[%s2978_s0 + $0x180] sm:$0xff] }
  0x3f   :  { %v722_v18 = vadd.f32 %v594_v8, %v459_v6  ;;  %1109 = vst [vmem:[%s2984_s6 + $0x110] sm:$0xff] %v981_v12  ;;  %v856_v24 = vadd.f32 %v1280_v7, %v721_v14  ;;  %v596_v25 = vmul.f32 %v1274_v5, %v191_v10  ;;  %v327_v26 = vmul.f32 %v1263_v2, %v64_v11  ;;  %v199_v14 = vld [vmem:[%s2981_s3 + $0x180] sm:$0xff] }
  0x40   :  { %v983_v23 = vmax.f32 %v855_v13, 0.0  ;;  %1110 = vst [vmem:[%s2984_s6 + $0x118] sm:$0xff] %v982_v17  ;;  %v723_v29 = vadd.f32 %v595_v15, %v460_v19  ;;  %v461_v30 = vadd.f32 %v1269_v4, %v326_v20  ;;  %v597_v31 = vmul.f32 %v1274_v5, %v192_v16  ;;  %v72_v15 = vld [vmem:[%s2978_s0 + $0x188] sm:$0xff] }
  0x41   :  { %v857_v28 = vadd.f32 %v1280_v7, %v722_v18  ;;  %v984_v34 = vmax.f32 %v856_v24, 0.0  ;;  %v462_v35 = vadd.f32 %v1269_v4, %v327_v26  ;;  %v328_v36 = vmul.f32 %v1263_v2, %v65_v21  ;;  %v200_v20 = vld [vmem:[%s2981_s3 + $0x188] sm:$0xff]  ;;  %v201_v26 = vld [vmem:[%s2981_s3 + $0x190] sm:$0xff] }
  0x42   :  { %1111 = vst [vmem:[%s2984_s6 + $0x120] sm:$0xff] %v983_v23  ;;  %v598_v37 = vmul.f32 %v1274_v5, %v193_v22  ;;  %v858_v40 = vadd.f32 %v1280_v7, %v723_v29  ;;  %v724_v41 = vadd.f32 %v596_v25, %v461_v30  ;;  %v329_v42 = vmul.f32 %v1263_v2, %v66_v27  ;;  %v73_v25 = vld [vmem:[%s2978_s0 + $0x190] sm:$0xff] }
  0x43   :  { %v985_v39 = vmax.f32 %v857_v28, 0.0  ;;  %1112 = vst [vmem:[%s2984_s6 + $0x128] sm:$0xff] %v984_v34  ;;  %v725_v44 = vadd.f32 %v597_v31, %v462_v35  ;;  %v463_v45 = vadd.f32 %v1269_v4, %v328_v36  ;;  %v599_v46 = vmul.f32 %v1274_v5, %v194_v32  ;;  %v74_v31 = vld [vmem:[%s2978_s0 + $0x198] sm:$0xff] }
  0x44   :  { %v330_v47 = vmul.f32 %v1263_v2, %v67_v33  ;;  %v986_v50 = vmax.f32 %v858_v40, 0.0  ;;  %v859_v51 = vadd.f32 %v1280_v7, %v724_v41  ;;  %v464_v52 = vadd.f32 %v1269_v4, %v329_v42  ;;  %v202_v36 = vld [vmem:[%s2981_s3 + $0x198] sm:$0xff]  ;;  %v203_v42 = vld [vmem:[%s2981_s3 + $0x1a0] sm:$0xff] }
  0x45   :  { %1113 = vst [vmem:[%s2984_s6 + $0x130] sm:$0xff] %v985_v39  ;;  %v600_v53 = vmul.f32 %v1274_v5, %v195_v38  ;;  %v860_v54 = vadd.f32 %v1280_v7, %v725_v44  ;;  %v726_v55 = vadd.f32 %v598_v37, %v463_v45  ;;  %v331_v57 = vmul.f32 %v1263_v2, %v68_v43  ;;  %v75_v37 = vld [vmem:[%s2978_s0 + $0x1a0] sm:$0xff] }
  0x46   :  { %v465_v56 = vadd.f32 %v1269_v4, %v330_v47  ;;  %1114 = vst [vmem:[%s2984_s6 + $0x138] sm:$0xff] %v986_v50  ;;  %v987_v60 = vmax.f32 %v859_v51, 0.0  ;;  %v727_v61 = vadd.f32 %v599_v46, %v464_v52  ;;  %v601_v62 = vmul.f32 %v1274_v5, %v196_v48  ;;  %v76_v47 = vld [vmem:[%s2978_s0 + $0x1a8] sm:$0xff] }
  0x47   :  { %v332_v63 = vmul.f32 %v1263_v2, %v69_v49  ;;  %v988_v1 = vmax.f32 %v860_v54, 0.0  ;;  %v861_v3 = vadd.f32 %v1280_v7, %v726_v55  ;;  %v466_v8 = vadd.f32 %v1269_v4, %v331_v57  ;;  %v204_v52 = vld [vmem:[%s2981_s3 + $0x1a8] sm:$0xff] }
  0x48   :  { %v728_v6 = vadd.f32 %v600_v53, %v465_v56  ;;  %1115 = vst [vmem:[%s2984_s6 + $0x140] sm:$0xff] %v987_v60  ;;  %v862_v10 = vadd.f32 %v1280_v7, %v727_v61  ;;  %v602_v12 = vmul.f32 %v1274_v5, %v197_v58  ;;  %v333_v13 = vmul.f32 %v1263_v2, %v70_v59  ;;  %v77_v53 = vld [vmem:[%s2978_s0 + $0x1b0] sm:$0xff] }
  0x49   :  { %v467_v11 = vadd.f32 %v1269_v4, %v332_v63  ;;  %1116 = vst [vmem:[%s2984_s6 + $0x148] sm:$0xff] %v988_v1  ;;  %v989_v16 = vmax.f32 %v861_v3, 0.0  ;;  %v729_v18 = vadd.f32 %v601_v62, %v466_v8  ;;  %v603_v19 = vmul.f32 %v1274_v5, %v198_v0  ;;  %v205_v62 = vld [vmem:[%s2981_s3 + $0x1b0] sm:$0xff]  ;;  %v78_v63 = vld [vmem:[%s2978_s0 + $0x1b8] sm:$0xff] }
  0x4a   :  { %v863_v17 = vadd.f32 %v1280_v7, %v728_v6  ;;  %v990_v21 = vmax.f32 %v862_v10, 0.0  ;;  %v468_v23 = vadd.f32 %v1269_v4, %v333_v13  ;;  %v334_v24 = vmul.f32 %v1263_v2, %v71_v9  ;;  %v206_v8 = vld [vmem:[%s2981_s3 + $0x1b8] sm:$0xff]  ;;  %v79_v13 = vld [vmem:[%s2978_s0 + $0x1c0] sm:$0xff] }
  0x4b   :  { %v730_v22 = vadd.f32 %v602_v12, %v467_v11  ;;  %1117 = vst [vmem:[%s2984_s6 + $0x150] sm:$0xff] %v989_v16  ;;  %v864_v28 = vadd.f32 %v1280_v7, %v729_v18  ;;  %v604_v29 = vmul.f32 %v1274_v5, %v199_v14  ;;  %v335_v30 = vmul.f32 %v1263_v2, %v72_v15  ;;  %v207_v18 = vld [vmem:[%s2981_s3 + $0x1c0] sm:$0xff] }
  0x4c   :  { %v991_v27 = vmax.f32 %v863_v17, 0.0  ;;  %1118 = vst [vmem:[%s2984_s6 + $0x158] sm:$0xff] %v990_v21  ;;  %v731_v33 = vadd.f32 %v603_v19, %v468_v23  ;;  %v469_v34 = vadd.f32 %v1269_v4, %v334_v24  ;;  %v605_v35 = vmul.f32 %v1274_v5, %v200_v20  ;;  %v80_v19 = vld [vmem:[%s2978_s0 + $0x1c8] sm:$0xff] }
  0x4d   :  { %v865_v32 = vadd.f32 %v1280_v7, %v730_v22  ;;  %v992_v38 = vmax.f32 %v864_v28, 0.0  ;;  %v470_v39 = vadd.f32 %v1269_v4, %v335_v30  ;;  %v336_v40 = vmul.f32 %v1263_v2, %v73_v25  ;;  %v208_v24 = vld [vmem:[%s2981_s3 + $0x1c8] sm:$0xff]  ;;  %v209_v30 = vld [vmem:[%s2981_s3 + $0x1d0] sm:$0xff] }
  0x4e   :  { %1119 = vst [vmem:[%s2984_s6 + $0x160] sm:$0xff] %v991_v27  ;;  %v606_v41 = vmul.f32 %v1274_v5, %v201_v26  ;;  %v866_v44 = vadd.f32 %v1280_v7, %v731_v33  ;;  %v732_v45 = vadd.f32 %v604_v29, %v469_v34  ;;  %v337_v46 = vmul.f32 %v1263_v2, %v74_v31  ;;  %v81_v29 = vld [vmem:[%s2978_s0 + $0x1d0] sm:$0xff] }
  0x4f   :  { %v993_v43 = vmax.f32 %v865_v32, 0.0  ;;  %1120 = vst [vmem:[%s2984_s6 + $0x168] sm:$0xff] %v992_v38  ;;  %v733_v48 = vadd.f32 %v605_v35, %v470_v39  ;;  %v471_v49 = vadd.f32 %v1269_v4, %v336_v40  ;;  %v607_v50 = vmul.f32 %v1274_v5, %v202_v36  ;;  %v82_v35 = vld [vmem:[%s2978_s0 + $0x1d8] sm:$0xff] }
  0x50   :  { %v338_v51 = vmul.f32 %v1263_v2, %v75_v37  ;;  %v994_v54 = vmax.f32 %v866_v44, 0.0  ;;  %v867_v55 = vadd.f32 %v1280_v7, %v732_v45  ;;  %v472_v56 = vadd.f32 %v1269_v4, %v337_v46  ;;  %v210_v40 = vld [vmem:[%s2981_s3 + $0x1d8] sm:$0xff]  ;;  %v211_v45 = vld [vmem:[%s2981_s3 + $0x1e0] sm:$0xff] }
  0x51   :  { %1121 = vst [vmem:[%s2984_s6 + $0x170] sm:$0xff] %v993_v43  ;;  %v608_v57 = vmul.f32 %v1274_v5, %v203_v42  ;;  %v868_v58 = vadd.f32 %v1280_v7, %v733_v48  ;;  %v734_v59 = vadd.f32 %v606_v41, %v471_v49  ;;  %v339_v61 = vmul.f32 %v1263_v2, %v76_v47  ;;  %v2039_v43 = vld [vmem:[%s2982_s4] ss:$0 sm:$0xff] }
  0x52   :  { %v473_v60 = vadd.f32 %v1269_v4, %v338_v51  ;;  %1122 = vst [vmem:[%s2984_s6 + $0x178] sm:$0xff] %v994_v54  ;;  %v995_v0 = vmax.f32 %v867_v55, 0.0  ;;  %v735_v1 = vadd.f32 %v607_v50, %v472_v56  ;;  %v609_v3 = vmul.f32 %v1274_v5, %v204_v52  ;;  %v2048_v47 = vld [vmem:[%s2983_s5] ss:$0 sm:$0xff]  ;;  %v84_v51 = vld [vmem:[%s2978_s0 + $0x1e8] sm:$0xff] }
  0x53   :  { %v340_v6 = vmul.f32 %v1263_v2, %v77_v53  ;;  %v996_v9 = vmax.f32 %v868_v58, 0.0  ;;  %v869_v10 = vadd.f32 %v1280_v7, %v734_v59  ;;  %v474_v12 = vadd.f32 %v1269_v4, %v339_v61  ;;  %v212_v56 = vld [vmem:[%s2981_s3 + $0x1e8] sm:$0xff] }
  0x54   :  { %v736_v11 = vadd.f32 %v608_v57, %v473_v60  ;;  %1123 = vst [vmem:[%s2984_s6 + $0x180] sm:$0xff] %v995_v0  ;;  %v870_v14 = vadd.f32 %v1280_v7, %v735_v1  ;;  %v610_v16 = vmul.f32 %v1274_v5, %v205_v62  ;;  %v341_v17 = vmul.f32 %v1263_v2, %v78_v63  ;;  %v85_v57 = vld [vmem:[%s2978_s0 + $0x1f0] sm:$0xff] }
  0x55   :  { %v475_v15 = vadd.f32 %v1269_v4, %v340_v6  ;;  %1124 = vst [vmem:[%s2984_s6 + $0x188] sm:$0xff] %v996_v9  ;;  %v997_v20 = vmax.f32 %v869_v10, 0.0  ;;  %v737_v22 = vadd.f32 %v609_v3, %v474_v12  ;;  %v611_v23 = vmul.f32 %v1274_v5, %v206_v8  ;;  %v213_v3 = vld [vmem:[%s2981_s3 + $0x1f0] sm:$0xff]  ;;  %v86_v6 = vld [vmem:[%s2978_s0 + $0x1f8] sm:$0xff] }
  0x56   :  { %v871_v21 = vadd.f32 %v1280_v7, %v736_v11  ;;  %v998_v25 = vmax.f32 %v870_v14, 0.0  ;;  %v476_v27 = vadd.f32 %v1269_v4, %v341_v17  ;;  %v342_v28 = vmul.f32 %v1263_v2, %v79_v13  ;;  %v214_v12 = vld [vmem:[%s2981_s3 + $0x1f8] sm:$0xff]  ;;  %v87_v17 = vld [vmem:[%s2978_s0 + $0x200] sm:$0xff] }
  0x57   :  { %v738_v26 = vadd.f32 %v610_v16, %v475_v15  ;;  %1125 = vst [vmem:[%s2984_s6 + $0x190] sm:$0xff] %v997_v20  ;;  %v872_v32 = vadd.f32 %v1280_v7, %v737_v22  ;;  %v612_v33 = vmul.f32 %v1274_v5, %v207_v18  ;;  %v343_v34 = vmul.f32 %v1263_v2, %v80_v19  ;;  %v83_v2 = vld [vmem:[%s2978_s0 + $0x1e0] sm:$0xff] }
  0x58   :  { %v999_v31 = vmax.f32 %v871_v21, 0.0  ;;  %1126 = vst [vmem:[%s2984_s6 + $0x198] sm:$0xff] %v998_v25  ;;  %v739_v37 = vadd.f32 %v611_v23, %v476_v27  ;;  %v477_v38 = vadd.f32 %v1269_v4, %v342_v28  ;;  %v613_v39 = vmul.f32 %v1274_v5, %v208_v24  ;;  %v2033_v5 = vld [vmem:[%s2979_s1] ss:$0 sm:$0xff]  ;;  %v88_v23 = vld [vmem:[%s2978_s0 + $0x208] sm:$0xff] }
  0x59   :  { %v873_v36 = vadd.f32 %v1280_v7, %v738_v26  ;;  %v1000_v41 = vmax.f32 %v872_v32, 0.0  ;;  %v2027_v7 = vld [vmem:[%s2980_s2] ss:$0 sm:$0xff]  ;;  %v344_v42 = vmul.f32 %v2033_v5, %v81_v29  ;;  %v614_v44 = vmul.f32 %v2039_v43, %v209_v30  ;;  %v216_v28 = vld [vmem:[%s2981_s3 + $0x208] sm:$0xff] }
  0x5a   :  { %1127 = vst [vmem:[%s2984_s6 + $0x1a0] sm:$0xff] %v999_v31  ;;  %v478_v4 = vadd.f32 %v2027_v7, %v343_v34  ;;  %v874_v48 = vadd.f32 %v2048_v47, %v739_v37  ;;  %v740_v49 = vadd.f32 %v612_v33, %v477_v38  ;;  %v345_v50 = vmul.f32 %v2033_v5, %v82_v35  ;;  %v215_v22 = vld [vmem:[%s2981_s3 + $0x200] sm:$0xff]  ;;  %v89_v33 = vld [vmem:[%s2978_s0 + $0x210] sm:$0xff] }
  0x5b   :  { %v1001_v46 = vmax.f32 %v873_v36, 0.0  ;;  %1128 = vst [vmem:[%s2984_s6 + $0x1a8] sm:$0xff] %v1000_v41  ;;  %v479_v53 = vadd.f32 %v2027_v7, %v344_v42  ;;  %v615_v54 = vmul.f32 %v2039_v43, %v210_v40  ;;  %v346_v55 = vmul.f32 %v2033_v5, %v83_v2  ;;  %v217_v34 = vld [vmem:[%s2981_s3 + $0x210] sm:$0xff]  ;;  %v218_v42 = vld [vmem:[%s2981_s3 + $0x218] sm:$0xff] }
  0x5c   :  { %v741_v52 = vadd.f32 %v613_v39, %v478_v4  ;;  %v1002_v58 = vmax.f32 %v874_v48, 0.0  ;;  %v875_v59 = vadd.f32 %v2048_v47, %v740_v49  ;;  %v480_v60 = vadd.f32 %v2027_v7, %v345_v50  ;;  %v90_v39 = vld [vmem:[%s2978_s0 + $0x218] sm:$0xff]  ;;  %v219_v50 = vld [vmem:[%s2981_s3 + $0x220] sm:$0xff] }
  0x5d   :  { %1129 = vst [vmem:[%s2984_s6 + $0x1b0] sm:$0xff] %v1001_v46  ;;  %v616_v61 = vmul.f32 %v2039_v43, %v211_v45  ;;  %v742_v63 = vadd.f32 %v614_v44, %v479_v53  ;;  %v481_v0 = vadd.f32 %v2027_v7, %v346_v55  ;;  %v347_v1 = vmul.f32 %v2033_v5, %v84_v51  ;;  %v91_v44 = vld [vmem:[%s2978_s0 + $0x220] sm:$0xff]  ;;  %v92_v55 = vld [vmem:[%s2978_s0 + $0x228] sm:$0xff] }
  0x5e   :  { %v876_v62 = vadd.f32 %v2048_v47, %v741_v52  ;;  %1130 = vst [vmem:[%s2984_s6 + $0x1b8] sm:$0xff] %v1002_v58  ;;  %v1003_v8 = vmax.f32 %v875_v59, 0.0  ;;  %v743_v9 = vadd.f32 %v615_v54, %v480_v60  ;;  %v617_v10 = vmul.f32 %v2039_v43, %v212_v56  ;;  %v220_v60 = vld [vmem:[%s2981_s3 + $0x228] sm:$0xff] }
  0x5f   :  { %v348_v11 = vmul.f32 %v2033_v5, %v85_v57  ;;  %v877_v14 = vadd.f32 %v2048_v47, %v742_v63  ;;  %v744_v15 = vadd.f32 %v616_v61, %v481_v0  ;;  %v482_v16 = vadd.f32 %v2027_v7, %v347_v1  ;;  %v93_v61 = vld [vmem:[%s2978_s0 + $0x230] sm:$0xff] }
  0x60   :  { %v1004_v13 = vmax.f32 %v876_v62, 0.0  ;;  %1131 = vst [vmem:[%s2984_s6 + $0x1c0] sm:$0xff] %v1003_v8  ;;  %v878_v18 = vadd.f32 %v2048_v47, %v743_v9  ;;  %v618_v20 = vmul.f32 %v2039_v43, %v213_v3  ;;  %v349_v21 = vmul.f32 %v2033_v5, %v86_v6 }
  0x61   :  { %v483_v19 = vadd.f32 %v2027_v7, %v348_v11  ;;  %v1005_v24 = vmax.f32 %v877_v14, 0.0  ;;  %v879_v25 = vadd.f32 %v2048_v47, %v744_v15  ;;  %v745_v26 = vadd.f32 %v617_v10, %v482_v16  ;;  %v221_v10 = vld [vmem:[%s2981_s3 + $0x230] sm:$0xff]  ;;  %v94_v11 = vld [vmem:[%s2978_s0 + $0x238] sm:$0xff] }
  0x62   :  { %1132 = vst [vmem:[%s2984_s6 + $0x1c8] sm:$0xff] %v1004_v13  ;;  %v619_v27 = vmul.f32 %v2039_v43, %v214_v12  ;;  %v1006_v29 = vmax.f32 %v878_v18, 0.0  ;;  %v484_v31 = vadd.f32 %v2027_v7, %v349_v21  ;;  %v350_v32 = vmul.f32 %v2033_v5, %v87_v17  ;;  %v222_v16 = vld [vmem:[%s2981_s3 + $0x238] sm:$0xff]  ;;  %v95_v21 = vld [vmem:[%s2978_s0 + $0x240] sm:$0xff] }
  0x63   :  { %v746_v30 = vadd.f32 %v618_v20, %v483_v19  ;;  %1133 = vst [vmem:[%s2984_s6 + $0x1d0] sm:$0xff] %v1005_v24  ;;  %v1007_v35 = vmax.f32 %v879_v25, 0.0  ;;  %v880_v36 = vadd.f32 %v2048_v47, %v745_v26  ;;  %v620_v37 = vmul.f32 %v2039_v43, %v215_v22  ;;  %v223_v26 = vld [vmem:[%s2981_s3 + $0x240] sm:$0xff] }
  0x64   :  { %v351_v38 = vmul.f32 %v2033_v5, %v88_v23  ;;  %1134 = vst [vmem:[%s2984_s6 + $0x1d8] sm:$0xff] %v1006_v29  ;;  %v747_v2 = vadd.f32 %v619_v27, %v484_v31  ;;  %v485_v41 = vadd.f32 %v2027_v7, %v350_v32  ;;  %v621_v4 = vmul.f32 %v2039_v43, %v216_v28  ;;  %v96_v27 = vld [vmem:[%s2978_s0 + $0x248] sm:$0xff] }
  0x65   :  { %v881_v40 = vadd.f32 %v2048_v47, %v746_v30  ;;  %1135 = vst [vmem:[%s2984_s6 + $0x1e0] sm:$0xff] %v1007_v35  ;;  %v1008_v45 = vmax.f32 %v880_v36, 0.0  ;;  %v352_v48 = vmul.f32 %v2033_v5, %v89_v33  ;;  %v622_v49 = vmul.f32 %v2039_v43, %v217_v34  ;;  %v224_v32 = vld [vmem:[%s2981_s3 + $0x248] sm:$0xff] }
  0x66   :  { %v486_v46 = vadd.f32 %v2027_v7, %v351_v38  ;;  %v882_v52 = vadd.f32 %v2048_v47, %v747_v2  ;;  %v748_v53 = vadd.f32 %v620_v37, %v485_v41  ;;  %v353_v54 = vmul.f32 %v2033_v5, %v90_v39  ;;  %v97_v37 = vld [vmem:[%s2978_s0 + $0x250] sm:$0xff] }
  0x67   :  { %v1009_v51 = vmax.f32 %v881_v40, 0.0  ;;  %1136 = vst [vmem:[%s2984_s6 + $0x1e8] sm:$0xff] %v1008_v45  ;;  %v487_v57 = vadd.f32 %v2027_v7, %v352_v48  ;;  %v623_v58 = vmul.f32 %v2039_v43, %v218_v42  ;;  %v354_v59 = vmul.f32 %v2033_v5, %v91_v44  ;;  %v225_v38 = vld [vmem:[%s2981_s3 + $0x250] sm:$0xff]  ;;  %v226_v48 = vld [vmem:[%s2981_s3 + $0x258] sm:$0xff] }
  0x68   :  { %v749_v56 = vadd.f32 %v621_v4, %v486_v46  ;;  %v1010_v62 = vmax.f32 %v882_v52, 0.0  ;;  %v883_v63 = vadd.f32 %v2048_v47, %v748_v53  ;;  %v488_v0 = vadd.f32 %v2027_v7, %v353_v54  ;;  %v98_v4 = vld [vmem:[%s2978_s0 + $0x258] sm:$0xff]  ;;  %v227_v54 = vld [vmem:[%s2981_s3 + $0x260] sm:$0xff] }
  0x69   :  { %1137 = vst [vmem:[%s2984_s6 + $0x1f0] sm:$0xff] %v1009_v51  ;;  %v624_v1 = vmul.f32 %v2039_v43, %v219_v50  ;;  %v750_v6 = vadd.f32 %v622_v49, %v487_v57  ;;  %v489_v8 = vadd.f32 %v2027_v7, %v354_v59  ;;  %v355_v9 = vmul.f32 %v2033_v5, %v92_v55  ;;  %v99_v49 = vld [vmem:[%s2978_s0 + $0x260] sm:$0xff]  ;;  %v100_v59 = vld [vmem:[%s2978_s0 + $0x268] sm:$0xff] }
  0x6a   :  { %v884_v3 = vadd.f32 %v2048_v47, %v749_v56  ;;  %1138 = vst [vmem:[%s2984_s6 + $0x1f8] sm:$0xff] %v1010_v62  ;;  %v1011_v12 = vmax.f32 %v883_v63, 0.0  ;;  %v751_v13 = vadd.f32 %v623_v58, %v488_v0  ;;  %v625_v14 = vmul.f32 %v2039_v43, %v220_v60  ;;  %v228_v0 = vld [vmem:[%s2981_s3 + $0x268] sm:$0xff] }
  0x6b   :  { %v356_v15 = vmul.f32 %v2033_v5, %v93_v61  ;;  %v885_v18 = vadd.f32 %v2048_v47, %v750_v6  ;;  %v752_v19 = vadd.f32 %v624_v1, %v489_v8  ;;  %v490_v20 = vadd.f32 %v2027_v7, %v355_v9  ;;  %v101_v1 = vld [vmem:[%s2978_s0 + $0x270] sm:$0xff] }
  0x6c   :  { %v1012_v17 = vmax.f32 %v884_v3, 0.0  ;;  %1139 = vst [vmem:[%s2984_s6 + $0x200] sm:$0xff] %v1011_v12  ;;  %v886_v22 = vadd.f32 %v2048_v47, %v751_v13  ;;  %v626_v24 = vmul.f32 %v2039_v43, %v221_v10  ;;  %v357_v25 = vmul.f32 %v2033_v5, %v94_v11 }
  0x6d   :  { %v491_v23 = vadd.f32 %v2027_v7, %v356_v15  ;;  %v1013_v28 = vmax.f32 %v885_v18, 0.0  ;;  %v887_v29 = vadd.f32 %v2048_v47, %v752_v19  ;;  %v753_v30 = vadd.f32 %v625_v14, %v490_v20  ;;  %v229_v14 = vld [vmem:[%s2981_s3 + $0x270] sm:$0xff]  ;;  %v102_v15 = vld [vmem:[%s2978_s0 + $0x278] sm:$0xff] }
  0x6e   :  { %1140 = vst [vmem:[%s2984_s6 + $0x208] sm:$0xff] %v1012_v17  ;;  %v627_v31 = vmul.f32 %v2039_v43, %v222_v16  ;;  %v1014_v33 = vmax.f32 %v886_v22, 0.0  ;;  %v492_v35 = vadd.f32 %v2027_v7, %v357_v25  ;;  %v358_v36 = vmul.f32 %v2033_v5, %v95_v21  ;;  %v230_v20 = vld [vmem:[%s2981_s3 + $0x278] sm:$0xff]  ;;  %v103_v25 = vld [vmem:[%s2978_s0 + $0x280] sm:$0xff] }
  0x6f   :  { %v754_v34 = vadd.f32 %v626_v24, %v491_v23  ;;  %1141 = vst [vmem:[%s2984_s6 + $0x210] sm:$0xff] %v1013_v28  ;;  %v1015_v39 = vmax.f32 %v887_v29, 0.0  ;;  %v888_v40 = vadd.f32 %v2048_v47, %v753_v30  ;;  %v628_v2 = vmul.f32 %v2039_v43, %v223_v26  ;;  %v231_v30 = vld [vmem:[%s2981_s3 + $0x280] sm:$0xff] }
  0x70   :  { %v359_v41 = vmul.f32 %v2033_v5, %v96_v27  ;;  %1142 = vst [vmem:[%s2984_s6 + $0x218] sm:$0xff] %v1014_v33  ;;  %v755_v44 = vadd.f32 %v627_v31, %v492_v35  ;;  %v493_v45 = vadd.f32 %v2027_v7, %v358_v36  ;;  %v629_v46 = vmul.f32 %v2039_v43, %v224_v32  ;;  %v104_v31 = vld [vmem:[%s2978_s0 + $0x288] sm:$0xff] }
  0x71   :  { %v889_v42 = vadd.f32 %v2048_v47, %v754_v34  ;;  %1143 = vst [vmem:[%s2984_s6 + $0x220] sm:$0xff] %v1015_v39  ;;  %v1016_v50 = vmax.f32 %v888_v40, 0.0  ;;  %v360_v52 = vmul.f32 %v2033_v5, %v97_v37  ;;  %v630_v53 = vmul.f32 %v2039_v43, %v225_v38  ;;  %v232_v36 = vld [vmem:[%s2981_s3 + $0x288] sm:$0xff] }
  0x72   :  { %v494_v51 = vadd.f32 %v2027_v7, %v359_v41  ;;  %v890_v56 = vadd.f32 %v2048_v47, %v755_v44  ;;  %v756_v57 = vadd.f32 %v628_v2, %v493_v45  ;;  %v361_v58 = vmul.f32 %v2033_v5, %v98_v4  ;;  %v105_v2 = vld [vmem:[%s2978_s0 + $0x290] sm:$0xff] }
  0x73   :  { %v1017_v55 = vmax.f32 %v889_v42, 0.0  ;;  %1144 = vst [vmem:[%s2984_s6 + $0x228] sm:$0xff] %v1016_v50  ;;  %v495_v61 = vadd.f32 %v2027_v7, %v360_v52  ;;  %v631_v62 = vmul.f32 %v2039_v43, %v226_v48  ;;  %v362_v63 = vmul.f32 %v2033_v5, %v99_v49  ;;  %v233_v41 = vld [vmem:[%s2981_s3 + $0x290] sm:$0xff]  ;;  %v234_v52 = vld [vmem:[%s2981_s3 + $0x298] sm:$0xff] }
  0x74   :  { %v757_v60 = vadd.f32 %v629_v46, %v494_v51  ;;  %v1018_v3 = vmax.f32 %v890_v56, 0.0  ;;  %v891_v6 = vadd.f32 %v2048_v47, %v756_v57  ;;  %v496_v8 = vadd.f32 %v2027_v7, %v361_v58  ;;  %v106_v46 = vld [vmem:[%s2978_s0 + $0x298] sm:$0xff]  ;;  %v235_v58 = vld [vmem:[%s2981_s3 + $0x2a0] sm:$0xff] }
  0x75   :  { %1145 = vst [vmem:[%s2984_s6 + $0x230] sm:$0xff] %v1017_v55  ;;  %v632_v9 = vmul.f32 %v2039_v43, %v227_v54  ;;  %v758_v11 = vadd.f32 %v630_v53, %v495_v61  ;;  %v497_v12 = vadd.f32 %v2027_v7, %v362_v63  ;;  %v363_v13 = vmul.f32 %v2033_v5, %v100_v59  ;;  %v107_v53 = vld [vmem:[%s2978_s0 + $0x2a0] sm:$0xff]  ;;  %v108_v63 = vld [vmem:[%s2978_s0 + $0x2a8] sm:$0xff] }
  0x76   :  { %v892_v10 = vadd.f32 %v2048_v47, %v757_v60  ;;  %1146 = vst [vmem:[%s2984_s6 + $0x238] sm:$0xff] %v1018_v3  ;;  %v1019_v16 = vmax.f32 %v891_v6, 0.0  ;;  %v759_v17 = vadd.f32 %v631_v62, %v496_v8  ;;  %v633_v18 = vmul.f32 %v2039_v43, %v228_v0  ;;  %v236_v8 = vld [vmem:[%s2981_s3 + $0x2a8] sm:$0xff] }
  0x77   :  { %v364_v19 = vmul.f32 %v2033_v5, %v101_v1  ;;  %v893_v22 = vadd.f32 %v2048_v47, %v758_v11  ;;  %v760_v23 = vadd.f32 %v632_v9, %v497_v12  ;;  %v498_v24 = vadd.f32 %v2027_v7, %v363_v13  ;;  %v109_v9 = vld [vmem:[%s2978_s0 + $0x2b0] sm:$0xff] }
  0x78   :  { %v1020_v21 = vmax.f32 %v892_v10, 0.0  ;;  %1147 = vst [vmem:[%s2984_s6 + $0x240] sm:$0xff] %v1019_v16  ;;  %v894_v26 = vadd.f32 %v2048_v47, %v759_v17  ;;  %v634_v28 = vmul.f32 %v2039_v43, %v229_v14  ;;  %v365_v29 = vmul.f32 %v2033_v5, %v102_v15 }
  0x79   :  { %v499_v27 = vadd.f32 %v2027_v7, %v364_v19  ;;  %v1021_v32 = vmax.f32 %v893_v22, 0.0  ;;  %v895_v33 = vadd.f32 %v2048_v47, %v760_v23  ;;  %v761_v34 = vadd.f32 %v633_v18, %v498_v24  ;;  %v237_v18 = vld [vmem:[%s2981_s3 + $0x2b0] sm:$0xff]  ;;  %v110_v19 = vld [vmem:[%s2978_s0 + $0x2b8] sm:$0xff] }
  0x7a   :  { %1148 = vst [vmem:[%s2984_s6 + $0x248] sm:$0xff] %v1020_v21  ;;  %v635_v35 = vmul.f32 %v2039_v43, %v230_v20  ;;  %v1022_v37 = vmax.f32 %v894_v26, 0.0  ;;  %v500_v39 = vadd.f32 %v2027_v7, %v365_v29  ;;  %v366_v40 = vmul.f32 %v2033_v5, %v103_v25  ;;  %v238_v24 = vld [vmem:[%s2981_s3 + $0x2b8] sm:$0xff]  ;;  %v111_v29 = vld [vmem:[%s2978_s0 + $0x2c0] sm:$0xff] }
  0x7b   :  { %v762_v38 = vadd.f32 %v634_v28, %v499_v27  ;;  %1149 = vst [vmem:[%s2984_s6 + $0x250] sm:$0xff] %v1021_v32  ;;  %v1023_v4 = vmax.f32 %v895_v33, 0.0  ;;  %v896_v42 = vadd.f32 %v2048_v47, %v761_v34  ;;  %v636_v44 = vmul.f32 %v2039_v43, %v231_v30  ;;  %v239_v34 = vld [vmem:[%s2981_s3 + $0x2c0] sm:$0xff] }
  0x7c   :  { %v367_v45 = vmul.f32 %v2033_v5, %v104_v31  ;;  %1150 = vst [vmem:[%s2984_s6 + $0x258] sm:$0xff] %v1022_v37  ;;  %v763_v49 = vadd.f32 %v635_v35, %v500_v39  ;;  %v501_v50 = vadd.f32 %v2027_v7, %v366_v40  ;;  %v637_v51 = vmul.f32 %v2039_v43, %v232_v36  ;;  %v112_v35 = vld [vmem:[%s2978_s0 + $0x2c8] sm:$0xff] }
  0x7d   :  { %v897_v48 = vadd.f32 %v2048_v47, %v762_v38  ;;  %1151 = vst [vmem:[%s2984_s6 + $0x260] sm:$0xff] %v1023_v4  ;;  %v1024_v54 = vmax.f32 %v896_v42, 0.0  ;;  %v368_v56 = vmul.f32 %v2033_v5, %v105_v2  ;;  %v638_v57 = vmul.f32 %v2039_v43, %v233_v41  ;;  %v240_v40 = vld [vmem:[%s2981_s3 + $0x2c8] sm:$0xff] }
  0x7e   :  { %v502_v55 = vadd.f32 %v2027_v7, %v367_v45  ;;  %v898_v60 = vadd.f32 %v2048_v47, %v763_v49  ;;  %v764_v61 = vadd.f32 %v636_v44, %v501_v50  ;;  %v369_v62 = vmul.f32 %v2033_v5, %v106_v46  ;;  %v113_v44 = vld [vmem:[%s2978_s0 + $0x2d0] sm:$0xff] }
  0x7f   :  { %v1025_v59 = vmax.f32 %v897_v48, 0.0  ;;  %1152 = vst [vmem:[%s2984_s6 + $0x268] sm:$0xff] %v1024_v54  ;;  %v503_v1 = vadd.f32 %v2027_v7, %v368_v56  ;;  %v639_v3 = vmul.f32 %v2039_v43, %v234_v52  ;;  %v370_v6 = vmul.f32 %v2033_v5, %v107_v53  ;;  %v241_v45 = vld [vmem:[%s2981_s3 + $0x2d0] sm:$0xff]  ;;  %v242_v56 = vld [vmem:[%s2981_s3 + $0x2d8] sm:$0xff] }
  0x80   :  { %v765_v0 = vadd.f32 %v637_v51, %v502_v55  ;;  %v1026_v10 = vmax.f32 %v898_v60, 0.0  ;;  %v899_v11 = vadd.f32 %v2048_v47, %v764_v61  ;;  %v504_v12 = vadd.f32 %v2027_v7, %v369_v62  ;;  %v114_v51 = vld [vmem:[%s2978_s0 + $0x2d8] sm:$0xff]  ;;  %v243_v62 = vld [vmem:[%s2981_s3 + $0x2e0] sm:$0xff] }
  0x81   :  { %1153 = vst [vmem:[%s2984_s6 + $0x270] sm:$0xff] %v1025_v59  ;;  %v640_v13 = vmul.f32 %v2039_v43, %v235_v58  ;;  %v766_v15 = vadd.f32 %v638_v57, %v503_v1  ;;  %v505_v16 = vadd.f32 %v2027_v7, %v370_v6  ;;  %v371_v17 = vmul.f32 %v2033_v5, %v108_v63  ;;  %v115_v57 = vld [vmem:[%s2978_s0 + $0x2e0] sm:$0xff]  ;;  %v116_v6 = vld [vmem:[%s2978_s0 + $0x2e8] sm:$0xff] }
  0x82   :  { %v900_v14 = vadd.f32 %v2048_v47, %v765_v0  ;;  %1154 = vst [vmem:[%s2984_s6 + $0x278] sm:$0xff] %v1026_v10  ;;  %v1027_v20 = vmax.f32 %v899_v11, 0.0  ;;  %v767_v21 = vadd.f32 %v639_v3, %v504_v12  ;;  %v641_v22 = vmul.f32 %v2039_v43, %v236_v8  ;;  %v244_v12 = vld [vmem:[%s2981_s3 + $0x2e8] sm:$0xff] }
  0x83   :  { %v372_v23 = vmul.f32 %v2033_v5, %v109_v9  ;;  %v901_v26 = vadd.f32 %v2048_v47, %v766_v15  ;;  %v768_v27 = vadd.f32 %v640_v13, %v505_v16  ;;  %v506_v28 = vadd.f32 %v2027_v7, %v371_v17  ;;  %v117_v13 = vld [vmem:[%s2978_s0 + $0x2f0] sm:$0xff] }
  0x84   :  { %v1028_v25 = vmax.f32 %v900_v14, 0.0  ;;  %1155 = vst [vmem:[%s2984_s6 + $0x280] sm:$0xff] %v1027_v20  ;;  %v902_v30 = vadd.f32 %v2048_v47, %v767_v21  ;;  %v642_v32 = vmul.f32 %v2039_v43, %v237_v18  ;;  %v373_v33 = vmul.f32 %v2033_v5, %v110_v19 }
  0x85   :  { %v507_v31 = vadd.f32 %v2027_v7, %v372_v23  ;;  %v1029_v36 = vmax.f32 %v901_v26, 0.0  ;;  %v903_v37 = vadd.f32 %v2048_v47, %v768_v27  ;;  %v769_v38 = vadd.f32 %v641_v22, %v506_v28  ;;  %v245_v22 = vld [vmem:[%s2981_s3 + $0x2f0] sm:$0xff]  ;;  %v118_v23 = vld [vmem:[%s2978_s0 + $0x2f8] sm:$0xff] }
  0x86   :  { %1156 = vst [vmem:[%s2984_s6 + $0x288] sm:$0xff] %v1028_v25  ;;  %v643_v39 = vmul.f32 %v2039_v43, %v238_v24  ;;  %v1030_v2 = vmax.f32 %v902_v30, 0.0  ;;  %v508_v4 = vadd.f32 %v2027_v7, %v373_v33  ;;  %v374_v42 = vmul.f32 %v2033_v5, %v111_v29  ;;  %v246_v28 = vld [vmem:[%s2981_s3 + $0x2f8] sm:$0xff]  ;;  %v119_v33 = vld [vmem:[%s2978_s0 + $0x300] sm:$0xff] }
  0x87   :  { %v770_v41 = vadd.f32 %v642_v32, %v507_v31  ;;  %1157 = vst [vmem:[%s2984_s6 + $0x290] sm:$0xff] %v1029_v36  ;;  %v1031_v46 = vmax.f32 %v903_v37, 0.0  ;;  %v904_v48 = vadd.f32 %v2048_v47, %v769_v38  ;;  %v644_v49 = vmul.f32 %v2039_v43, %v239_v34  ;;  %v247_v38 = vld [vmem:[%s2981_s3 + $0x300] sm:$0xff] }
  0x88   :  { %v375_v50 = vmul.f32 %v2033_v5, %v112_v35  ;;  %1158 = vst [vmem:[%s2984_s6 + $0x298] sm:$0xff] %v1030_v2  ;;  %v771_v53 = vadd.f32 %v643_v39, %v508_v4  ;;  %v509_v54 = vadd.f32 %v2027_v7, %v374_v42  ;;  %v645_v55 = vmul.f32 %v2039_v43, %v240_v40  ;;  %v120_v39 = vld [vmem:[%s2978_s0 + $0x308] sm:$0xff] }
  0x89   :  { %v905_v52 = vadd.f32 %v2048_v47, %v770_v41  ;;  %1159 = vst [vmem:[%s2984_s6 + $0x2a0] sm:$0xff] %v1031_v46  ;;  %v1032_v58 = vmax.f32 %v904_v48, 0.0  ;;  %v376_v60 = vmul.f32 %v2033_v5, %v113_v44  ;;  %v646_v61 = vmul.f32 %v2039_v43, %v241_v45  ;;  %v248_v42 = vld [vmem:[%s2981_s3 + $0x308] sm:$0xff] }
  0x8a   :  { %v510_v59 = vadd.f32 %v2027_v7, %v375_v50  ;;  %v906_v0 = vadd.f32 %v2048_v47, %v771_v53  ;;  %v772_v1 = vadd.f32 %v644_v49, %v509_v54  ;;  %v377_v3 = vmul.f32 %v2033_v5, %v114_v51  ;;  %v121_v49 = vld [vmem:[%s2978_s0 + $0x310] sm:$0xff] }
  0x8b   :  { %v1033_v63 = vmax.f32 %v905_v52, 0.0  ;;  %1160 = vst [vmem:[%s2984_s6 + $0x2a8] sm:$0xff] %v1032_v58  ;;  %v511_v9 = vadd.f32 %v2027_v7, %v376_v60  ;;  %v647_v10 = vmul.f32 %v2039_v43, %v242_v56  ;;  %v378_v11 = vmul.f32 %v2033_v5, %v115_v57  ;;  %v249_v50 = vld [vmem:[%s2981_s3 + $0x310] sm:$0xff]  ;;  %v250_v60 = vld [vmem:[%s2981_s3 + $0x318] sm:$0xff] }
  0x8c   :  { %v773_v8 = vadd.f32 %v645_v55, %v510_v59  ;;  %v1034_v14 = vmax.f32 %v906_v0, 0.0  ;;  %v907_v15 = vadd.f32 %v2048_v47, %v772_v1  ;;  %v512_v16 = vadd.f32 %v2027_v7, %v377_v3  ;;  %v122_v55 = vld [vmem:[%s2978_s0 + $0x318] sm:$0xff]  ;;  %v251_v3 = vld [vmem:[%s2981_s3 + $0x320] sm:$0xff] }
  0x8d   :  { %1161 = vst [vmem:[%s2984_s6 + $0x2b0] sm:$0xff] %v1033_v63  ;;  %v648_v17 = vmul.f32 %v2039_v43, %v243_v62  ;;  %v774_v19 = vadd.f32 %v646_v61, %v511_v9  ;;  %v513_v20 = vadd.f32 %v2027_v7, %v378_v11  ;;  %v379_v21 = vmul.f32 %v2033_v5, %v116_v6  ;;  %v123_v61 = vld [vmem:[%s2978_s0 + $0x320] sm:$0xff]  ;;  %v124_v11 = vld [vmem:[%s2978_s0 + $0x328] sm:$0xff] }
  0x8e   :  { %v908_v18 = vadd.f32 %v2048_v47, %v773_v8  ;;  %1162 = vst [vmem:[%s2984_s6 + $0x2b8] sm:$0xff] %v1034_v14  ;;  %v1035_v24 = vmax.f32 %v907_v15, 0.0  ;;  %v775_v25 = vadd.f32 %v647_v10, %v512_v16  ;;  %v649_v26 = vmul.f32 %v2039_v43, %v244_v12  ;;  %v252_v16 = vld [vmem:[%s2981_s3 + $0x328] sm:$0xff] }
  0x8f   :  { %v380_v27 = vmul.f32 %v2033_v5, %v117_v13  ;;  %v909_v30 = vadd.f32 %v2048_v47, %v774_v19  ;;  %v776_v31 = vadd.f32 %v648_v17, %v513_v20  ;;  %v514_v32 = vadd.f32 %v2027_v7, %v379_v21  ;;  %v125_v17 = vld [vmem:[%s2978_s0 + $0x330] sm:$0xff] }
  0x90   :  { %v1036_v29 = vmax.f32 %v908_v18, 0.0  ;;  %1163 = vst [vmem:[%s2984_s6 + $0x2c0] sm:$0xff] %v1035_v24  ;;  %v910_v34 = vadd.f32 %v2048_v47, %v775_v25  ;;  %v650_v36 = vmul.f32 %v2039_v43, %v245_v22  ;;  %v381_v37 = vmul.f32 %v2033_v5, %v118_v23 }
  0x91   :  { %v515_v35 = vadd.f32 %v2027_v7, %v380_v27  ;;  %v1037_v40 = vmax.f32 %v909_v30, 0.0  ;;  %v911_v2 = vadd.f32 %v2048_v47, %v776_v31  ;;  %v777_v41 = vadd.f32 %v649_v26, %v514_v32  ;;  %v253_v26 = vld [vmem:[%s2981_s3 + $0x330] sm:$0xff]  ;;  %v126_v27 = vld [vmem:[%s2978_s0 + $0x338] sm:$0xff] }
  0x92   :  { %1164 = vst [vmem:[%s2984_s6 + $0x2c8] sm:$0xff] %v1036_v29  ;;  %v651_v4 = vmul.f32 %v2039_v43, %v246_v28  ;;  %v1038_v44 = vmax.f32 %v910_v34, 0.0  ;;  %v516_v46 = vadd.f32 %v2027_v7, %v381_v37  ;;  %v382_v48 = vmul.f32 %v2033_v5, %v119_v33  ;;  %v254_v32 = vld [vmem:[%s2981_s3 + $0x338] sm:$0xff]  ;;  %v127_v37 = vld [vmem:[%s2978_s0 + $0x340] sm:$0xff] }
  0x93   :  { %v778_v45 = vadd.f32 %v650_v36, %v515_v35  ;;  %1165 = vst [vmem:[%s2984_s6 + $0x2d0] sm:$0xff] %v1037_v40  ;;  %v1039_v51 = vmax.f32 %v911_v2, 0.0  ;;  %v912_v52 = vadd.f32 %v2048_v47, %v777_v41  ;;  %v652_v53 = vmul.f32 %v2039_v43, %v247_v38  ;;  %v255_v41 = vld [vmem:[%s2981_s3 + $0x340] sm:$0xff] }
  0x94   :  { %v383_v54 = vmul.f32 %v2033_v5, %v120_v39  ;;  %1166 = vst [vmem:[%s2984_s6 + $0x2d8] sm:$0xff] %v1038_v44  ;;  %v779_v57 = vadd.f32 %v651_v4, %v516_v46  ;;  %v517_v58 = vadd.f32 %v2027_v7, %v382_v48  ;;  %v653_v59 = vmul.f32 %v2039_v43, %v248_v42  ;;  %v128_v4 = vld [vmem:[%s2978_s0 + $0x348] sm:$0xff] }
  0x95   :  { %v913_v56 = vadd.f32 %v2048_v47, %v778_v45  ;;  %1167 = vst [vmem:[%s2984_s6 + $0x2e0] sm:$0xff] %v1039_v51  ;;  %v1040_v62 = vmax.f32 %v912_v52, 0.0  ;;  %v384_v0 = vmul.f32 %v2033_v5, %v121_v49  ;;  %v654_v1 = vmul.f32 %v2039_v43, %v249_v50  ;;  %v256_v48 = vld [vmem:[%s2981_s3 + $0x348] sm:$0xff] }
  0x96   :  { %v518_v63 = vadd.f32 %v2027_v7, %v383_v54  ;;  %v914_v8 = vadd.f32 %v2048_v47, %v779_v57  ;;  %v780_v9 = vadd.f32 %v652_v53, %v517_v58  ;;  %v385_v10 = vmul.f32 %v2033_v5, %v122_v55  ;;  %v129_v53 = vld [vmem:[%s2978_s0 + $0x350] sm:$0xff] }
  0x97   :  { %v1041_v6 = vmax.f32 %v913_v56, 0.0  ;;  %1168 = vst [vmem:[%s2984_s6 + $0x2e8] sm:$0xff] %v1040_v62  ;;  %v519_v13 = vadd.f32 %v2027_v7, %v384_v0  ;;  %v655_v14 = vmul.f32 %v2039_v43, %v250_v60  ;;  %v386_v15 = vmul.f32 %v2033_v5, %v123_v61  ;;  %v257_v54 = vld [vmem:[%s2981_s3 + $0x350] sm:$0xff]  ;;  %v258_v0 = vld [vmem:[%s2981_s3 + $0x358] sm:$0xff] }
  0x98   :  { %v781_v12 = vadd.f32 %v653_v59, %v518_v63  ;;  %v1042_v18 = vmax.f32 %v914_v8, 0.0  ;;  %v915_v19 = vadd.f32 %v2048_v47, %v780_v9  ;;  %v520_v20 = vadd.f32 %v2027_v7, %v385_v10  ;;  %v130_v59 = vld [vmem:[%s2978_s0 + $0x358] sm:$0xff]  ;;  %v259_v10 = vld [vmem:[%s2981_s3 + $0x360] sm:$0xff] }
  0x99   :  { %1169 = vst [vmem:[%s2984_s6 + $0x2f0] sm:$0xff] %v1041_v6  ;;  %v656_v21 = vmul.f32 %v2039_v43, %v251_v3  ;;  %v782_v23 = vadd.f32 %v654_v1, %v519_v13  ;;  %v521_v24 = vadd.f32 %v2027_v7, %v386_v15  ;;  %v387_v25 = vmul.f32 %v2033_v5, %v124_v11  ;;  %v131_v1 = vld [vmem:[%s2978_s0 + $0x360] sm:$0xff]  ;;  %v132_v15 = vld [vmem:[%s2978_s0 + $0x368] sm:$0xff] }
  0x9a   :  { %v916_v22 = vadd.f32 %v2048_v47, %v781_v12  ;;  %1170 = vst [vmem:[%s2984_s6 + $0x2f8] sm:$0xff] %v1042_v18  ;;  %v1043_v28 = vmax.f32 %v915_v19, 0.0  ;;  %v783_v29 = vadd.f32 %v655_v14, %v520_v20  ;;  %v657_v30 = vmul.f32 %v2039_v43, %v252_v16  ;;  %v260_v20 = vld [vmem:[%s2981_s3 + $0x368] sm:$0xff] }
  0x9b   :  { %v388_v31 = vmul.f32 %v2033_v5, %v125_v17  ;;  %v917_v34 = vadd.f32 %v2048_v47, %v782_v23  ;;  %v784_v35 = vadd.f32 %v656_v21, %v521_v24  ;;  %v522_v36 = vadd.f32 %v2027_v7, %v387_v25  ;;  %v133_v21 = vld [vmem:[%s2978_s0 + $0x370] sm:$0xff] }
  0x9c   :  { %v1044_v33 = vmax.f32 %v916_v22, 0.0  ;;  %1171 = vst [vmem:[%s2984_s6 + $0x300] sm:$0xff] %v1043_v28  ;;  %v918_v38 = vadd.f32 %v2048_v47, %v783_v29  ;;  %v658_v40 = vmul.f32 %v2039_v43, %v253_v26  ;;  %v389_v2 = vmul.f32 %v2033_v5, %v126_v27 }
  0x9d   :  { %v523_v39 = vadd.f32 %v2027_v7, %v388_v31  ;;  %v1045_v42 = vmax.f32 %v917_v34, 0.0  ;;  %v919_v44 = vadd.f32 %v2048_v47, %v784_v35  ;;  %v785_v45 = vadd.f32 %v657_v30, %v522_v36  ;;  %v261_v30 = vld [vmem:[%s2981_s3 + $0x370] sm:$0xff]  ;;  %v134_v31 = vld [vmem:[%s2978_s0 + $0x378] sm:$0xff] }
  0x9e   :  { %1172 = vst [vmem:[%s2984_s6 + $0x308] sm:$0xff] %v1044_v33  ;;  %v659_v46 = vmul.f32 %v2039_v43, %v254_v32  ;;  %v1046_v49 = vmax.f32 %v918_v38, 0.0  ;;  %v524_v51 = vadd.f32 %v2027_v7, %v389_v2  ;;  %v390_v52 = vmul.f32 %v2033_v5, %v127_v37  ;;  %v262_v36 = vld [vmem:[%s2981_s3 + $0x378] sm:$0xff]  ;;  %v135_v2 = vld [vmem:[%s2978_s0 + $0x380] sm:$0xff] }
  0x9f   :  { %v786_v50 = vadd.f32 %v658_v40, %v523_v39  ;;  %1173 = vst [vmem:[%s2984_s6 + $0x310] sm:$0xff] %v1045_v42  ;;  %v1047_v55 = vmax.f32 %v919_v44, 0.0  ;;  %v920_v56 = vadd.f32 %v2048_v47, %v785_v45  ;;  %v660_v57 = vmul.f32 %v2039_v43, %v255_v41  ;;  %v263_v45 = vld [vmem:[%s2981_s3 + $0x380] sm:$0xff] }
  0xa0   :  { %v391_v58 = vmul.f32 %v2033_v5, %v128_v4  ;;  %1174 = vst [vmem:[%s2984_s6 + $0x318] sm:$0xff] %v1046_v49  ;;  %v787_v61 = vadd.f32 %v659_v46, %v524_v51  ;;  %v525_v62 = vadd.f32 %v2027_v7, %v390_v52  ;;  %v661_v63 = vmul.f32 %v2039_v43, %v256_v48  ;;  %v136_v46 = vld [vmem:[%s2978_s0 + $0x388] sm:$0xff] }
  0xa1   :  { %v921_v60 = vadd.f32 %v2048_v47, %v786_v50  ;;  %1175 = vst [vmem:[%s2984_s6 + $0x320] sm:$0xff] %v1047_v55  ;;  %v1048_v3 = vmax.f32 %v920_v56, 0.0  ;;  %v392_v8 = vmul.f32 %v2033_v5, %v129_v53  ;;  %v662_v9 = vmul.f32 %v2039_v43, %v257_v54  ;;  %v264_v52 = vld [vmem:[%s2981_s3 + $0x388] sm:$0xff] }
  0xa2   :  { %v526_v6 = vadd.f32 %v2027_v7, %v391_v58  ;;  %v922_v12 = vadd.f32 %v2048_v47, %v787_v61  ;;  %v788_v13 = vadd.f32 %v660_v57, %v525_v62  ;;  %v393_v14 = vmul.f32 %v2033_v5, %v130_v59  ;;  %v137_v57 = vld [vmem:[%s2978_s0 + $0x390] sm:$0xff] }
  0xa3   :  { %v1049_v11 = vmax.f32 %v921_v60, 0.0  ;;  %1176 = vst [vmem:[%s2984_s6 + $0x328] sm:$0xff] %v1048_v3  ;;  %v527_v17 = vadd.f32 %v2027_v7, %v392_v8  ;;  %v663_v18 = vmul.f32 %v2039_v43, %v258_v0  ;;  %v394_v19 = vmul.f32 %v2033_v5, %v131_v1  ;;  %v265_v58 = vld [vmem:[%s2981_s3 + $0x390] sm:$0xff]  ;;  %v266_v8 = vld [vmem:[%s2981_s3 + $0x398] sm:$0xff] }
  0xa4   :  { %v789_v16 = vadd.f32 %v661_v63, %v526_v6  ;;  %v1050_v22 = vmax.f32 %v922_v12, 0.0  ;;  %v923_v23 = vadd.f32 %v2048_v47, %v788_v13  ;;  %v528_v24 = vadd.f32 %v2027_v7, %v393_v14  ;;  %v138_v63 = vld [vmem:[%s2978_s0 + $0x398] sm:$0xff]  ;;  %v267_v14 = vld [vmem:[%s2981_s3 + $0x3a0] sm:$0xff] }
  0xa5   :  { %1177 = vst [vmem:[%s2984_s6 + $0x330] sm:$0xff] %v1049_v11  ;;  %v664_v25 = vmul.f32 %v2039_v43, %v259_v10  ;;  %v790_v27 = vadd.f32 %v662_v9, %v527_v17  ;;  %v529_v28 = vadd.f32 %v2027_v7, %v394_v19  ;;  %v395_v29 = vmul.f32 %v2033_v5, %v132_v15  ;;  %v139_v9 = vld [vmem:[%s2978_s0 + $0x3a0] sm:$0xff]  ;;  %v140_v19 = vld [vmem:[%s2978_s0 + $0x3a8] sm:$0xff] }
  0xa6   :  { %v924_v26 = vadd.f32 %v2048_v47, %v789_v16  ;;  %1178 = vst [vmem:[%s2984_s6 + $0x338] sm:$0xff] %v1050_v22  ;;  %v1051_v32 = vmax.f32 %v923_v23, 0.0  ;;  %v791_v33 = vadd.f32 %v663_v18, %v528_v24  ;;  %v665_v34 = vmul.f32 %v2039_v43, %v260_v20  ;;  %v268_v23 = vld [vmem:[%s2981_s3 + $0x3a8] sm:$0xff]  ;;  %v141_v24 = vld [vmem:[%s2978_s0 + $0x3b0] sm:$0xff] }
  0xa7   :  { %v396_v35 = vmul.f32 %v2033_v5, %v133_v21  ;;  %v925_v38 = vadd.f32 %v2048_v47, %v790_v27  ;;  %v792_v39 = vadd.f32 %v664_v25, %v529_v28  ;;  %v530_v40 = vadd.f32 %v2027_v7, %v395_v29  ;;  %v2801_v21 = vld [vmem:[%s2979_s1] ss:$0 sm:$0xff] }
  0xa8   :  { %v1052_v37 = vmax.f32 %v924_v26, 0.0  ;;  %1179 = vst [vmem:[%s2984_s6 + $0x340] sm:$0xff] %v1051_v32  ;;  %v926_v41 = vadd.f32 %v2048_v47, %v791_v33  ;;  %v666_v42 = vmul.f32 %v2039_v43, %v261_v30  ;;  %v397_v44 = vmul.f32 %v2033_v5, %v134_v31  ;;  %v2816_v26 = vld [vmem:[%s2983_s5] ss:$0 sm:$0xff] }
  0xa9   :  { %v531_v4 = vadd.f32 %v2027_v7, %v396_v35  ;;  %v1053_v48 = vmax.f32 %v925_v38, 0.0  ;;  %v927_v49 = vadd.f32 %v2048_v47, %v792_v39  ;;  %v793_v50 = vadd.f32 %v665_v34, %v530_v40  ;;  %v269_v34 = vld [vmem:[%s2981_s3 + $0x3b0] sm:$0xff]  ;;  %v142_v35 = vld [vmem:[%s2978_s0 + $0x3b8] sm:$0xff] }
  0xaa   :  { %1180 = vst [vmem:[%s2984_s6 + $0x348] sm:$0xff] %v1052_v37  ;;  %v667_v51 = vmul.f32 %v2039_v43, %v262_v36  ;;  %v1054_v53 = vmax.f32 %v926_v41, 0.0  ;;  %v532_v55 = vadd.f32 %v2027_v7, %v397_v44  ;;  %v398_v56 = vmul.f32 %v2033_v5, %v135_v2  ;;  %v270_v40 = vld [vmem:[%s2981_s3 + $0x3b8] sm:$0xff]  ;;  %v143_v44 = vld [vmem:[%s2978_s0 + $0x3c0] sm:$0xff] }
  0xab   :  { %v794_v54 = vadd.f32 %v666_v42, %v531_v4  ;;  %1181 = vst [vmem:[%s2984_s6 + $0x350] sm:$0xff] %v1053_v48  ;;  %v1055_v59 = vmax.f32 %v927_v49, 0.0  ;;  %v928_v60 = vadd.f32 %v2048_v47, %v793_v50  ;;  %v668_v61 = vmul.f32 %v2039_v43, %v263_v45  ;;  %v271_v50 = vld [vmem:[%s2981_s3 + $0x3c0] sm:$0xff] }
  0xac   :  { %v399_v62 = vmul.f32 %v2033_v5, %v136_v46  ;;  %1182 = vst [vmem:[%s2984_s6 + $0x358] sm:$0xff] %v1054_v53  ;;  %v795_v1 = vadd.f32 %v667_v51, %v532_v55  ;;  %v533_v3 = vadd.f32 %v2027_v7, %v398_v56  ;;  %v669_v6 = vmul.f32 %v2039_v43, %v264_v52  ;;  %v144_v51 = vld [vmem:[%s2978_s0 + $0x3c8] sm:$0xff] }
  0xad   :  { %v929_v0 = vadd.f32 %v2048_v47, %v794_v54  ;;  %1183 = vst [vmem:[%s2984_s6 + $0x360] sm:$0xff] %v1055_v59  ;;  %v1056_v10 = vmax.f32 %v928_v60, 0.0  ;;  %v400_v12 = vmul.f32 %v2033_v5, %v137_v57  ;;  %v670_v13 = vmul.f32 %v2039_v43, %v265_v58  ;;  %v2789_v43 = vld [vmem:[%s2980_s2] ss:$0 sm:$0xff]  ;;  %v272_v56 = vld [vmem:[%s2981_s3 + $0x3c8] sm:$0xff] }
  0xae   :  { %v534_v11 = vadd.f32 %v2027_v7, %v399_v62  ;;  %v930_v16 = vadd.f32 %v2048_v47, %v795_v1  ;;  %v796_v17 = vadd.f32 %v668_v61, %v533_v3  ;;  %v401_v18 = vmul.f32 %v2033_v5, %v138_v63  ;;  %v2795_v5 = vld [vmem:[%s2982_s4] ss:$0 sm:$0xff]  ;;  %v145_v61 = vld [vmem:[%s2978_s0 + $0x3d0] sm:$0xff] }
  0xaf   :  { %v1057_v15 = vmax.f32 %v929_v0, 0.0  ;;  %1184 = vst [vmem:[%s2984_s6 + $0x368] sm:$0xff] %v1056_v10  ;;  %v535_v20 = vadd.f32 %v2789_v43, %v400_v12  ;;  %v671_v47 = vmul.f32 %v2795_v5, %v266_v8  ;;  %v402_v22 = vmul.f32 %v2801_v21, %v139_v9  ;;  %v273_v62 = vld [vmem:[%s2981_s3 + $0x3d0] sm:$0xff]  ;;  %v274_v12 = vld [vmem:[%s2981_s3 + $0x3d8] sm:$0xff] }
  0xb0   :  { %v797_v7 = vadd.f32 %v669_v6, %v534_v11  ;;  %v1058_v25 = vmax.f32 %v930_v16, 0.0  ;;  %v931_v27 = vadd.f32 %v2816_v26, %v796_v17  ;;  %v536_v28 = vadd.f32 %v2789_v43, %v401_v18  ;;  %v146_v6 = vld [vmem:[%s2978_s0 + $0x3d8] sm:$0xff]  ;;  %v275_v18 = vld [vmem:[%s2981_s3 + $0x3e0] sm:$0xff] }
  0xb1   :  { %1185 = vst [vmem:[%s2984_s6 + $0x370] sm:$0xff] %v1057_v15  ;;  %v672_v29 = vmul.f32 %v2795_v5, %v267_v14  ;;  %v798_v31 = vadd.f32 %v670_v13, %v535_v20  ;;  %v537_v32 = vadd.f32 %v2789_v43, %v402_v22  ;;  %v403_v33 = vmul.f32 %v2801_v21, %v140_v19  ;;  %v147_v13 = vld [vmem:[%s2978_s0 + $0x3e0] sm:$0xff]  ;;  %v148_v22 = vld [vmem:[%s2978_s0 + $0x3e8] sm:$0xff] }
  0xb2   :  { %v932_v30 = vadd.f32 %v2816_v26, %v797_v7  ;;  %1186 = vst [vmem:[%s2984_s6 + $0x378] sm:$0xff] %v1058_v25  ;;  %v1059_v36 = vmax.f32 %v931_v27, 0.0  ;;  %v799_v37 = vadd.f32 %v671_v47, %v536_v28  ;;  %v673_v38 = vmul.f32 %v2795_v5, %v268_v23  ;;  %v276_v28 = vld [vmem:[%s2981_s3 + $0x3e8] sm:$0xff] }
  0xb3   :  { %v404_v39 = vmul.f32 %v2801_v21, %v141_v24  ;;  %v933_v41 = vadd.f32 %v2816_v26, %v798_v31  ;;  %v800_v4 = vadd.f32 %v672_v29, %v537_v32  ;;  %v538_v42 = vadd.f32 %v2789_v43, %v403_v33  ;;  %v149_v29 = vld [vmem:[%s2978_s0 + $0x3f0] sm:$0xff] }
  0xb4   :  { %v1060_v2 = vmax.f32 %v932_v30, 0.0  ;;  %1187 = vst [vmem:[%s2984_s6 + $0x380] sm:$0xff] %v1059_v36  ;;  %v934_v45 = vadd.f32 %v2816_v26, %v799_v37  ;;  %v674_v48 = vmul.f32 %v2795_v5, %v269_v34  ;;  %v405_v49 = vmul.f32 %v2801_v21, %v142_v35 }
  0xb5   :  { %v539_v46 = vadd.f32 %v2789_v43, %v404_v39  ;;  %v1061_v52 = vmax.f32 %v933_v41, 0.0  ;;  %v935_v53 = vadd.f32 %v2816_v26, %v800_v4  ;;  %v801_v54 = vadd.f32 %v673_v38, %v538_v42  ;;  %v277_v38 = vld [vmem:[%s2981_s3 + $0x3f0] sm:$0xff]  ;;  %v150_v39 = vld [vmem:[%s2978_s0 + $0x3f8] sm:$0xff] }
  0xb6   :  { %1188 = vst [vmem:[%s2984_s6 + $0x388] sm:$0xff] %v1060_v2  ;;  %v675_v55 = vmul.f32 %v2795_v5, %v270_v40  ;;  %v1062_v57 = vmax.f32 %v934_v45, 0.0  ;;  %v540_v59 = vadd.f32 %v2789_v43, %v405_v49  ;;  %v406_v60 = vmul.f32 %v2801_v21, %v143_v44  ;;  %v278_v42 = vld [vmem:[%s2981_s3 + $0x3f8] sm:$0xff] }
  0xb7   :  { %v802_v58 = vadd.f32 %v674_v48, %v539_v46  ;;  %1189 = vst [vmem:[%s2984_s6 + $0x390] sm:$0xff] %v1061_v52  ;;  %v1063_v63 = vmax.f32 %v935_v53, 0.0  ;;  %v936_v0 = vadd.f32 %v2816_v26, %v801_v54  ;;  %v676_v1 = vmul.f32 %v2795_v5, %v271_v50 }
  0xb8   :  { %v407_v3 = vmul.f32 %v2801_v21, %v144_v51  ;;  %1190 = vst [vmem:[%s2984_s6 + $0x398] sm:$0xff] %v1062_v57  ;;  %v803_v9 = vadd.f32 %v675_v55, %v540_v59  ;;  %v541_v10 = vadd.f32 %v2789_v43, %v406_v60  ;;  %v677_v11 = vmul.f32 %v2795_v5, %v272_v56 }
  0xb9   :  { %v937_v8 = vadd.f32 %v2816_v26, %v802_v58  ;;  %1191 = vst [vmem:[%s2984_s6 + $0x3a0] sm:$0xff] %v1063_v63  ;;  %v1064_v14 = vmax.f32 %v936_v0, 0.0  ;;  %v408_v16 = vmul.f32 %v2801_v21, %v145_v61  ;;  %v678_v17 = vmul.f32 %v2795_v5, %v273_v62 }
  0xba   :  { %v542_v15 = vadd.f32 %v2789_v43, %v407_v3  ;;  %v938_v7 = vadd.f32 %v2816_v26, %v803_v9  ;;  %v804_v20 = vadd.f32 %v676_v1, %v541_v10  ;;  %v409_v47 = vmul.f32 %v2801_v21, %v146_v6 }
  0xbb   :  { %v1065_v19 = vmax.f32 %v937_v8, 0.0  ;;  %1192 = vst [vmem:[%s2984_s6 + $0x3a8] sm:$0xff] %v1064_v14  ;;  %v543_v24 = vadd.f32 %v2789_v43, %v408_v16  ;;  %v679_v25 = vmul.f32 %v2795_v5, %v274_v12  ;;  %v410_v27 = vmul.f32 %v2801_v21, %v147_v13 }
  0xbc   :  { %v805_v23 = vadd.f32 %v677_v11, %v542_v15  ;;  %v1066_v30 = vmax.f32 %v938_v7, 0.0  ;;  %v939_v31 = vadd.f32 %v2816_v26, %v804_v20  ;;  %v544_v32 = vadd.f32 %v2789_v43, %v409_v47 }
  0xbd   :  { %1193 = vst [vmem:[%s2984_s6 + $0x3b0] sm:$0xff] %v1065_v19  ;;  %v680_v33 = vmul.f32 %v2795_v5, %v275_v18  ;;  %v806_v35 = vadd.f32 %v678_v17, %v543_v24  ;;  %v545_v36 = vadd.f32 %v2789_v43, %v410_v27  ;;  %v411_v37 = vmul.f32 %v2801_v21, %v148_v22 }
  0xbe   :  { %v940_v34 = vadd.f32 %v2816_v26, %v805_v23  ;;  %1194 = vst [vmem:[%s2984_s6 + $0x3b8] sm:$0xff] %v1066_v30  ;;  %v1067_v40 = vmax.f32 %v939_v31, 0.0  ;;  %v807_v2 = vadd.f32 %v679_v25, %v544_v32  ;;  %v681_v41 = vmul.f32 %v2795_v5, %v276_v28 }
  0xbf   :  { %v412_v4 = vmul.f32 %v2801_v21, %v149_v29  ;;  %v941_v45 = vadd.f32 %v2816_v26, %v806_v35  ;;  %v808_v46 = vadd.f32 %v680_v33, %v545_v36  ;;  %v546_v48 = vadd.f32 %v2789_v43, %v411_v37 }
  0xc0   :  { %v1068_v44 = vmax.f32 %v940_v34, 0.0  ;;  %1195 = vst [vmem:[%s2984_s6 + $0x3c0] sm:$0xff] %v1067_v40  ;;  %v942_v49 = vadd.f32 %v2816_v26, %v807_v2  ;;  %v682_v51 = vmul.f32 %v2795_v5, %v277_v38  ;;  %v413_v52 = vmul.f32 %v2801_v21, %v150_v39 }
  0xc1   :  { %v547_v50 = vadd.f32 %v2789_v43, %v412_v4  ;;  %v1069_v53 = vmax.f32 %v941_v45, 0.0  ;;  %v943_v54 = vadd.f32 %v2816_v26, %v808_v46  ;;  %v809_v55 = vadd.f32 %v681_v41, %v546_v48 }
  0xc2   :  { %1196 = vst [vmem:[%s2984_s6 + $0x3c8] sm:$0xff] %v1068_v44  ;;  %v683_v56 = vmul.f32 %v2795_v5, %v278_v42  ;;  %v1070_v57 = vmax.f32 %v942_v49, 0.0  ;;  %v548_v59 = vadd.f32 %v2789_v43, %v413_v52 }
  0xc3   :  { %v810_v58 = vadd.f32 %v682_v51, %v547_v50  ;;  %1197 = vst [vmem:[%s2984_s6 + $0x3d0] sm:$0xff] %v1069_v53  ;;  %v1071_v60 = vmax.f32 %v943_v54, 0.0  ;;  %v944_v21 = vadd.f32 %v2816_v26, %v809_v55 }
  0xc4   :  { %1198 = vst [vmem:[%s2984_s6 + $0x3d8] sm:$0xff] %v1070_v57  ;;  %v811_v62 = vadd.f32 %v683_v56, %v548_v59 }
  0xc5   :  { %v945_v61 = vadd.f32 %v2816_v26, %v810_v58  ;;  %1199 = vst [vmem:[%s2984_s6 + $0x3e0] sm:$0xff] %v1071_v60  ;;  %v1072_v5 = vmax.f32 %v944_v21, 0.0 }
  0xc6   :  { %v946_v63 = vadd.f32 %v2816_v26, %v811_v62 }
  0xc7   :  { %v1073_v43 = vmax.f32 %v945_v61, 0.0  ;;  %1200 = vst [vmem:[%s2984_s6 + $0x3e8] sm:$0xff] %v1072_v5 }
  0xc8   :  { %v1074_v0 = vmax.f32 %v946_v63, 0.0 }
  0xc9   :  { %1201 = vst [vmem:[%s2984_s6 + $0x3f0] sm:$0xff] %v1073_v43 }
  0xca   :  { %1202 = vst [vmem:[%s2984_s6 + $0x3f8] sm:$0xff] %v1074_v0 }

</bundles_post_ra>
